<compile_context>
chip_gen: v7x
topology: tpu7x:2x2x1
jax: 0.10.0
libtpu: 0.0.40
codegen_flags: <defaults>
</compile_context>

<pallas_src>
import functools
import math

import numpy as np
import jax
import jax.numpy as jnp
from jax.experimental import pallas as pl
from jax.experimental.pallas import tpu as pltpu

HID = 64            # hidden width of RealNVP scale/translation nets
N_LAYERS = 6        # number of coupling layers (mask = [[0,1],[1,0]] * 3)
FUSED = 2 * HID     # s-net and t-net hiddens concatenated
LOG_2PI = math.log(2.0 * math.pi)
LOG_2 = math.log(2.0)


def _round_up(x, m):
    return (x + m - 1) // m * m


def _pick_tile(nk):
    """Choose the lane tile: amortize ~0.35us/step overhead (~176 keypoints of
    compute) against padded work; cap at 1024 to bound vreg/VMEM pressure."""
    best, best_cost = 256, None
    for t in (256, 512, 1024):
        steps = -(-max(nk, 1) // t)
        cost = steps * (t + 176)
        if best_cost is None or cost < best_cost:
            best, best_cost = t, cost
    return best


def _leaky_relu(h):
    # max(h, 0.01*h) == LeakyReLU(0.01): 2 VPU ops/elem instead of cmp+mul+select
    return jnp.maximum(h, 0.01 * h)


# ----------------------------------------------------------------------------
# Pallas kernel
# ----------------------------------------------------------------------------
def rle_loss_kernel(nk_ref,                       # (1,) int32  (scalar prefetch)
                    out_ref, tgt_ref,             # (4, T), (2, T)
                    w1_ref, b1_ref,               # (6, 128, 1) each
                    w2_ref, b2_ref,               # (6, 128, 128), (6, 128, 1)
                    w3_ref, b3_ref,               # (6, 2, 128),   (6, 2, 1)
                    loss_ref,                     # (8, 128) per-tile partial sum
                    *, tile):
    o = out_ref[...]                              # (4, T)
    tgt = tgt_ref[...]                            # (2, T)

    pred = o[0:2, :]
    sigma = jax.nn.sigmoid(o[2:4, :])             # (2, T)
    error = (pred - tgt) / (sigma + 1e-9)         # (2, T)

    z0 = error[0:1, :]
    z1 = error[1:2, :]
    log_det = jnp.zeros((1, tile), jnp.float32)

    # RealNVP.backward_p: coupling layers in reverse.  masks[i] keeps channel
    # a = 1 for even i ([0,1]) and a = 0 for odd i ([1,0]); p = 1-a is updated.
    for i in reversed(range(N_LAYERS)):
        a = 1 if (i % 2 == 0) else 0
        z_a = z1 if a == 1 else z0                # (1, T) active (kept) channel

        # fused first layers of s-net & t-net: rank-1 outer product on the VPU
        h = w1_ref[i] * z_a + b1_ref[i]           # (128, T)
        h = _leaky_relu(h)

        # fused hidden GEMM (block-diagonal [sW2^T, 0; 0, tW2^T]) on the MXU
        h = jnp.dot(w2_ref[i], h, preferred_element_type=jnp.float32) + b2_ref[i]
        h = _leaky_relu(h)

        # fused output layer: only the passive output channel of each net
        st = jnp.dot(w3_ref[i], h, preferred_element_type=jnp.float32) + b3_ref[i]
        s = jnp.tanh(st[0:1, :])                  # (1, T)
        t = st[1:2, :]                            # (1, T)

        if a == 1:
            z0 = (z0 - t) * jnp.exp(-s)
        else:
            z1 = (z1 - t) * jnp.exp(-s)
        log_det = log_det - s                     # == -sum(s, channels)

    # standard-normal prior: -0.5*||z||^2 - log(2*pi)  (2-D, identity cov)
    log_prior = -0.5 * (z0 * z0 + z1 * z1) - LOG_2PI
    log_phi = log_prior + log_det                 # (1, T)

    log_sigma = jnp.log(sigma)                    # (2, T)
    ls_sum = log_sigma[0:1, :] + log_sigma[1:2, :]
    abs_e = jnp.abs(error[0:1, :]) + jnp.abs(error[1:2, :])
    # per-keypoint sum over the two channels of (nf_loss + loss_q):
    #   sum_c [(ls_c - log_phi) + (ls_c + log2 + |e_c|)]
    per_kp = 2.0 * ls_sum - 2.0 * log_phi + 2.0 * LOG_2 + abs_e   # (1, T)

    # mask padded keypoint columns
    col = pl.program_id(0) * tile + jax.lax.broadcasted_iota(jnp.int32, (1, tile), 1)
    per_kp = jnp.where(col < nk_ref[0], per_kp, 0.0)
    tile_sum = jnp.sum(per_kp)

    # lane-aligned scalar output: value at [0, 0], zeros elsewhere
    ri = jax.lax.broadcasted_iota(jnp.int32, (8, 128), 0)
    ci = jax.lax.broadcasted_iota(jnp.int32, (8, 128), 1)
    loss_ref[...] = jnp.where((ri == 0) & (ci == 0), tile_sum, 0.0)


# ----------------------------------------------------------------------------
# Parameter repacking (wrapper-side layout plumbing)
# ----------------------------------------------------------------------------
def pack_fused_params(params):
    """Repack raw RealNVP params into the fused, transposed layout the kernel uses."""
    sW1, sB1, sW2, sB2, sW3, sB3, tW1, tB1, tW2, tB2, tW3, tB3 = params
    w1f, b1f, w2f, b2f, w3f, b3f = [], [], [], [], [], []
    for i in range(N_LAYERS):
        a = 1 if (i % 2 == 0) else 0      # kept input channel
        p = 1 - a                         # updated output channel
        w1f.append(jnp.concatenate([sW1[i, a, :], tW1[i, a, :]])[:, None])   # (128,1)
        b1f.append(jnp.concatenate([sB1[i, 0, :], tB1[i, 0, :]])[:, None])   # (128,1)
        w2 = jnp.zeros((FUSED, FUSED), jnp.float32)
        w2 = w2.at[:HID, :HID].set(sW2[i].T).at[HID:, HID:].set(tW2[i].T)
        w2f.append(w2)                                                       # (128,128)
        b2f.append(jnp.concatenate([sB2[i, 0, :], tB2[i, 0, :]])[:, None])   # (128,1)
        zeros = jnp.zeros((HID,), jnp.float32)
        w3f.append(jnp.stack([jnp.concatenate([sW3[i, :, p], zeros]),
                              jnp.concatenate([zeros, tW3[i, :, p]])], axis=0))  # (2,128)
        b3f.append(jnp.stack([sB3[i, 0, p], tB3[i, 0, p]])[:, None])         # (2,1)
    return (jnp.stack(w1f), jnp.stack(b1f), jnp.stack(w2f),
            jnp.stack(b2f), jnp.stack(w3f), jnp.stack(b3f))


# ----------------------------------------------------------------------------
# Wrapper
# ----------------------------------------------------------------------------
def rle_loss(output, target, type_label, params, *, size_average=True, tile=None):
    """output: (N, K, 4), target: (N, K, 2). type_label is unused (API parity)."""
    del type_label  # unused by the reference forward
    # TODO(synk): use_target_weight / q_dis='gaussian'/'strict' branches not
    #             implemented (module defaults: residual=True, q_dis='laplace').
    N, K, _ = output.shape
    NK = N * K
    if tile is None:
        tile = _pick_tile(NK)

    # lane-dense transposed layout: channels on sublanes, keypoints on lanes
    out_t = output.astype(jnp.float32).reshape(NK, 4).T       # (4, NK)
    tgt_t = target.astype(jnp.float32).reshape(NK, 2).T       # (2, NK)
    nk_pad = _round_up(max(NK, tile), tile)
    out_t = jnp.pad(out_t, ((0, 0), (0, nk_pad - NK)))
    tgt_t = jnp.pad(tgt_t, ((0, 0), (0, nk_pad - NK)))

    fused = pack_fused_params(params)
    grid = nk_pad // tile

    def param_spec(shape):
        return pl.BlockSpec(shape, lambda i, nk, _s=shape: (0,) * len(_s))

    grid_spec = pltpu.PrefetchScalarGridSpec(
        num_scalar_prefetch=1,
        grid=(grid,),
        in_specs=[
            pl.BlockSpec((4, tile), lambda i, nk: (0, i)),
            pl.BlockSpec((2, tile), lambda i, nk: (0, i)),
            param_spec((N_LAYERS, FUSED, 1)),
            param_spec((N_LAYERS, FUSED, 1)),
            param_spec((N_LAYERS, FUSED, FUSED)),
            param_spec((N_LAYERS, FUSED, 1)),
            param_spec((N_LAYERS, 2, FUSED)),
            param_spec((N_LAYERS, 2, 1)),
        ],
        out_specs=pl.BlockSpec((8, 128), lambda i, nk: (0, i)),
    )

    partials = pl.pallas_call(
        functools.partial(rle_loss_kernel, tile=tile),
        out_shape=jax.ShapeDtypeStruct((8, grid * 128), jnp.float32),
        grid_spec=grid_spec,
        compiler_params=pltpu.CompilerParams(
            dimension_semantics=("parallel",)),
    )(jnp.array([NK], jnp.int32), out_t, tgt_t, *fused)

    inv_n = (1.0 / N) if size_average else 1.0
    return jnp.sum(partials) * inv_n


# ----------------------------------------------------------------------------
# Deterministic parameter init (shapes match RealNVP: 6 scale nets + 6 trans nets,
# each Linear(2,64)->LeakyReLU->Linear(64,64)->LeakyReLU->Linear(64,2)[->Tanh])
# ----------------------------------------------------------------------------
def init_realnvp_params(key):
    def xavier(k, fan_in, fan_out, gain=0.01):
        a = gain * math.sqrt(6.0 / (fan_in + fan_out))
        return jax.random.uniform(k, (fan_in, fan_out), jnp.float32, -a, a)

    def bias(k, fan_in, fan_out):
        b = 1.0 / math.sqrt(fan_in)
        return jax.random.uniform(k, (1, fan_out), jnp.float32, -b, b)

    keys = jax.random.split(key, 2 * N_LAYERS * 6)
    it = iter(keys)

    def make_net():
        W1 = xavier(next(it), 2, HID);   b1 = bias(next(it), 2, HID)
        W2 = xavier(next(it), HID, HID); b2 = bias(next(it), HID, HID)
        W3 = xavier(next(it), HID, 2);   b3 = bias(next(it), HID, 2)
        return W1, b1, W2, b2, W3, b3

    s_nets = [make_net() for _ in range(N_LAYERS)]
    t_nets = [make_net() for _ in range(N_LAYERS)]

    def stack(nets, j):
        return jnp.stack([n[j] for n in nets], axis=0)

    params = tuple(stack(s_nets, j) for j in range(6)) + \
             tuple(stack(t_nets, j) for j in range(6))
    # shapes: W1 (6,2,64), b1 (6,1,64), W2 (6,64,64), b2 (6,1,64), W3 (6,64,2), b3 (6,1,2)
    return params


# ----------------------------------------------------------------------------
# Pure-JAX reference (mirrors the PyTorch forward) for a correctness check
# ----------------------------------------------------------------------------
def rle_loss_ref(output, target, params, size_average=True):
    sW1, sB1, sW2, sB2, sW3, sB3, tW1, tB1, tW2, tB2, tW3, tB3 = params
    N, K, _ = output.shape
    pred = output[:, :, :2]
    sigma = jax.nn.sigmoid(output[:, :, 2:4])
    error = (pred - target) / (sigma + 1e-9)
    x = error.reshape(-1, 2)
    masks = jnp.asarray(np.array([[0., 1.], [1., 0.]] * 3, dtype=np.float32))

    def mlp(h, W1, b1, W2, b2, W3, b3, tanh):
        h = h @ W1 + b1
        h = jnp.where(h > 0, h, 0.01 * h)
        h = h @ W2 + b2
        h = jnp.where(h > 0, h, 0.01 * h)
        h = h @ W3 + b3
        return jnp.tanh(h) if tanh else h

    z = x
    log_det = jnp.zeros((x.shape[0],), jnp.float32)
    for i in reversed(range(N_LAYERS)):
        m = masks[i]
        z_ = m * z
        s = mlp(z_, sW1[i], sB1[i], sW2[i], sB2[i], sW3[i], sB3[i], True) * (1 - m)
        t = mlp(z_, tW1[i], tB1[i], tW2[i], tB2[i], tW3[i], tB3[i], False) * (1 - m)
        z = (1 - m) * (z - t) * jnp.exp(-s) + z_
        log_det = log_det - s.sum(axis=1)
    log_prior = -0.5 * jnp.sum(z * z, axis=1) - jnp.log(2.0 * jnp.pi)
    log_phi = (log_prior + log_det).reshape(N, K, 1)
    nf_loss = jnp.log(sigma) - log_phi
    loss_q = jnp.log(sigma * 2.0) + jnp.abs(error)
    loss = nf_loss + loss_q
    if size_average:
        loss = loss / N
    return loss.sum()


if __name__ == "__main__":
    key = jax.random.PRNGKey(0)
    k_o1, k_t1, k_params, k_o2, k_t2, k_o3, k_t3 = jax.random.split(key, 7)
    params = init_realnvp_params(k_params)

    # 1) small case (grid = 1, heavy lane padding/masking)
    N, K = 2, 8
    output = jax.random.normal(k_o1, (N, K, 4), jnp.float32)   # coords + sigma logits
    target = jax.random.normal(k_t1, (N, K, 2), jnp.float32)
    type_label = jnp.zeros((N, K), jnp.int32)                   # unused by forward
    loss = jax.block_until_ready(rle_loss(output, target, type_label, params))
    ref = jax.block_until_ready(rle_loss_ref(output, target, params))
    np.testing.assert_allclose(np.asarray(loss), np.asarray(ref), rtol=1e-3, atol=1e-3)

    # 2) multi-tile path forced (tile=256 -> grid = 2, ragged last tile)
    N2, K2 = 4, 96   # NK = 384
    output2 = jax.random.normal(k_o2, (N2, K2, 4), jnp.float32)
    target2 = jax.random.normal(k_t2, (N2, K2, 2), jnp.float32)
    type_label2 = jnp.zeros((N2, K2), jnp.int32)
    loss2 = jax.block_until_ready(
        rle_loss(output2, target2, type_label2, params, tile=256))
    ref2 = jax.block_until_ready(rle_loss_ref(output2, target2, params))
    np.testing.assert_allclose(np.asarray(loss2), np.asarray(ref2), rtol=1e-3, atol=1e-3)

    # 3) adaptive tile with multiple grid steps and a ragged last tile
    N3, K3 = 8, 150  # NK = 1200 -> tile 512, grid 3
    output3 = jax.random.normal(k_o3, (N3, K3, 4), jnp.float32)
    target3 = jax.random.normal(k_t3, (N3, K3, 2), jnp.float32)
    type_label3 = jnp.zeros((N3, K3), jnp.int32)
    loss3 = jax.block_until_ready(rle_loss(output3, target3, type_label3, params))
    ref3 = jax.block_until_ready(rle_loss_ref(output3, target3, params))
    np.testing.assert_allclose(np.asarray(loss3), np.asarray(ref3), rtol=1e-3, atol=1e-3)

    print("KERNEL_OK")
</pallas_src>

<mosaic_0001>
module attributes {stable_mosaic.version = 11 : i64} {
  func.func @rle_loss_kernel(%arg0: i32, %arg1: memref<1xi32, #tpu.memory_space<smem>>, %arg2: memref<4x256xf32, #tpu.memory_space<vmem>>, %arg3: memref<2x256xf32, #tpu.memory_space<vmem>>, %arg4: memref<6x128x1xf32, #tpu.memory_space<vmem>>, %arg5: memref<6x128x1xf32, #tpu.memory_space<vmem>>, %arg6: memref<6x128x128xf32, #tpu.memory_space<vmem>>, %arg7: memref<6x128x1xf32, #tpu.memory_space<vmem>>, %arg8: memref<6x2x128xf32, #tpu.memory_space<vmem>>, %arg9: memref<6x2x1xf32, #tpu.memory_space<vmem>>, %arg10: memref<8x128xf32, #tpu.memory_space<vmem>>) attributes {dimension_semantics = [#tpu.dimension_semantics<parallel>], iteration_bounds = array<i64: 1>, scalar_prefetch = 1 : i64, scratch_operands = 0 : i64, tpu.core_type = #tpu.core_type<tc>, window_params = [{transform_indices = @transform_0, window_bounds = array<i64: 4, 256>}, {transform_indices = @transform_1, window_bounds = array<i64: 2, 256>}, {pipeline_mode = #tpu.pipeline_mode<synchronous>, transform_indices = @transform_2, window_bounds = array<i64: 6, 128, 1>}, {pipeline_mode = #tpu.pipeline_mode<synchronous>, transform_indices = @transform_3, window_bounds = array<i64: 6, 128, 1>}, {pipeline_mode = #tpu.pipeline_mode<synchronous>, transform_indices = @transform_4, window_bounds = array<i64: 6, 128, 128>}, {pipeline_mode = #tpu.pipeline_mode<synchronous>, transform_indices = @transform_5, window_bounds = array<i64: 6, 128, 1>}, {pipeline_mode = #tpu.pipeline_mode<synchronous>, transform_indices = @transform_6, window_bounds = array<i64: 6, 2, 128>}, {pipeline_mode = #tpu.pipeline_mode<synchronous>, transform_indices = @transform_7, window_bounds = array<i64: 6, 2, 1>}, {transform_indices = @transform_8, window_bounds = array<i64: 8, 128>}]} {
    %c0 = arith.constant 0 : index
    %c0_0 = arith.constant 0 : index
    %0 = vector.load %arg2[%c0, %c0_0] : memref<4x256xf32, #tpu.memory_space<vmem>>, vector<4x256xf32>
    %c0_1 = arith.constant 0 : index
    %c0_2 = arith.constant 0 : index
    %1 = vector.load %arg3[%c0_1, %c0_2] : memref<2x256xf32, #tpu.memory_space<vmem>>, vector<2x256xf32>
    %2 = vector.extract_strided_slice %0 {offsets = [0, 0], sizes = [2, 256], strides = [1, 1]} : vector<4x256xf32> to vector<2x256xf32>
    %3 = vector.extract_strided_slice %0 {offsets = [2, 0], sizes = [2, 256], strides = [1, 1]} : vector<4x256xf32> to vector<2x256xf32>
    %4 = arith.negf %3 : vector<2x256xf32>
    %5 = math.exp %4 : vector<2x256xf32>
    %cst = arith.constant 1.000000e+00 : f32
    %6 = vector.broadcast %cst : f32 to vector<2x256xf32>
    %7 = arith.addf %6, %5 : vector<2x256xf32>
    %8 = arith.divf %6, %7 : vector<2x256xf32>
    %9 = arith.subf %2, %1 : vector<2x256xf32>
    %cst_3 = arith.constant 9.99999971E-10 : f32
    %10 = vector.broadcast %cst_3 : f32 to vector<2x256xf32>
    %11 = arith.addf %8, %10 : vector<2x256xf32>
    %12 = arith.divf %9, %11 : vector<2x256xf32>
    %13 = vector.extract_strided_slice %12 {offsets = [0, 0], sizes = [1, 256], strides = [1, 1]} : vector<2x256xf32> to vector<1x256xf32>
    %14 = vector.extract_strided_slice %12 {offsets = [1, 0], sizes = [1, 256], strides = [1, 1]} : vector<2x256xf32> to vector<1x256xf32>
    %cst_4 = arith.constant 0.000000e+00 : f32
    %15 = vector.broadcast %cst_4 : f32 to vector<1x256xf32>
    %c5 = arith.constant 5 : index
    %c0_5 = arith.constant 0 : index
    %c0_6 = arith.constant 0 : index
    %16 = vector.load %arg4[%c5, %c0_5, %c0_6] : memref<6x128x1xf32, #tpu.memory_space<vmem>>, vector<1x128x1xf32>
    %17 = vector.shape_cast %16 : vector<1x128x1xf32> to vector<128x1xf32>
    %18 = vector.broadcast %17 : vector<128x1xf32> to vector<128x256xf32>
    %19 = vector.broadcast %13 : vector<1x256xf32> to vector<128x256xf32>
    %20 = arith.mulf %18, %19 : vector<128x256xf32>
    %c5_7 = arith.constant 5 : index
    %c0_8 = arith.constant 0 : index
    %c0_9 = arith.constant 0 : index
    %21 = vector.load %arg5[%c5_7, %c0_8, %c0_9] : memref<6x128x1xf32, #tpu.memory_space<vmem>>, vector<1x128x1xf32>
    %22 = vector.shape_cast %21 : vector<1x128x1xf32> to vector<128x1xf32>
    %23 = vector.broadcast %22 : vector<128x1xf32> to vector<128x256xf32>
    %24 = arith.addf %20, %23 : vector<128x256xf32>
    %cst_10 = arith.constant 0.00999999977 : f32
    %25 = vector.broadcast %cst_10 : f32 to vector<128x256xf32>
    %26 = arith.mulf %25, %24 : vector<128x256xf32>
    %27 = arith.maximumf %24, %26 : vector<128x256xf32>
    %c5_11 = arith.constant 5 : index
    %c0_12 = arith.constant 0 : index
    %c0_13 = arith.constant 0 : index
    %28 = vector.load %arg6[%c5_11, %c0_12, %c0_13] : memref<6x128x128xf32, #tpu.memory_space<vmem>>, vector<1x128x128xf32>
    %29 = vector.shape_cast %28 : vector<1x128x128xf32> to vector<128x128xf32>
    %cst_14 = arith.constant dense<0.000000e+00> : vector<128x256xf32>
    %30 = tpu.matmul %29, %27, %cst_14 {dimension_numbers = #tpu.dot_dimension_numbers<[1], [0], [0], [1], [0, 0, 1, 1], [], []>} : vector<128x128xf32>, vector<128x256xf32>, vector<128x256xf32> -> vector<128x256xf32>
    %c5_15 = arith.constant 5 : index
    %c0_16 = arith.constant 0 : index
    %c0_17 = arith.constant 0 : index
    %31 = vector.load %arg7[%c5_15, %c0_16, %c0_17] : memref<6x128x1xf32, #tpu.memory_space<vmem>>, vector<1x128x1xf32>
    %32 = vector.shape_cast %31 : vector<1x128x1xf32> to vector<128x1xf32>
    %33 = vector.broadcast %32 : vector<128x1xf32> to vector<128x256xf32>
    %34 = arith.addf %30, %33 : vector<128x256xf32>
    %cst_18 = arith.constant 0.00999999977 : f32
    %35 = vector.broadcast %cst_18 : f32 to vector<128x256xf32>
    %36 = arith.mulf %35, %34 : vector<128x256xf32>
    %37 = arith.maximumf %34, %36 : vector<128x256xf32>
    %c5_19 = arith.constant 5 : index
    %c0_20 = arith.constant 0 : index
    %c0_21 = arith.constant 0 : index
    %38 = vector.load %arg8[%c5_19, %c0_20, %c0_21] : memref<6x2x128xf32, #tpu.memory_space<vmem>>, vector<1x2x128xf32>
    %39 = vector.shape_cast %38 : vector<1x2x128xf32> to vector<2x128xf32>
    %cst_22 = arith.constant dense<0.000000e+00> : vector<2x256xf32>
    %40 = tpu.matmul %39, %37, %cst_22 {dimension_numbers = #tpu.dot_dimension_numbers<[1], [0], [0], [1], [0, 0, 1, 1], [], []>} : vector<2x128xf32>, vector<128x256xf32>, vector<2x256xf32> -> vector<2x256xf32>
    %c5_23 = arith.constant 5 : index
    %c0_24 = arith.constant 0 : index
    %c0_25 = arith.constant 0 : index
    %41 = vector.load %arg9[%c5_23, %c0_24, %c0_25] : memref<6x2x1xf32, #tpu.memory_space<vmem>>, vector<1x2x1xf32>
    %42 = vector.shape_cast %41 : vector<1x2x1xf32> to vector<2x1xf32>
    %43 = vector.broadcast %42 : vector<2x1xf32> to vector<2x256xf32>
    %44 = arith.addf %40, %43 : vector<2x256xf32>
    %45 = vector.extract_strided_slice %44 {offsets = [0, 0], sizes = [1, 256], strides = [1, 1]} : vector<2x256xf32> to vector<1x256xf32>
    %46 = math.tanh %45 : vector<1x256xf32>
    %47 = vector.extract_strided_slice %44 {offsets = [1, 0], sizes = [1, 256], strides = [1, 1]} : vector<2x256xf32> to vector<1x256xf32>
    %48 = arith.subf %14, %47 : vector<1x256xf32>
    %cst_26 = arith.constant 0.000000e+00 : f32
    %49 = vector.broadcast %cst_26 : f32 to vector<1x256xf32>
    %50 = arith.subf %49, %46 : vector<1x256xf32>
    %51 = math.exp %50 : vector<1x256xf32>
    %52 = arith.mulf %48, %51 : vector<1x256xf32>
    %53 = arith.subf %15, %46 : vector<1x256xf32>
    %c4 = arith.constant 4 : index
    %c0_27 = arith.constant 0 : index
    %c0_28 = arith.constant 0 : index
    %54 = vector.load %arg4[%c4, %c0_27, %c0_28] : memref<6x128x1xf32, #tpu.memory_space<vmem>>, vector<1x128x1xf32>
    %55 = vector.shape_cast %54 : vector<1x128x1xf32> to vector<128x1xf32>
    %56 = vector.broadcast %55 : vector<128x1xf32> to vector<128x256xf32>
    %57 = vector.broadcast %52 : vector<1x256xf32> to vector<128x256xf32>
    %58 = arith.mulf %56, %57 : vector<128x256xf32>
    %c4_29 = arith.constant 4 : index
    %c0_30 = arith.constant 0 : index
    %c0_31 = arith.constant 0 : index
    %59 = vector.load %arg5[%c4_29, %c0_30, %c0_31] : memref<6x128x1xf32, #tpu.memory_space<vmem>>, vector<1x128x1xf32>
    %60 = vector.shape_cast %59 : vector<1x128x1xf32> to vector<128x1xf32>
    %61 = vector.broadcast %60 : vector<128x1xf32> to vector<128x256xf32>
    %62 = arith.addf %58, %61 : vector<128x256xf32>
    %cst_32 = arith.constant 0.00999999977 : f32
    %63 = vector.broadcast %cst_32 : f32 to vector<128x256xf32>
    %64 = arith.mulf %63, %62 : vector<128x256xf32>
    %65 = arith.maximumf %62, %64 : vector<128x256xf32>
    %c4_33 = arith.constant 4 : index
    %c0_34 = arith.constant 0 : index
    %c0_35 = arith.constant 0 : index
    %66 = vector.load %arg6[%c4_33, %c0_34, %c0_35] : memref<6x128x128xf32, #tpu.memory_space<vmem>>, vector<1x128x128xf32>
    %67 = vector.shape_cast %66 : vector<1x128x128xf32> to vector<128x128xf32>
    %cst_36 = arith.constant dense<0.000000e+00> : vector<128x256xf32>
    %68 = tpu.matmul %67, %65, %cst_36 {dimension_numbers = #tpu.dot_dimension_numbers<[1], [0], [0], [1], [0, 0, 1, 1], [], []>} : vector<128x128xf32>, vector<128x256xf32>, vector<128x256xf32> -> vector<128x256xf32>
    %c4_37 = arith.constant 4 : index
    %c0_38 = arith.constant 0 : index
    %c0_39 = arith.constant 0 : index
    %69 = vector.load %arg7[%c4_37, %c0_38, %c0_39] : memref<6x128x1xf32, #tpu.memory_space<vmem>>, vector<1x128x1xf32>
    %70 = vector.shape_cast %69 : vector<1x128x1xf32> to vector<128x1xf32>
    %71 = vector.broadcast %70 : vector<128x1xf32> to vector<128x256xf32>
    %72 = arith.addf %68, %71 : vector<128x256xf32>
    %cst_40 = arith.constant 0.00999999977 : f32
    %73 = vector.broadcast %cst_40 : f32 to vector<128x256xf32>
    %74 = arith.mulf %73, %72 : vector<128x256xf32>
    %75 = arith.maximumf %72, %74 : vector<128x256xf32>
    %c4_41 = arith.constant 4 : index
    %c0_42 = arith.constant 0 : index
    %c0_43 = arith.constant 0 : index
    %76 = vector.load %arg8[%c4_41, %c0_42, %c0_43] : memref<6x2x128xf32, #tpu.memory_space<vmem>>, vector<1x2x128xf32>
    %77 = vector.shape_cast %76 : vector<1x2x128xf32> to vector<2x128xf32>
    %cst_44 = arith.constant dense<0.000000e+00> : vector<2x256xf32>
    %78 = tpu.matmul %77, %75, %cst_44 {dimension_numbers = #tpu.dot_dimension_numbers<[1], [0], [0], [1], [0, 0, 1, 1], [], []>} : vector<2x128xf32>, vector<128x256xf32>, vector<2x256xf32> -> vector<2x256xf32>
    %c4_45 = arith.constant 4 : index
    %c0_46 = arith.constant 0 : index
    %c0_47 = arith.constant 0 : index
    %79 = vector.load %arg9[%c4_45, %c0_46, %c0_47] : memref<6x2x1xf32, #tpu.memory_space<vmem>>, vector<1x2x1xf32>
    %80 = vector.shape_cast %79 : vector<1x2x1xf32> to vector<2x1xf32>
    %81 = vector.broadcast %80 : vector<2x1xf32> to vector<2x256xf32>
    %82 = arith.addf %78, %81 : vector<2x256xf32>
    %83 = vector.extract_strided_slice %82 {offsets = [0, 0], sizes = [1, 256], strides = [1, 1]} : vector<2x256xf32> to vector<1x256xf32>
    %84 = math.tanh %83 : vector<1x256xf32>
    %85 = vector.extract_strided_slice %82 {offsets = [1, 0], sizes = [1, 256], strides = [1, 1]} : vector<2x256xf32> to vector<1x256xf32>
    %86 = arith.subf %13, %85 : vector<1x256xf32>
    %cst_48 = arith.constant 0.000000e+00 : f32
    %87 = vector.broadcast %cst_48 : f32 to vector<1x256xf32>
    %88 = arith.subf %87, %84 : vector<1x256xf32>
    %89 = math.exp %88 : vector<1x256xf32>
    %90 = arith.mulf %86, %89 : vector<1x256xf32>
    %91 = arith.subf %53, %84 : vector<1x256xf32>
    %c3 = arith.constant 3 : index
    %c0_49 = arith.constant 0 : index
    %c0_50 = arith.constant 0 : index
    %92 = vector.load %arg4[%c3, %c0_49, %c0_50] : memref<6x128x1xf32, #tpu.memory_space<vmem>>, vector<1x128x1xf32>
    %93 = vector.shape_cast %92 : vector<1x128x1xf32> to vector<128x1xf32>
    %94 = vector.broadcast %93 : vector<128x1xf32> to vector<128x256xf32>
    %95 = vector.broadcast %90 : vector<1x256xf32> to vector<128x256xf32>
    %96 = arith.mulf %94, %95 : vector<128x256xf32>
    %c3_51 = arith.constant 3 : index
    %c0_52 = arith.constant 0 : index
    %c0_53 = arith.constant 0 : index
    %97 = vector.load %arg5[%c3_51, %c0_52, %c0_53] : memref<6x128x1xf32, #tpu.memory_space<vmem>>, vector<1x128x1xf32>
    %98 = vector.shape_cast %97 : vector<1x128x1xf32> to vector<128x1xf32>
    %99 = vector.broadcast %98 : vector<128x1xf32> to vector<128x256xf32>
    %100 = arith.addf %96, %99 : vector<128x256xf32>
    %cst_54 = arith.constant 0.00999999977 : f32
    %101 = vector.broadcast %cst_54 : f32 to vector<128x256xf32>
    %102 = arith.mulf %101, %100 : vector<128x256xf32>
    %103 = arith.maximumf %100, %102 : vector<128x256xf32>
    %c3_55 = arith.constant 3 : index
    %c0_56 = arith.constant 0 : index
    %c0_57 = arith.constant 0 : index
    %104 = vector.load %arg6[%c3_55, %c0_56, %c0_57] : memref<6x128x128xf32, #tpu.memory_space<vmem>>, vector<1x128x128xf32>
    %105 = vector.shape_cast %104 : vector<1x128x128xf32> to vector<128x128xf32>
    %cst_58 = arith.constant dense<0.000000e+00> : vector<128x256xf32>
    %106 = tpu.matmul %105, %103, %cst_58 {dimension_numbers = #tpu.dot_dimension_numbers<[1], [0], [0], [1], [0, 0, 1, 1], [], []>} : vector<128x128xf32>, vector<128x256xf32>, vector<128x256xf32> -> vector<128x256xf32>
    %c3_59 = arith.constant 3 : index
    %c0_60 = arith.constant 0 : index
    %c0_61 = arith.constant 0 : index
    %107 = vector.load %arg7[%c3_59, %c0_60, %c0_61] : memref<6x128x1xf32, #tpu.memory_space<vmem>>, vector<1x128x1xf32>
    %108 = vector.shape_cast %107 : vector<1x128x1xf32> to vector<128x1xf32>
    %109 = vector.broadcast %108 : vector<128x1xf32> to vector<128x256xf32>
    %110 = arith.addf %106, %109 : vector<128x256xf32>
    %cst_62 = arith.constant 0.00999999977 : f32
    %111 = vector.broadcast %cst_62 : f32 to vector<128x256xf32>
    %112 = arith.mulf %111, %110 : vector<128x256xf32>
    %113 = arith.maximumf %110, %112 : vector<128x256xf32>
    %c3_63 = arith.constant 3 : index
    %c0_64 = arith.constant 0 : index
    %c0_65 = arith.constant 0 : index
    %114 = vector.load %arg8[%c3_63, %c0_64, %c0_65] : memref<6x2x128xf32, #tpu.memory_space<vmem>>, vector<1x2x128xf32>
    %115 = vector.shape_cast %114 : vector<1x2x128xf32> to vector<2x128xf32>
    %cst_66 = arith.constant dense<0.000000e+00> : vector<2x256xf32>
    %116 = tpu.matmul %115, %113, %cst_66 {dimension_numbers = #tpu.dot_dimension_numbers<[1], [0], [0], [1], [0, 0, 1, 1], [], []>} : vector<2x128xf32>, vector<128x256xf32>, vector<2x256xf32> -> vector<2x256xf32>
    %c3_67 = arith.constant 3 : index
    %c0_68 = arith.constant 0 : index
    %c0_69 = arith.constant 0 : index
    %117 = vector.load %arg9[%c3_67, %c0_68, %c0_69] : memref<6x2x1xf32, #tpu.memory_space<vmem>>, vector<1x2x1xf32>
    %118 = vector.shape_cast %117 : vector<1x2x1xf32> to vector<2x1xf32>
    %119 = vector.broadcast %118 : vector<2x1xf32> to vector<2x256xf32>
    %120 = arith.addf %116, %119 : vector<2x256xf32>
    %121 = vector.extract_strided_slice %120 {offsets = [0, 0], sizes = [1, 256], strides = [1, 1]} : vector<2x256xf32> to vector<1x256xf32>
    %122 = math.tanh %121 : vector<1x256xf32>
    %123 = vector.extract_strided_slice %120 {offsets = [1, 0], sizes = [1, 256], strides = [1, 1]} : vector<2x256xf32> to vector<1x256xf32>
    %124 = arith.subf %52, %123 : vector<1x256xf32>
    %cst_70 = arith.constant 0.000000e+00 : f32
    %125 = vector.broadcast %cst_70 : f32 to vector<1x256xf32>
    %126 = arith.subf %125, %122 : vector<1x256xf32>
    %127 = math.exp %126 : vector<1x256xf32>
    %128 = arith.mulf %124, %127 : vector<1x256xf32>
    %129 = arith.subf %91, %122 : vector<1x256xf32>
    %c2 = arith.constant 2 : index
    %c0_71 = arith.constant 0 : index
    %c0_72 = arith.constant 0 : index
    %130 = vector.load %arg4[%c2, %c0_71, %c0_72] : memref<6x128x1xf32, #tpu.memory_space<vmem>>, vector<1x128x1xf32>
    %131 = vector.shape_cast %130 : vector<1x128x1xf32> to vector<128x1xf32>
    %132 = vector.broadcast %131 : vector<128x1xf32> to vector<128x256xf32>
    %133 = vector.broadcast %128 : vector<1x256xf32> to vector<128x256xf32>
    %134 = arith.mulf %132, %133 : vector<128x256xf32>
    %c2_73 = arith.constant 2 : index
    %c0_74 = arith.constant 0 : index
    %c0_75 = arith.constant 0 : index
    %135 = vector.load %arg5[%c2_73, %c0_74, %c0_75] : memref<6x128x1xf32, #tpu.memory_space<vmem>>, vector<1x128x1xf32>
    %136 = vector.shape_cast %135 : vector<1x128x1xf32> to vector<128x1xf32>
    %137 = vector.broadcast %136 : vector<128x1xf32> to vector<128x256xf32>
    %138 = arith.addf %134, %137 : vector<128x256xf32>
    %cst_76 = arith.constant 0.00999999977 : f32
    %139 = vector.broadcast %cst_76 : f32 to vector<128x256xf32>
    %140 = arith.mulf %139, %138 : vector<128x256xf32>
    %141 = arith.maximumf %138, %140 : vector<128x256xf32>
    %c2_77 = arith.constant 2 : index
    %c0_78 = arith.constant 0 : index
    %c0_79 = arith.constant 0 : index
    %142 = vector.load %arg6[%c2_77, %c0_78, %c0_79] : memref<6x128x128xf32, #tpu.memory_space<vmem>>, vector<1x128x128xf32>
    %143 = vector.shape_cast %142 : vector<1x128x128xf32> to vector<128x128xf32>
    %cst_80 = arith.constant dense<0.000000e+00> : vector<128x256xf32>
    %144 = tpu.matmul %143, %141, %cst_80 {dimension_numbers = #tpu.dot_dimension_numbers<[1], [0], [0], [1], [0, 0, 1, 1], [], []>} : vector<128x128xf32>, vector<128x256xf32>, vector<128x256xf32> -> vector<128x256xf32>
    %c2_81 = arith.constant 2 : index
    %c0_82 = arith.constant 0 : index
    %c0_83 = arith.constant 0 : index
    %145 = vector.load %arg7[%c2_81, %c0_82, %c0_83] : memref<6x128x1xf32, #tpu.memory_space<vmem>>, vector<1x128x1xf32>
    %146 = vector.shape_cast %145 : vector<1x128x1xf32> to vector<128x1xf32>
    %147 = vector.broadcast %146 : vector<128x1xf32> to vector<128x256xf32>
    %148 = arith.addf %144, %147 : vector<128x256xf32>
    %cst_84 = arith.constant 0.00999999977 : f32
    %149 = vector.broadcast %cst_84 : f32 to vector<128x256xf32>
    %150 = arith.mulf %149, %148 : vector<128x256xf32>
    %151 = arith.maximumf %148, %150 : vector<128x256xf32>
    %c2_85 = arith.constant 2 : index
    %c0_86 = arith.constant 0 : index
    %c0_87 = arith.constant 0 : index
    %152 = vector.load %arg8[%c2_85, %c0_86, %c0_87] : memref<6x2x128xf32, #tpu.memory_space<vmem>>, vector<1x2x128xf32>
    %153 = vector.shape_cast %152 : vector<1x2x128xf32> to vector<2x128xf32>
    %cst_88 = arith.constant dense<0.000000e+00> : vector<2x256xf32>
    %154 = tpu.matmul %153, %151, %cst_88 {dimension_numbers = #tpu.dot_dimension_numbers<[1], [0], [0], [1], [0, 0, 1, 1], [], []>} : vector<2x128xf32>, vector<128x256xf32>, vector<2x256xf32> -> vector<2x256xf32>
    %c2_89 = arith.constant 2 : index
    %c0_90 = arith.constant 0 : index
    %c0_91 = arith.constant 0 : index
    %155 = vector.load %arg9[%c2_89, %c0_90, %c0_91] : memref<6x2x1xf32, #tpu.memory_space<vmem>>, vector<1x2x1xf32>
    %156 = vector.shape_cast %155 : vector<1x2x1xf32> to vector<2x1xf32>
    %157 = vector.broadcast %156 : vector<2x1xf32> to vector<2x256xf32>
    %158 = arith.addf %154, %157 : vector<2x256xf32>
    %159 = vector.extract_strided_slice %158 {offsets = [0, 0], sizes = [1, 256], strides = [1, 1]} : vector<2x256xf32> to vector<1x256xf32>
    %160 = math.tanh %159 : vector<1x256xf32>
    %161 = vector.extract_strided_slice %158 {offsets = [1, 0], sizes = [1, 256], strides = [1, 1]} : vector<2x256xf32> to vector<1x256xf32>
    %162 = arith.subf %90, %161 : vector<1x256xf32>
    %cst_92 = arith.constant 0.000000e+00 : f32
    %163 = vector.broadcast %cst_92 : f32 to vector<1x256xf32>
    %164 = arith.subf %163, %160 : vector<1x256xf32>
    %165 = math.exp %164 : vector<1x256xf32>
    %166 = arith.mulf %162, %165 : vector<1x256xf32>
    %167 = arith.subf %129, %160 : vector<1x256xf32>
    %c1 = arith.constant 1 : index
    %c0_93 = arith.constant 0 : index
    %c0_94 = arith.constant 0 : index
    %168 = vector.load %arg4[%c1, %c0_93, %c0_94] : memref<6x128x1xf32, #tpu.memory_space<vmem>>, vector<1x128x1xf32>
    %169 = vector.shape_cast %168 : vector<1x128x1xf32> to vector<128x1xf32>
    %170 = vector.broadcast %169 : vector<128x1xf32> to vector<128x256xf32>
    %171 = vector.broadcast %166 : vector<1x256xf32> to vector<128x256xf32>
    %172 = arith.mulf %170, %171 : vector<128x256xf32>
    %c1_95 = arith.constant 1 : index
    %c0_96 = arith.constant 0 : index
    %c0_97 = arith.constant 0 : index
    %173 = vector.load %arg5[%c1_95, %c0_96, %c0_97] : memref<6x128x1xf32, #tpu.memory_space<vmem>>, vector<1x128x1xf32>
    %174 = vector.shape_cast %173 : vector<1x128x1xf32> to vector<128x1xf32>
    %175 = vector.broadcast %174 : vector<128x1xf32> to vector<128x256xf32>
    %176 = arith.addf %172, %175 : vector<128x256xf32>
    %cst_98 = arith.constant 0.00999999977 : f32
    %177 = vector.broadcast %cst_98 : f32 to vector<128x256xf32>
    %178 = arith.mulf %177, %176 : vector<128x256xf32>
    %179 = arith.maximumf %176, %178 : vector<128x256xf32>
    %c1_99 = arith.constant 1 : index
    %c0_100 = arith.constant 0 : index
    %c0_101 = arith.constant 0 : index
    %180 = vector.load %arg6[%c1_99, %c0_100, %c0_101] : memref<6x128x128xf32, #tpu.memory_space<vmem>>, vector<1x128x128xf32>
    %181 = vector.shape_cast %180 : vector<1x128x128xf32> to vector<128x128xf32>
    %cst_102 = arith.constant dense<0.000000e+00> : vector<128x256xf32>
    %182 = tpu.matmul %181, %179, %cst_102 {dimension_numbers = #tpu.dot_dimension_numbers<[1], [0], [0], [1], [0, 0, 1, 1], [], []>} : vector<128x128xf32>, vector<128x256xf32>, vector<128x256xf32> -> vector<128x256xf32>
    %c1_103 = arith.constant 1 : index
    %c0_104 = arith.constant 0 : index
    %c0_105 = arith.constant 0 : index
    %183 = vector.load %arg7[%c1_103, %c0_104, %c0_105] : memref<6x128x1xf32, #tpu.memory_space<vmem>>, vector<1x128x1xf32>
    %184 = vector.shape_cast %183 : vector<1x128x1xf32> to vector<128x1xf32>
    %185 = vector.broadcast %184 : vector<128x1xf32> to vector<128x256xf32>
    %186 = arith.addf %182, %185 : vector<128x256xf32>
    %cst_106 = arith.constant 0.00999999977 : f32
    %187 = vector.broadcast %cst_106 : f32 to vector<128x256xf32>
    %188 = arith.mulf %187, %186 : vector<128x256xf32>
    %189 = arith.maximumf %186, %188 : vector<128x256xf32>
    %c1_107 = arith.constant 1 : index
    %c0_108 = arith.constant 0 : index
    %c0_109 = arith.constant 0 : index
    %190 = vector.load %arg8[%c1_107, %c0_108, %c0_109] : memref<6x2x128xf32, #tpu.memory_space<vmem>>, vector<1x2x128xf32>
    %191 = vector.shape_cast %190 : vector<1x2x128xf32> to vector<2x128xf32>
    %cst_110 = arith.constant dense<0.000000e+00> : vector<2x256xf32>
    %192 = tpu.matmul %191, %189, %cst_110 {dimension_numbers = #tpu.dot_dimension_numbers<[1], [0], [0], [1], [0, 0, 1, 1], [], []>} : vector<2x128xf32>, vector<128x256xf32>, vector<2x256xf32> -> vector<2x256xf32>
    %c1_111 = arith.constant 1 : index
    %c0_112 = arith.constant 0 : index
    %c0_113 = arith.constant 0 : index
    %193 = vector.load %arg9[%c1_111, %c0_112, %c0_113] : memref<6x2x1xf32, #tpu.memory_space<vmem>>, vector<1x2x1xf32>
    %194 = vector.shape_cast %193 : vector<1x2x1xf32> to vector<2x1xf32>
    %195 = vector.broadcast %194 : vector<2x1xf32> to vector<2x256xf32>
    %196 = arith.addf %192, %195 : vector<2x256xf32>
    %197 = vector.extract_strided_slice %196 {offsets = [0, 0], sizes = [1, 256], strides = [1, 1]} : vector<2x256xf32> to vector<1x256xf32>
    %198 = math.tanh %197 : vector<1x256xf32>
    %199 = vector.extract_strided_slice %196 {offsets = [1, 0], sizes = [1, 256], strides = [1, 1]} : vector<2x256xf32> to vector<1x256xf32>
    %200 = arith.subf %128, %199 : vector<1x256xf32>
    %cst_114 = arith.constant 0.000000e+00 : f32
    %201 = vector.broadcast %cst_114 : f32 to vector<1x256xf32>
    %202 = arith.subf %201, %198 : vector<1x256xf32>
    %203 = math.exp %202 : vector<1x256xf32>
    %204 = arith.mulf %200, %203 : vector<1x256xf32>
    %205 = arith.subf %167, %198 : vector<1x256xf32>
    %c0_115 = arith.constant 0 : index
    %c0_116 = arith.constant 0 : index
    %c0_117 = arith.constant 0 : index
    %206 = vector.load %arg4[%c0_115, %c0_116, %c0_117] : memref<6x128x1xf32, #tpu.memory_space<vmem>>, vector<1x128x1xf32>
    %207 = vector.shape_cast %206 : vector<1x128x1xf32> to vector<128x1xf32>
    %208 = vector.broadcast %207 : vector<128x1xf32> to vector<128x256xf32>
    %209 = vector.broadcast %204 : vector<1x256xf32> to vector<128x256xf32>
    %210 = arith.mulf %208, %209 : vector<128x256xf32>
    %c0_118 = arith.constant 0 : index
    %c0_119 = arith.constant 0 : index
    %c0_120 = arith.constant 0 : index
    %211 = vector.load %arg5[%c0_118, %c0_119, %c0_120] : memref<6x128x1xf32, #tpu.memory_space<vmem>>, vector<1x128x1xf32>
    %212 = vector.shape_cast %211 : vector<1x128x1xf32> to vector<128x1xf32>
    %213 = vector.broadcast %212 : vector<128x1xf32> to vector<128x256xf32>
    %214 = arith.addf %210, %213 : vector<128x256xf32>
    %cst_121 = arith.constant 0.00999999977 : f32
    %215 = vector.broadcast %cst_121 : f32 to vector<128x256xf32>
    %216 = arith.mulf %215, %214 : vector<128x256xf32>
    %217 = arith.maximumf %214, %216 : vector<128x256xf32>
    %c0_122 = arith.constant 0 : index
    %c0_123 = arith.constant 0 : index
    %c0_124 = arith.constant 0 : index
    %218 = vector.load %arg6[%c0_122, %c0_123, %c0_124] : memref<6x128x128xf32, #tpu.memory_space<vmem>>, vector<1x128x128xf32>
    %219 = vector.shape_cast %218 : vector<1x128x128xf32> to vector<128x128xf32>
    %cst_125 = arith.constant dense<0.000000e+00> : vector<128x256xf32>
    %220 = tpu.matmul %219, %217, %cst_125 {dimension_numbers = #tpu.dot_dimension_numbers<[1], [0], [0], [1], [0, 0, 1, 1], [], []>} : vector<128x128xf32>, vector<128x256xf32>, vector<128x256xf32> -> vector<128x256xf32>
    %c0_126 = arith.constant 0 : index
    %c0_127 = arith.constant 0 : index
    %c0_128 = arith.constant 0 : index
    %221 = vector.load %arg7[%c0_126, %c0_127, %c0_128] : memref<6x128x1xf32, #tpu.memory_space<vmem>>, vector<1x128x1xf32>
    %222 = vector.shape_cast %221 : vector<1x128x1xf32> to vector<128x1xf32>
    %223 = vector.broadcast %222 : vector<128x1xf32> to vector<128x256xf32>
    %224 = arith.addf %220, %223 : vector<128x256xf32>
    %cst_129 = arith.constant 0.00999999977 : f32
    %225 = vector.broadcast %cst_129 : f32 to vector<128x256xf32>
    %226 = arith.mulf %225, %224 : vector<128x256xf32>
    %227 = arith.maximumf %224, %226 : vector<128x256xf32>
    %c0_130 = arith.constant 0 : index
    %c0_131 = arith.constant 0 : index
    %c0_132 = arith.constant 0 : index
    %228 = vector.load %arg8[%c0_130, %c0_131, %c0_132] : memref<6x2x128xf32, #tpu.memory_space<vmem>>, vector<1x2x128xf32>
    %229 = vector.shape_cast %228 : vector<1x2x128xf32> to vector<2x128xf32>
    %cst_133 = arith.constant dense<0.000000e+00> : vector<2x256xf32>
    %230 = tpu.matmul %229, %227, %cst_133 {dimension_numbers = #tpu.dot_dimension_numbers<[1], [0], [0], [1], [0, 0, 1, 1], [], []>} : vector<2x128xf32>, vector<128x256xf32>, vector<2x256xf32> -> vector<2x256xf32>
    %c0_134 = arith.constant 0 : index
    %c0_135 = arith.constant 0 : index
    %c0_136 = arith.constant 0 : index
    %231 = vector.load %arg9[%c0_134, %c0_135, %c0_136] : memref<6x2x1xf32, #tpu.memory_space<vmem>>, vector<1x2x1xf32>
    %232 = vector.shape_cast %231 : vector<1x2x1xf32> to vector<2x1xf32>
    %233 = vector.broadcast %232 : vector<2x1xf32> to vector<2x256xf32>
    %234 = arith.addf %230, %233 : vector<2x256xf32>
    %235 = vector.extract_strided_slice %234 {offsets = [0, 0], sizes = [1, 256], strides = [1, 1]} : vector<2x256xf32> to vector<1x256xf32>
    %236 = math.tanh %235 : vector<1x256xf32>
    %237 = vector.extract_strided_slice %234 {offsets = [1, 0], sizes = [1, 256], strides = [1, 1]} : vector<2x256xf32> to vector<1x256xf32>
    %238 = arith.subf %166, %237 : vector<1x256xf32>
    %cst_137 = arith.constant 0.000000e+00 : f32
    %239 = vector.broadcast %cst_137 : f32 to vector<1x256xf32>
    %240 = arith.subf %239, %236 : vector<1x256xf32>
    %241 = math.exp %240 : vector<1x256xf32>
    %242 = arith.mulf %238, %241 : vector<1x256xf32>
    %243 = arith.subf %205, %236 : vector<1x256xf32>
    %244 = arith.mulf %242, %242 : vector<1x256xf32>
    %245 = arith.mulf %204, %204 : vector<1x256xf32>
    %246 = arith.addf %244, %245 : vector<1x256xf32>
    %cst_138 = arith.constant -5.000000e-01 : f32
    %247 = vector.broadcast %cst_138 : f32 to vector<1x256xf32>
    %248 = arith.mulf %247, %246 : vector<1x256xf32>
    %cst_139 = arith.constant 1.83787704 : f32
    %249 = vector.broadcast %cst_139 : f32 to vector<1x256xf32>
    %250 = arith.subf %248, %249 : vector<1x256xf32>
    %251 = arith.addf %250, %243 : vector<1x256xf32>
    %252 = math.log %8 : vector<2x256xf32>
    %253 = vector.extract_strided_slice %252 {offsets = [0, 0], sizes = [1, 256], strides = [1, 1]} : vector<2x256xf32> to vector<1x256xf32>
    %254 = vector.extract_strided_slice %252 {offsets = [1, 0], sizes = [1, 256], strides = [1, 1]} : vector<2x256xf32> to vector<1x256xf32>
    %255 = arith.addf %253, %254 : vector<1x256xf32>
    %256 = vector.extract_strided_slice %12 {offsets = [0, 0], sizes = [1, 256], strides = [1, 1]} : vector<2x256xf32> to vector<1x256xf32>
    %257 = math.absf %256 : vector<1x256xf32>
    %258 = vector.extract_strided_slice %12 {offsets = [1, 0], sizes = [1, 256], strides = [1, 1]} : vector<2x256xf32> to vector<1x256xf32>
    %259 = math.absf %258 : vector<1x256xf32>
    %260 = arith.addf %257, %259 : vector<1x256xf32>
    %cst_140 = arith.constant 2.000000e+00 : f32
    %261 = vector.broadcast %cst_140 : f32 to vector<1x256xf32>
    %262 = arith.mulf %261, %255 : vector<1x256xf32>
    %cst_141 = arith.constant 2.000000e+00 : f32
    %263 = vector.broadcast %cst_141 : f32 to vector<1x256xf32>
    %264 = arith.mulf %263, %251 : vector<1x256xf32>
    %265 = arith.subf %262, %264 : vector<1x256xf32>
    %cst_142 = arith.constant 1.38629436 : f32
    %266 = vector.broadcast %cst_142 : f32 to vector<1x256xf32>
    %267 = arith.addf %265, %266 : vector<1x256xf32>
    %268 = arith.addf %267, %260 : vector<1x256xf32>
    %c256_i32 = arith.constant 256 : i32
    %269 = arith.muli %arg0, %c256_i32 : i32
    %270 = tpu.iota {dimensions = array<i32: 1>} : vector<1x256xi32>
    %271 = vector.broadcast %269 : i32 to vector<1x256xi32>
    %272 = arith.addi %271, %270 : vector<1x256xi32>
    %c0_143 = arith.constant 0 : index
    %273 = memref.load %arg1[%c0_143] : memref<1xi32, #tpu.memory_space<smem>>
    %274 = vector.broadcast %273 : i32 to vector<1x256xi32>
    %275 = arith.cmpi slt, %272, %274 : vector<1x256xi32>
    %cst_144 = arith.constant 0.000000e+00 : f32
    %276 = vector.broadcast %cst_144 : f32 to vector<1x256xf32>
    %277 = arith.select %275, %268, %276 : vector<1x256xi1>, vector<1x256xf32>
    %278 = vector.shape_cast %277 : vector<1x256xf32> to vector<1x1x256xf32>
    %cst_145 = arith.constant dense<0.000000e+00> : vector<1xf32>
    %279 = vector.multi_reduction <add>, %278, %cst_145 [1, 2] : vector<1x1x256xf32> to vector<1xf32>
    %280 = vector.shape_cast %279 : vector<1xf32> to vector<1x1x1xf32>
    %281 = vector.extract %280[0, 0, 0] : f32 from vector<1x1x1xf32>
    %282 = tpu.iota {dimensions = array<i32: 0>} : vector<8x128xi32>
    %283 = tpu.iota {dimensions = array<i32: 1>} : vector<8x128xi32>
    %c0_i32 = arith.constant 0 : i32
    %284 = vector.broadcast %c0_i32 : i32 to vector<8x128xi32>
    %285 = arith.cmpi eq, %282, %284 : vector<8x128xi32>
    %c0_i32_146 = arith.constant 0 : i32
    %286 = vector.broadcast %c0_i32_146 : i32 to vector<8x128xi32>
    %287 = arith.cmpi eq, %283, %286 : vector<8x128xi32>
    %288 = arith.andi %285, %287 : vector<8x128xi1>
    %cst_147 = arith.constant 0.000000e+00 : f32
    %289 = vector.broadcast %281 : f32 to vector<8x128xf32>
    %290 = vector.broadcast %cst_147 : f32 to vector<8x128xf32>
    %291 = arith.select %288, %289, %290 : vector<8x128xi1>, vector<8x128xf32>
    %c0_148 = arith.constant 0 : index
    %c0_149 = arith.constant 0 : index
    %292 = vector.load %arg10[%c0_148, %c0_149] : memref<8x128xf32, #tpu.memory_space<vmem>>, vector<8x128xf32>
    tpu.vector_store %arg10[%c0_148, %c0_149], %291 {strides = array<i32>} : memref<8x128xf32, #tpu.memory_space<vmem>>, vector<8x128xf32>,
    return
  }
  func.func @transform_0(%arg0: i32, %arg1: memref<1xi32, #tpu.memory_space<smem>>) -> (i32, i32) {
    %c0_i32 = arith.constant 0 : i32
    %c0_i32_0 = arith.constant 0 : i32
    return %c0_i32, %arg0 : i32, i32
  }
  func.func @transform_1(%arg0: i32, %arg1: memref<1xi32, #tpu.memory_space<smem>>) -> (i32, i32) {
    %c0_i32 = arith.constant 0 : i32
    %c0_i32_0 = arith.constant 0 : i32
    return %c0_i32, %arg0 : i32, i32
  }
  func.func @transform_2(%arg0: i32, %arg1: memref<1xi32, #tpu.memory_space<smem>>) -> (i32, i32, i32) {
    %c0_i32 = arith.constant 0 : i32
    %c0_i32_0 = arith.constant 0 : i32
    %c0_i32_1 = arith.constant 0 : i32
    %c0_i32_2 = arith.constant 0 : i32
    return %c0_i32, %c0_i32_0, %c0_i32_1 : i32, i32, i32
  }
  func.func @transform_3(%arg0: i32, %arg1: memref<1xi32, #tpu.memory_space<smem>>) -> (i32, i32, i32) {
    %c0_i32 = arith.constant 0 : i32
    %c0_i32_0 = arith.constant 0 : i32
    %c0_i32_1 = arith.constant 0 : i32
    %c0_i32_2 = arith.constant 0 : i32
    return %c0_i32, %c0_i32_0, %c0_i32_1 : i32, i32, i32
  }
  func.func @transform_4(%arg0: i32, %arg1: memref<1xi32, #tpu.memory_space<smem>>) -> (i32, i32, i32) {
    %c0_i32 = arith.constant 0 : i32
    %c0_i32_0 = arith.constant 0 : i32
    %c0_i32_1 = arith.constant 0 : i32
    %c0_i32_2 = arith.constant 0 : i32
    return %c0_i32, %c0_i32_0, %c0_i32_1 : i32, i32, i32
  }
  func.func @transform_5(%arg0: i32, %arg1: memref<1xi32, #tpu.memory_space<smem>>) -> (i32, i32, i32) {
    %c0_i32 = arith.constant 0 : i32
    %c0_i32_0 = arith.constant 0 : i32
    %c0_i32_1 = arith.constant 0 : i32
    %c0_i32_2 = arith.constant 0 : i32
    return %c0_i32, %c0_i32_0, %c0_i32_1 : i32, i32, i32
  }
  func.func @transform_6(%arg0: i32, %arg1: memref<1xi32, #tpu.memory_space<smem>>) -> (i32, i32, i32) {
    %c0_i32 = arith.constant 0 : i32
    %c0_i32_0 = arith.constant 0 : i32
    %c0_i32_1 = arith.constant 0 : i32
    %c0_i32_2 = arith.constant 0 : i32
    return %c0_i32, %c0_i32_0, %c0_i32_1 : i32, i32, i32
  }
  func.func @transform_7(%arg0: i32, %arg1: memref<1xi32, #tpu.memory_space<smem>>) -> (i32, i32, i32) {
    %c0_i32 = arith.constant 0 : i32
    %c0_i32_0 = arith.constant 0 : i32
    %c0_i32_1 = arith.constant 0 : i32
    %c0_i32_2 = arith.constant 0 : i32
    return %c0_i32, %c0_i32_0, %c0_i32_1 : i32, i32, i32
  }
  func.func @transform_8(%arg0: i32, %arg1: memref<1xi32, #tpu.memory_space<smem>>) -> (i32, i32) {
    %c0_i32 = arith.constant 0 : i32
    %c0_i32_0 = arith.constant 0 : i32
    return %c0_i32, %arg0 : i32, i32
  }
}

</mosaic_0001>

<bundles_post_ra>
// kernel: tpu_custom_call.1
= control target key start
LH: loop header
LB: loop body
LE: loop exit
PB: predicated region body
PF: predicated region fallthrough
CT: control target
= control target key end

     0   :  { %v5646_v2 = vmov 0   ;;  %s8172_s0 = inlined_call_operand.<no memory space> [shape: s32[1], index: 0, kind: input, shape index: {}]   ;;  %s8173_s1 = inlined_call_operand.vmem [shape: f32[4,256], index: 1, kind: input, shape index: {}]   ;;  %s8174_s2 = inlined_call_operand.vmem [shape: f32[2,256], index: 2, kind: input, shape index: {}]   ;;  %s8175_s3 = inlined_call_operand.vmem [shape: f32[6,128,1], index: 3, kind: input, shape index: {}]   ;;  %s8176_s4 = inlined_call_operand.vmem [shape: f32[6,128,1], index: 4, kind: input, shape index: {}]   ;;  %s8177_s5 = inlined_call_operand.vmem [shape: f32[6,128,128], index: 5, kind: input, shape index: {}]   ;;  %s8178_s6 = inlined_call_operand.vmem [shape: f32[6,128,1], index: 6, kind: input, shape index: {}]   ;;  %s8179_s7 = inlined_call_operand.vmem [shape: f32[6,2,128], index: 7, kind: input, shape index: {}]   ;;  %s8180_s8 = inlined_call_operand.vmem [shape: f32[6,2,1], index: 8, kind: input, shape index: {}]   ;;  %s8181_s9 = inlined_call_operand.hbm [shape: f32[8,128], index: 9, kind: output, shape index: {}]  }
   0x1   :  { %v4854_v0 = vld [vmem:[%s8176_s4 + $0x280] sm:$0xff]  ;;  %5565 = vset.pattern.permute.xlu1 %v5646_v2  ;;  %5564 = vset.pattern.permute.xlu0 %v5646_v2  ;;  %v4855_v3 = vld [vmem:[%s8176_s4 + $0x288] sm:$0xff]  ;;  %v4841_v5 = vld [vmem:[%s8175_s3 + $0x298] sm:$0xff] }
   0x2   :  { %v4838_v1 = vld [vmem:[%s8175_s3 + $0x280] sm:$0xff]  ;;  %224 = vperm.xlu1 %5565, %v4854_v0   ;;  %v4839_v4 = vld [vmem:[%s8175_s3 + $0x288] sm:$0xff]  ;;  %v4840_v6 = vld [vmem:[%s8175_s3 + $0x290] sm:$0xff] }
   0x3   :  { %76 = vperm.xlu0 %5564, %v4838_v1   ;;  %v4857_v7 = vld [vmem:[%s8176_s4 + $0x298] sm:$0xff]  ;;  %v4856_v8 = vld [vmem:[%s8176_s4 + $0x290] sm:$0xff]  ;;  %v4843_v9 = vld [vmem:[%s8175_s3 + $0x2a8] sm:$0xff] }
   0x4   :  { %v4842_v10 = vld [vmem:[%s8175_s3 + $0x2a0] sm:$0xff]  ;;  %v4859_v11 = vld [vmem:[%s8176_s4 + $0x2a8] sm:$0xff]  ;;  %v4845_v13 = vld [vmem:[%s8175_s3 + $0x2b8] sm:$0xff] }
   0x5   :  { %v4858_v12 = vld [vmem:[%s8176_s4 + $0x2a0] sm:$0xff]  ;;  %v4844_v14 = vld [vmem:[%s8175_s3 + $0x2b0] sm:$0xff] }
   0x6   :  { %229 = vperm.xlu1 %5565, %v4855_v3  }
   0x7   :  { %81 = vperm.xlu0 %5564, %v4839_v4  }
   0xa   :  { %91 = vperm.xlu1 %5565, %v4841_v5  }
   0xb   :  { %86 = vperm.xlu0 %5564, %v4840_v6  }
   0xe   :  { %239 = vperm.xlu1 %5565, %v4857_v7  }
   0xf   :  { %234 = vperm.xlu0 %5564, %v4856_v8  }
  0x12   :  { %101 = vperm.xlu1 %5565, %v4843_v9  }
  0x13   :  { %96 = vperm.xlu0 %5564, %v4842_v10  }
  0x16   :  { %249 = vperm.xlu1 %5565, %v4859_v11  }
  0x17   :  { %244 = vperm.xlu0 %5564, %v4858_v12  }
  0x1a   :  { %111 = vperm.xlu1 %5565, %v4845_v13  }
  0x1b   :  { %106 = vperm.xlu0 %5564, %v4844_v14  }
  0x1c   :  { %15 = vsyncpa [#allocation5], 0  ;;  %v4861_v15 = vld [vmem:[%s8176_s4 + $0x2b8] sm:$0xff]  ;;  %v4860_v16 = vld [vmem:[%s8176_s4 + $0x2b0] sm:$0xff]  ;;  %v8183_v41 = vmov 0.0   ;;  %v8182_v1 = vlaneseq  ;;  %vm4800_vm2 = vcmask 1040384  }
  0x1d   :  { %v4847_v17 = vld [vmem:[%s8175_s3 + $0x2c8] sm:$0xff]  ;;  %v4846_v18 = vld [vmem:[%s8175_s3 + $0x2c0] sm:$0xff]  ;;  %v4849_v21 = vld [vmem:[%s8175_s3 + $0x2d8] sm:$0xff]  ;;  %576 = vmatprep.mubr.f32.mxu0 %v8183_v41  ;;  %810 = vmatprep.mubr.f32.mxu1 %v8183_v41 }
  0x1e   :  { %259 = vperm.xlu1 %5565, %v4861_v15   ;;  %v4863_v19 = vld [vmem:[%s8176_s4 + $0x2c8] sm:$0xff]  ;;  %v4862_v20 = vld [vmem:[%s8176_s4 + $0x2c0] sm:$0xff]  ;;  %v4848_v22 = vld [vmem:[%s8175_s3 + $0x2d0] sm:$0xff]  ;;  %v5888_v5 = vshrl.u32 %v8182_v1, 7 }
  0x1f   :  { %254 = vperm.xlu0 %5564, %v4860_v16   ;;  %v4865_v23 = vld [vmem:[%s8176_s4 + $0x2d8] sm:$0xff]  ;;  %v4864_v24 = vld [vmem:[%s8176_s4 + $0x2d0] sm:$0xff]  ;;  %v4851_v25 = vld [vmem:[%s8175_s3 + $0x2e8] sm:$0xff] }
  0x20   :  { %v4850_v26 = vld [vmem:[%s8175_s3 + $0x2e0] sm:$0xff]  ;;  %v4867_v27 = vld [vmem:[%s8176_s4 + $0x2e8] sm:$0xff]  ;;  %v4853_v29 = vld [vmem:[%s8175_s3 + $0x2f8] sm:$0xff]  ;;  %8311 = vst [vmem:[#allocation8_spill] sm:$0xff] %v5888_v5  ;;  %v5898_v10 = vsub.s32 0, %v5888_v5  ;;  %v5901_v11 = vsub.s32 4, %v5888_v5 }
  0x21   :  { %v4866_v28 = vld [vmem:[%s8176_s4 + $0x2e0] sm:$0xff]  ;;  %v4852_v30 = vld [vmem:[%s8175_s3 + $0x2f0] sm:$0xff]  ;;  %v4869_v31 = vld [vmem:[%s8176_s4 + $0x2f8] sm:$0xff] }
  0x22   :  { %121 = vperm.xlu1 %5565, %v4847_v17   ;;  %v4868_v32 = vld [vmem:[%s8176_s4 + $0x2f0] sm:$0xff]  ;;  %v5798_v33 = vld [vmem:[%s8173_s1] sm:$0xff]  ;;  %v4887_v34 = vld [vmem:[%s8178_s6 + $0x288] sm:$0xff]  ;;  %8312 = vst [vmem:[#allocation9_spill] sm:$0xff] %v5898_v10 }
  0x23   :  { %116 = vperm.xlu0 %5564, %v4846_v18   ;;  %v4886_v35 = vld [vmem:[%s8178_s6 + $0x280] sm:$0xff]  ;;  %v4835_v36 = vmul.f32 -1.442695, %v5798_v33  ;;  %v4889_v37 = vld [vmem:[%s8178_s6 + $0x298] sm:$0xff]  ;;  %v4888_v38 = vld [vmem:[%s8178_s6 + $0x290] sm:$0xff]  ;;  %8313 = vst [vmem:[#allocation10_spill] sm:$0xff] %v5901_v11 }
  0x24   :  { %v4891_v39 = vld [vmem:[%s8178_s6 + $0x2a8] sm:$0xff]  ;;  %v4890_v40 = vld [vmem:[%s8178_s6 + $0x2a0] sm:$0xff]  ;;  %v4893_v42 = vld [vmem:[%s8178_s6 + $0x2b8] sm:$0xff] }
  0x25   :  { %5566 = vpow2.f32 %v4835_v36  ;;  %v4892_v43 = vld [vmem:[%s8178_s6 + $0x2b0] sm:$0xff]  ;;  %v4895_v45 = vld [vmem:[%s8178_s6 + $0x2c8] sm:$0xff]  ;;  %v4894_v46 = vld [vmem:[%s8178_s6 + $0x2c0] sm:$0xff] }
  0x26   :  { %269 = vperm.xlu1 %5565, %v4863_v19   ;;  %v4897_v48 = vld [vmem:[%s8178_s6 + $0x2d8] sm:$0xff]  ;;  %v4896_v49 = vld [vmem:[%s8178_s6 + $0x2d0] sm:$0xff]  ;;  %v4899_v50 = vld [vmem:[%s8178_s6 + $0x2e8] sm:$0xff] }
  0x27   :  { %264 = vperm.xlu0 %5564, %v4862_v20   ;;  %v4898_v51 = vld [vmem:[%s8178_s6 + $0x2e0] sm:$0xff]  ;;  %v4901_v52 = vld [vmem:[%s8178_s6 + $0x2f8] sm:$0xff]  ;;  %v4900_v53 = vld [vmem:[%s8178_s6 + $0x2f0] sm:$0xff] }
  0x28   :  { %v4904_v55 = vld [vmem:[%s8175_s3 + $0x200] sm:$0xff]  ;;  %v4903_v56 = vld [vmem:[%s8180_s8 + $0xa] sm:$0x3]  ;;  %v4906_v61 = vld [vmem:[%s8175_s3 + $0x210] sm:$0xff] }
  0x29   :  { %v4920_v58 = vld [vmem:[%s8176_s4 + $0x200] sm:$0xff]  ;;  %v4905_v59 = vld [vmem:[%s8175_s3 + $0x208] sm:$0xff]  ;;  %v4922_v63 = vld [vmem:[%s8176_s4 + $0x210] sm:$0xff] }
  0x2a   :  { %131 = vperm.xlu1 %5565, %v4849_v21   ;;  %v4921_v62 = vld [vmem:[%s8176_s4 + $0x208] sm:$0xff]  ;;  %v4907_v0 = vld [vmem:[%s8175_s3 + $0x218] sm:$0xff]  ;;  %v4908_v2 = vld [vmem:[%s8175_s3 + $0x220] sm:$0xff] }
  0x2b   :  { %126 = vperm.xlu0 %5564, %v4848_v22   ;;  %v4923_v3 = vld [vmem:[%s8176_s4 + $0x218] sm:$0xff]  ;;  %v4836_v4 = vld.sshfl [vmem:[%s8174_s2] sm:$0x33 pattern:$0x76325410]  ;;  %v4909_v9 = vld [vmem:[%s8175_s3 + $0x228] sm:$0xff] }
  0x2c   :  { %v49_v6 = vsub.f32 %v5798_v33, %v4836_v4  ;;  %v4924_v8 = vld [vmem:[%s8176_s4 + $0x220] sm:$0xff]  ;;  %v4910_v13 = vld [vmem:[%s8175_s3 + $0x230] sm:$0xff]  ;;  %v4925_v14 = vld [vmem:[%s8176_s4 + $0x228] sm:$0xff] }
  0x2d   :  { %v4926_v17 = vld [vmem:[%s8176_s4 + $0x230] sm:$0xff]  ;;  %v4911_v18 = vld [vmem:[%s8175_s3 + $0x238] sm:$0xff]  ;;  %v4912_v21 = vld [vmem:[%s8175_s3 + $0x240] sm:$0xff] }
  0x2e   :  { %279 = vperm.xlu1 %5565, %v4865_v23   ;;  %v4927_v22 = vld [vmem:[%s8176_s4 + $0x238] sm:$0xff]  ;;  %v4929_v36 = vld [vmem:[%s8176_s4 + $0x248] sm:$0xff] }
  0x2f   :  { %274 = vperm.xlu0 %5564, %v4864_v24   ;;  %v5567_v44 = vpop.eup %5566 }
  0x30   :  { %v37_v47 = vadd.f32 1.0, %v5567_v44  ;;  %v4930_v44 = vld [vmem:[%s8176_s4 + $0x250] sm:$0xff] }
  0x32   :  { %141 = vperm.xlu1 %5565, %v4851_v25   ;;  %5568 = vrcp.f32 %v37_v47 }
  0x33   :  { %136 = vperm.xlu0 %5564, %v4850_v26  }
  0x36   :  { %289 = vperm.xlu1 %5565, %v4867_v27   ;;  %v4928_v27 = vld [vmem:[%s8176_s4 + $0x240] sm:$0xff] }
  0x37   :  { %284 = vperm.xlu0 %5564, %v4866_v28   ;;  %v4913_v28 = vld [vmem:[%s8175_s3 + $0x248] sm:$0xff] }
  0x3a   :  { %151 = vperm.xlu1 %5565, %v4853_v29  }
  0x3b   :  { %146 = vperm.xlu0 %5564, %v4852_v30  }
  0x3c   :  { %v5851_v54 = vpop.eup %5568 }
  0x3d   :  { %8310 = vst [vmem:[#allocation7_spill] sm:$0xff] %v5851_v54  ;;  %v50_v57 = vadd.f32 1e-09, %v5851_v54 }
  0x3e   :  { %299 = vperm.xlu1 %5565, %v4869_v31  }
  0x3f   :  { %294 = vperm.xlu0 %5564, %v4868_v32   ;;  %v4837_v60 = vrot.slane %v50_v57, 10 }
  0x41   :  { %5570 = vrcp.f32 %v4837_v60 }
  0x42   :  { %439 = vperm.xlu1 %5565, %v4887_v34  }
  0x43   :  { %434 = vperm.xlu0 %5564, %v4886_v35   ;;  %v4914_v35 = vld [vmem:[%s8175_s3 + $0x250] sm:$0xff] }
  0x46   :  { %449 = vperm.xlu1 %5565, %v4889_v37  }
  0x47   :  { %444 = vperm.xlu0 %5564, %v4888_v38  }
  0x4a   :  { %459 = vperm.xlu1 %5565, %v4891_v39  }
  0x4b   :  { %454 = vperm.xlu0 %5564, %v4890_v40   ;;  %v5571_v7 = vpop.eup %5570 }
  0x4c   :  { %v5903_v12 = vmul.f32 %v5571_v7, %v49_v6 }
  0x4e   :  { %469 = vperm.xlu1 %5565, %v4893_v42   ;;  %v158_v15 = vrot.slane %v5903_v12, %v5898_v10  ;;  %v162_v16 = vrot.slane %v5903_v12, %v5901_v11  ;;  %v5055_v11 = vld [vmem:[%s8176_s4 + $0x110] sm:$0xff] }
  0x4f   :  { %464 = vperm.xlu0 %5564, %v4892_v43  }
  0x50   :  { %v5922_v19 = vrot.slane %v158_v15, %v5898_v10  ;;  %v5925_v20 = vrot.slane %v162_v16, %v5898_v10 }
  0x52   :  { %479 = vperm.xlu1 %5565, %v4895_v45  }
  0x53   :  { %474 = vperm.xlu0 %5564, %v4894_v46  }
  0x56   :  { %489 = vperm.xlu1 %5565, %v4897_v48  }
  0x57   :  { %484 = vperm.xlu0 %5564, %v4896_v49  }
  0x5a   :  { %499 = vperm.xlu1 %5565, %v4899_v50  }
  0x5b   :  { %494 = vperm.xlu0 %5564, %v4898_v51   ;;  %v4915_v51 = vld [vmem:[%s8175_s3 + $0x258] sm:$0xff] }
  0x5e   :  { %509 = vperm.xlu1 %5565, %v4901_v52  }
  0x5f   :  { %504 = vperm.xlu0 %5564, %v4900_v53  }
  0x62   :  { %855 = vperm.xlu1 %5565, %v4904_v55  }
  0x63   :  { %743 = vperm.xlu0 %5564, %v4903_v56  }
  0x66   :  { %1003 = vperm.xlu1 %5565, %v4920_v58  }
  0x67   :  { %860 = vperm.xlu0 %5564, %v4905_v59  }
  0x6a   :  { %865 = vperm.xlu1 %5565, %v4906_v61  }
  0x6b   :  { %1008 = vperm.xlu0 %5564, %v4921_v62  }
  0x6e   :  { %1013 = vperm.xlu1 %5565, %v4922_v63  }
  0x6f   :  { %870 = vperm.xlu0 %5564, %v4907_v0  }
  0x72   :  { %875 = vperm.xlu1 %5565, %v4908_v2   ;;  %v4916_v2 = vld [vmem:[%s8175_s3 + $0x260] sm:$0xff] }
  0x73   :  { %1018 = vperm.xlu0 %5564, %v4923_v3  }
  0x76   :  { %1023 = vperm.xlu1 %5565, %v4924_v8  }
  0x77   :  { %880 = vperm.xlu0 %5564, %v4909_v9  }
  0x7a   :  { %885 = vperm.xlu1 %5565, %v4910_v13   ;;  %v4931_v13 = vld [vmem:[%s8176_s4 + $0x258] sm:$0xff] }
  0x7b   :  { %1028 = vperm.xlu0 %5564, %v4925_v14  }
  0x7e   :  { %1033 = vperm.xlu1 %5565, %v4926_v17  }
  0x7f   :  { %890 = vperm.xlu0 %5564, %v4911_v18  }
  0x81   :  { %v225_v23 = vpop.permute.xlu1 %224 }
  0x82   :  { %v77_v24 = vpop.permute.xlu0 %76  ;;  %895 = vperm.xlu1 %5565, %v4912_v21  }
  0x83   :  { %v173_v25 = vmul.f32 %v5922_v19, %v77_v24  ;;  %v174_v26 = vmul.f32 %v5925_v20, %v77_v24  ;;  %1038 = vperm.xlu0 %5564, %v4927_v22   ;;  %v4932_v24 = vld [vmem:[%s8176_s4 + $0x260] sm:$0xff] }
  0x85   :  { %v230_v29 = vpop.permute.xlu1 %229  ;;  %v303_v31 = vadd.f32 %v225_v23, %v174_v26  ;;  %v302_v32 = vadd.f32 %v225_v23, %v173_v25 }
  0x86   :  { %v82_v30 = vpop.permute.xlu0 %81  ;;  %1043 = vperm.xlu1 %5565, %v4928_v27  }
  0x87   :  { %v175_v33 = vmul.f32 %v5922_v19, %v82_v30  ;;  %v176_v34 = vmul.f32 %v5925_v20, %v82_v30  ;;  %900 = vperm.xlu0 %5564, %v4913_v28   ;;  %v335_v42 = vmul.f32 0.01, %v303_v31  ;;  %v334_v43 = vmul.f32 0.01, %v302_v32  ;;  %v4917_v28 = vld [vmem:[%s8175_s3 + $0x268] sm:$0xff] }
  0x89   :  { %v305_v37 = vadd.f32 %v230_v29, %v176_v34  ;;  %v304_v38 = vadd.f32 %v230_v29, %v175_v33  ;;  %v92_v39 = vpop.permute.xlu1 %91  ;;  %v367_v55 = vmax.f32 %v303_v31, %v335_v42  ;;  %v366_v57 = vmax.f32 %v302_v32, %v334_v43  ;;  %v4918_v34 = vld [vmem:[%s8175_s3 + $0x270] sm:$0xff]  ;;  %v4933_v42 = vld [vmem:[%s8176_s4 + $0x268] sm:$0xff] }
  0x8a   :  { %v87_v40 = vpop.permute.xlu0 %86  ;;  %905 = vperm.xlu1 %5565, %v4914_v35   ;;  %v179_v47 = vmul.f32 %v5922_v19, %v92_v39  ;;  %v180_v48 = vmul.f32 %v5925_v20, %v92_v39 }
  0x8b   :  { %1048 = vperm.xlu0 %5564, %v4929_v36   ;;  %v337_v45 = vmul.f32 0.01, %v305_v37  ;;  %v336_v46 = vmul.f32 0.01, %v304_v38  ;;  %v177_v49 = vmul.f32 %v5922_v19, %v87_v40  ;;  %v178_v50 = vmul.f32 %v5925_v20, %v87_v40 }
  0x8d   :  { %v240_v52 = vpop.permute.xlu1 %239  ;;  %v369_v56 = vmax.f32 %v305_v37, %v337_v45  ;;  %v368_v58 = vmax.f32 %v304_v38, %v336_v46 }
  0x8e   :  { %v235_v53 = vpop.permute.xlu0 %234  ;;  %v308_v59 = vadd.f32 %v240_v52, %v179_v47  ;;  %v309_v60 = vadd.f32 %v240_v52, %v180_v48  ;;  %1053 = vperm.xlu1 %5565, %v4930_v44  }
  0x8f   :  { %v306_v61 = vadd.f32 %v235_v53, %v177_v49  ;;  %v307_v62 = vadd.f32 %v235_v53, %v178_v50  ;;  %910 = vperm.xlu0 %5564, %v4915_v51   ;;  %v5175_v63 = vpack.c.bf16 %v369_v56, %v367_v55  ;;  %v5177_v0 = vpack.c.bf16 %v368_v58, %v366_v57  ;;  %v4934_v51 = vld [vmem:[%s8176_s4 + $0x270] sm:$0xff]  ;;  %v4919_v56 = vld [vmem:[%s8175_s3 + $0x278] sm:$0xff] }
  0x90   :  { %v340_v3 = vmul.f32 0.01, %v308_v59  ;;  %v341_v4 = vmul.f32 0.01, %v309_v60 }
  0x91   :  { %v338_v6 = vmul.f32 0.01, %v306_v61  ;;  %v339_v7 = vmul.f32 0.01, %v307_v62  ;;  %5176 = vmatprep.subr.bf16.mxu0 %v5175_v63  ;;  %v102_v8 = vpop.permute.xlu1 %101 }
  0x92   :  { %v97_v9 = vpop.permute.xlu0 %96  ;;  %v372_v14 = vmax.f32 %v308_v59, %v340_v3  ;;  %v373_v15 = vmax.f32 %v309_v60, %v341_v4  ;;  %5178 = vmatpush1.bf16.msra.mxu0 %v5177_v0  ;;  %v183_v18 = vmul.f32 %v5922_v19, %v102_v8  ;;  %915 = vperm.xlu1 %5565, %v4916_v2  }
  0x93   :  { %v370_v16 = vmax.f32 %v306_v61, %v338_v6  ;;  %v371_v17 = vmax.f32 %v307_v62, %v339_v7  ;;  %v184_v21 = vmul.f32 %v5925_v20, %v102_v8  ;;  %v181_v22 = vmul.f32 %v5922_v19, %v97_v9  ;;  %1058 = vperm.xlu0 %5564, %v4931_v13   ;;  %v4952_v62 = vld [vmem:[%s8178_s6 + $0x200] sm:$0xff]  ;;  %v4935_v7 = vld [vmem:[%s8176_s4 + $0x278] sm:$0xff] }
  0x94   :  { %v182_v23 = vmul.f32 %v5925_v20, %v97_v9 }
  0x95   :  { %v5181_v25 = vpack.c.bf16 %v372_v14, %v370_v16  ;;  %v250_v26 = vpop.permute.xlu1 %249  ;;  %v5179_v29 = vpack.c.bf16 %v373_v15, %v371_v17 }
  0x96   :  { %v245_v27 = vpop.permute.xlu0 %244  ;;  %v312_v30 = vadd.f32 %v250_v26, %v183_v18  ;;  %v313_v31 = vadd.f32 %v250_v26, %v184_v21  ;;  %1063 = vperm.xlu1 %5565, %v4932_v24   ;;  %v4954_v21 = vld [vmem:[%s8178_s6 + $0x210] sm:$0xff] }
  0x97   :  { %v310_v32 = vadd.f32 %v245_v27, %v181_v22  ;;  %v311_v33 = vadd.f32 %v245_v27, %v182_v23  ;;  %5180 = vmatprep.subr.bf16.mxu0 %v5179_v29  ;;  %920 = vperm.xlu0 %5564, %v4917_v28  }
  0x98   :  { %v344_v35 = vmul.f32 0.01, %v312_v30  ;;  %v345_v36 = vmul.f32 0.01, %v313_v31  ;;  %5182 = vmatpush1.bf16.msra.mxu0 %v5181_v25  ;;  %v4953_v25 = vld [vmem:[%s8178_s6 + $0x208] sm:$0xff] }
  0x99   :  { %v342_v37 = vmul.f32 0.01, %v310_v32  ;;  %v343_v38 = vmul.f32 0.01, %v311_v33  ;;  %v112_v39 = vpop.permute.xlu1 %111 }
  0x9a   :  { %v107_v40 = vpop.permute.xlu0 %106  ;;  %v376_v43 = vmax.f32 %v312_v30, %v344_v35  ;;  %v377_v44 = vmax.f32 %v313_v31, %v345_v36  ;;  %v187_v47 = vmul.f32 %v5922_v19, %v112_v39  ;;  %925 = vperm.xlu1 %5565, %v4918_v34   ;;  %v188_v48 = vmul.f32 %v5925_v20, %v112_v39  ;;  %v4956_v31 = vld [vmem:[%s8178_s6 + $0x220] sm:$0xff] }
  0x9b   :  { %v374_v45 = vmax.f32 %v310_v32, %v342_v37  ;;  %v375_v46 = vmax.f32 %v311_v33, %v343_v38  ;;  %v185_v49 = vmul.f32 %v5922_v19, %v107_v40  ;;  %v186_v50 = vmul.f32 %v5925_v20, %v107_v40  ;;  %1068 = vperm.xlu0 %5564, %v4933_v42   ;;  %v4955_v38 = vld [vmem:[%s8178_s6 + $0x218] sm:$0xff] }
  0x9d   :  { %v5185_v52 = vpack.c.bf16 %v376_v43, %v374_v45  ;;  %v260_v53 = vpop.permute.xlu1 %259  ;;  %v5183_v57 = vpack.c.bf16 %v377_v44, %v375_v46 }
  0x9e   :  { %v255_v55 = vpop.permute.xlu0 %254  ;;  %v316_v58 = vadd.f32 %v260_v53, %v187_v47  ;;  %v317_v59 = vadd.f32 %v260_v53, %v188_v48  ;;  %1073 = vperm.xlu1 %5565, %v4934_v51   ;;  %v4958_v48 = vld [vmem:[%s8178_s6 + $0x230] sm:$0xff] }
  0x9f   :  { %v314_v60 = vadd.f32 %v255_v55, %v185_v49  ;;  %v315_v61 = vadd.f32 %v255_v55, %v186_v50  ;;  %5184 = vmatprep.subr.bf16.mxu0 %v5183_v57  ;;  %930 = vperm.xlu0 %5564, %v4919_v56  }
  0xa0   :  { %v348_v63 = vmul.f32 0.01, %v316_v58  ;;  %v349_v0 = vmul.f32 0.01, %v317_v59  ;;  %5186 = vmatpush1.bf16.msra.mxu0 %v5185_v52  ;;  %v4957_v52 = vld [vmem:[%s8178_s6 + $0x228] sm:$0xff] }
  0xa1   :  { %v346_v2 = vmul.f32 0.01, %v314_v60  ;;  %v347_v3 = vmul.f32 0.01, %v315_v61  ;;  %v122_v4 = vpop.permute.xlu1 %121 }
  0xa2   :  { %v117_v6 = vpop.permute.xlu0 %116  ;;  %v380_v8 = vmax.f32 %v316_v58, %v348_v63  ;;  %v381_v9 = vmax.f32 %v317_v59, %v349_v0  ;;  %v191_v15 = vmul.f32 %v5922_v19, %v122_v4  ;;  %1213 = vperm.xlu1 %5565, %v4952_v62   ;;  %v192_v16 = vmul.f32 %v5925_v20, %v122_v4  ;;  %v4960_v59 = vld [vmem:[%s8178_s6 + $0x240] sm:$0xff] }
  0xa3   :  { %v378_v13 = vmax.f32 %v314_v60, %v346_v2  ;;  %v379_v14 = vmax.f32 %v315_v61, %v347_v3  ;;  %v189_v17 = vmul.f32 %v5922_v19, %v117_v6  ;;  %v190_v18 = vmul.f32 %v5925_v20, %v117_v6  ;;  %1078 = vperm.xlu0 %5564, %v4935_v7   ;;  %v4959_v3 = vld [vmem:[%s8178_s6 + $0x238] sm:$0xff] }
  0xa5   :  { %v5189_v22 = vpack.c.bf16 %v380_v8, %v378_v13  ;;  %v270_v23 = vpop.permute.xlu1 %269  ;;  %v5187_v26 = vpack.c.bf16 %v381_v9, %v379_v14 }
  0xa6   :  { %v265_v24 = vpop.permute.xlu0 %264  ;;  %v320_v27 = vadd.f32 %v270_v23, %v191_v15  ;;  %v321_v28 = vadd.f32 %v270_v23, %v192_v16  ;;  %1223 = vperm.xlu1 %5565, %v4954_v21   ;;  %v4962_v16 = vld [vmem:[%s8178_s6 + $0x250] sm:$0xff] }
  0xa7   :  { %v318_v29 = vadd.f32 %v265_v24, %v189_v17  ;;  %v319_v30 = vadd.f32 %v265_v24, %v190_v18  ;;  %5188 = vmatprep.subr.bf16.mxu0 %v5187_v26  ;;  %1218 = vperm.xlu0 %5564, %v4953_v25  }
  0xa8   :  { %v352_v32 = vmul.f32 0.01, %v320_v27  ;;  %v353_v33 = vmul.f32 0.01, %v321_v28  ;;  %5190 = vmatpush1.bf16.msra.mxu0 %v5189_v22  ;;  %v4961_v22 = vld [vmem:[%s8178_s6 + $0x248] sm:$0xff] }
  0xa9   :  { %v350_v34 = vmul.f32 0.01, %v318_v29  ;;  %v351_v35 = vmul.f32 0.01, %v319_v30  ;;  %v132_v36 = vpop.permute.xlu1 %131 }
  0xaa   :  { %v127_v37 = vpop.permute.xlu0 %126  ;;  %v384_v39 = vmax.f32 %v320_v27, %v352_v32  ;;  %v385_v40 = vmax.f32 %v321_v28, %v353_v33  ;;  %v195_v44 = vmul.f32 %v5922_v19, %v132_v36  ;;  %1233 = vperm.xlu1 %5565, %v4956_v31   ;;  %v196_v45 = vmul.f32 %v5925_v20, %v132_v36  ;;  %v4964_v28 = vld [vmem:[%s8178_s6 + $0x260] sm:$0xff] }
  0xab   :  { %v382_v42 = vmax.f32 %v318_v29, %v350_v34  ;;  %v383_v43 = vmax.f32 %v319_v30, %v351_v35  ;;  %v193_v46 = vmul.f32 %v5922_v19, %v127_v37  ;;  %v194_v47 = vmul.f32 %v5925_v20, %v127_v37  ;;  %1228 = vperm.xlu0 %5564, %v4955_v38   ;;  %v4963_v35 = vld [vmem:[%s8178_s6 + $0x258] sm:$0xff] }
  0xad   :  { %v5193_v49 = vpack.c.bf16 %v384_v39, %v382_v42  ;;  %v280_v50 = vpop.permute.xlu1 %279  ;;  %v5191_v53 = vpack.c.bf16 %v385_v40, %v383_v43 }
  0xae   :  { %v275_v51 = vpop.permute.xlu0 %274  ;;  %v324_v55 = vadd.f32 %v280_v50, %v195_v44  ;;  %v325_v56 = vadd.f32 %v280_v50, %v196_v45  ;;  %1243 = vperm.xlu1 %5565, %v4958_v48   ;;  %v4966_v45 = vld [vmem:[%s8178_s6 + $0x270] sm:$0xff] }
  0xaf   :  { %v322_v57 = vadd.f32 %v275_v51, %v193_v46  ;;  %v323_v58 = vadd.f32 %v275_v51, %v194_v47  ;;  %5192 = vmatprep.subr.bf16.mxu0 %v5191_v53  ;;  %1238 = vperm.xlu0 %5564, %v4957_v52  }
  0xb0   :  { %v356_v60 = vmul.f32 0.01, %v324_v55  ;;  %v357_v61 = vmul.f32 0.01, %v325_v56  ;;  %5194 = vmatpush1.bf16.msra.mxu0 %v5193_v49  ;;  %v4965_v49 = vld [vmem:[%s8178_s6 + $0x268] sm:$0xff] }
  0xb1   :  { %v354_v62 = vmul.f32 0.01, %v322_v57  ;;  %v355_v63 = vmul.f32 0.01, %v323_v58  ;;  %v142_v0 = vpop.permute.xlu1 %141 }
  0xb2   :  { %v137_v2 = vpop.permute.xlu0 %136  ;;  %v388_v4 = vmax.f32 %v324_v55, %v356_v60  ;;  %v389_v6 = vmax.f32 %v325_v56, %v357_v61  ;;  %v199_v9 = vmul.f32 %v5922_v19, %v142_v0  ;;  %1253 = vperm.xlu1 %5565, %v4960_v59   ;;  %v200_v13 = vmul.f32 %v5925_v20, %v142_v0  ;;  %v4967_v61 = vld [vmem:[%s8178_s6 + $0x278] sm:$0xff] }
  0xb3   :  { %v386_v7 = vmax.f32 %v322_v57, %v354_v62  ;;  %v387_v8 = vmax.f32 %v323_v58, %v355_v63  ;;  %v197_v14 = vmul.f32 %v5922_v19, %v137_v2  ;;  %v198_v15 = vmul.f32 %v5925_v20, %v137_v2  ;;  %1248 = vperm.xlu0 %5564, %v4959_v3   ;;  %v4972_v3 = vld [vmem:[%s8175_s3 + $0x188] sm:$0xff] }
  0xb5   :  { %v5197_v17 = vpack.c.bf16 %v388_v4, %v386_v7  ;;  %v290_v18 = vpop.permute.xlu1 %289  ;;  %v5195_v23 = vpack.c.bf16 %v389_v6, %v387_v8  ;;  %v4971_v8 = vld [vmem:[%s8175_s3 + $0x180] sm:$0xff] }
  0xb6   :  { %v285_v21 = vpop.permute.xlu0 %284  ;;  %v328_v24 = vadd.f32 %v290_v18, %v199_v9  ;;  %v329_v25 = vadd.f32 %v290_v18, %v200_v13  ;;  %1263 = vperm.xlu1 %5565, %v4962_v16   ;;  %v4988_v13 = vld [vmem:[%s8176_s4 + $0x188] sm:$0xff]  ;;  %v4974_v18 = vld [vmem:[%s8175_s3 + $0x198] sm:$0xff] }
  0xb7   :  { %v326_v26 = vadd.f32 %v285_v21, %v197_v14  ;;  %v327_v27 = vadd.f32 %v285_v21, %v198_v15  ;;  %5196 = vmatprep.subr.bf16.mxu0 %v5195_v23  ;;  %1258 = vperm.xlu0 %5564, %v4961_v22   ;;  %v4870_v14 = vld [vmem:[%s8177_s5 + $0x280] sm:$0xff]  ;;  %v4871_v21 = vld [vmem:[%s8177_s5 + $0x288] sm:$0xff] }
  0xb8   :  { %v360_v29 = vmul.f32 0.01, %v328_v24  ;;  %v361_v30 = vmul.f32 0.01, %v329_v25  ;;  %5198 = vmatpush1.bf16.msra.mxu0 %v5197_v17  ;;  %v4987_v17 = vld [vmem:[%s8176_s4 + $0x180] sm:$0xff] }
  0xb9   :  { %v358_v31 = vmul.f32 0.01, %v326_v26  ;;  %v359_v32 = vmul.f32 0.01, %v327_v27  ;;  %v152_v33 = vpop.permute.xlu1 %151 }
  0xba   :  { %v147_v34 = vpop.permute.xlu0 %146  ;;  %v392_v36 = vmax.f32 %v328_v24, %v360_v29  ;;  %v393_v37 = vmax.f32 %v329_v25, %v361_v30  ;;  %v203_v40 = vmul.f32 %v5922_v19, %v152_v33  ;;  %1273 = vperm.xlu1 %5565, %v4964_v28   ;;  %v204_v42 = vmul.f32 %v5925_v20, %v152_v33  ;;  %v4973_v24 = vld [vmem:[%s8175_s3 + $0x190] sm:$0xff]  ;;  %v4990_v25 = vld [vmem:[%s8176_s4 + $0x198] sm:$0xff]  ;;  %v4976_v30 = vld [vmem:[%s8175_s3 + $0x1a8] sm:$0xff] }
  0xbb   :  { %v390_v38 = vmax.f32 %v326_v26, %v358_v31  ;;  %v391_v39 = vmax.f32 %v327_v27, %v359_v32  ;;  %v201_v43 = vmul.f32 %v5922_v19, %v147_v34  ;;  %v202_v44 = vmul.f32 %v5925_v20, %v147_v34  ;;  %1268 = vperm.xlu0 %5564, %v4963_v35   ;;  %v4969_v19 = vld [vmem:[%s8180_s8 + $0x8] sm:$0x3]  ;;  %v4872_v26 = vld [vmem:[%s8177_s5 + $0x290] sm:$0xff]  ;;  %v4873_v31 = vld [vmem:[%s8177_s5 + $0x298] sm:$0xff] }
  0xbc   :  { %v4989_v29 = vld [vmem:[%s8176_s4 + $0x190] sm:$0xff]  ;;  %v4975_v34 = vld [vmem:[%s8175_s3 + $0x1a0] sm:$0xff]  ;;  %v4992_v35 = vld [vmem:[%s8176_s4 + $0x1a8] sm:$0xff] }
  0xbd   :  { %v5201_v46 = vpack.c.bf16 %v392_v36, %v390_v38  ;;  %v300_v47 = vpop.permute.xlu1 %299  ;;  %v5199_v50 = vpack.c.bf16 %v393_v37, %v391_v39  ;;  %v4874_v36 = vld [vmem:[%s8177_s5 + $0x2a0] sm:$0xff] }
  0xbe   :  { %v295_v48 = vpop.permute.xlu0 %294  ;;  %v332_v51 = vadd.f32 %v300_v47, %v203_v40  ;;  %v333_v52 = vadd.f32 %v300_v47, %v204_v42  ;;  %1283 = vperm.xlu1 %5565, %v4966_v45   ;;  %v4991_v39 = vld [vmem:[%s8176_s4 + $0x1a0] sm:$0xff]  ;;  %v4978_v40 = vld [vmem:[%s8175_s3 + $0x1b8] sm:$0xff]  ;;  %v4875_v42 = vld [vmem:[%s8177_s5 + $0x2a8] sm:$0xff] }
  0xbf   :  { %v330_v53 = vadd.f32 %v295_v48, %v201_v43  ;;  %v331_v55 = vadd.f32 %v295_v48, %v202_v44  ;;  %5200 = vmatprep.subr.bf16.mxu0 %v5199_v50  ;;  %1278 = vperm.xlu0 %5564, %v4965_v49   ;;  %v4977_v45 = vld [vmem:[%s8175_s3 + $0x1b0] sm:$0xff] }
  0xc0   :  { %v364_v20 = vmul.f32 0.01, %v332_v51  ;;  %v365_v56 = vmul.f32 0.01, %v333_v52  ;;  %5202 = vmatpush1.bf16.msra.mxu0 %v5201_v46  ;;  %v4994_v46 = vld [vmem:[%s8176_s4 + $0x1b8] sm:$0xff]  ;;  %v4876_v47 = vld [vmem:[%s8177_s5 + $0x2b0] sm:$0xff] }
  0xc1   :  { %v362_v57 = vmul.f32 0.01, %v330_v53  ;;  %v363_v58 = vmul.f32 0.01, %v331_v55  ;;  %v6058_v59 = vpop.permute.xlu1 %439  ;;  %v4993_v50 = vld [vmem:[%s8176_s4 + $0x1b0] sm:$0xff] }
  0xc2   :  { %v6060_v60 = vpop.permute.xlu0 %434  ;;  %v396_v62 = vmax.f32 %v332_v51, %v364_v20  ;;  %v397_v63 = vmax.f32 %v333_v52, %v365_v56  ;;  %1522 = vperm.xlu1 %5565, %v4969_v19   ;;  %v4980_v51 = vld [vmem:[%s8175_s3 + $0x1c8] sm:$0xff]  ;;  %v4877_v52 = vld [vmem:[%s8177_s5 + $0x2b8] sm:$0xff]  ;;  %v4979_v19 = vld [vmem:[%s8175_s3 + $0x1c0] sm:$0xff] }
  0xc3   :  { %v394_v0 = vmax.f32 %v330_v53, %v362_v57  ;;  %v395_v2 = vmax.f32 %v331_v55, %v363_v58  ;;  %1288 = vperm.xlu0 %5564, %v4967_v61   ;;  %v4996_v20 = vld [vmem:[%s8176_s4 + $0x1c8] sm:$0xff]  ;;  %v4878_v56 = vld [vmem:[%s8177_s5 + $0x2c0] sm:$0xff] }
  0xc4   :  { %v4995_v61 = vld [vmem:[%s8176_s4 + $0x1c0] sm:$0xff] }
  0xc5   :  { %v5205_v4 = vpack.c.bf16 %v396_v62, %v394_v0  ;;  %v6068_v6 = vpop.permute.xlu1 %449  ;;  %v5203_v9 = vpack.c.bf16 %v397_v63, %v395_v2  ;;  %v4982_v62 = vld [vmem:[%s8175_s3 + $0x1d8] sm:$0xff]  ;;  %v4879_v63 = vld [vmem:[%s8177_s5 + $0x2c8] sm:$0xff] }
  0xc6   :  { %v6070_v7 = vpop.permute.xlu0 %444  ;;  %1642 = vperm.xlu1 %5565, %v4972_v3   ;;  %v4981_v3 = vld [vmem:[%s8175_s3 + $0x1d0] sm:$0xff] }
  0xc7   :  { %5204 = vmatprep.subr.bf16.mxu0 %v5203_v9  ;;  %1637 = vperm.xlu0 %5564, %v4971_v8   ;;  %v4880_v8 = vld [vmem:[%s8177_s5 + $0x2d0] sm:$0xff] }
  0xc8   :  { %5206 = vmatpush1.bf16.msra.mxu0 %v5205_v4  ;;  %v4998_v4 = vld [vmem:[%s8176_s4 + $0x1d8] sm:$0xff] }
  0xc9   :  { %v6081_v15 = vpop.permute.xlu1 %459 }
  0xca   :  { %v6083_v16 = vpop.permute.xlu0 %454  ;;  %1790 = vperm.xlu1 %5565, %v4988_v13  }
  0xcb   :  { %577 = vmatmul.mubr.f32.vlgmr.msra.gmra.mrb[0].mxu0 %v4870_v14  ;;  %1785 = vperm.xlu0 %5564, %v4987_v17   ;;  %v4997_v14 = vld [vmem:[%s8176_s4 + $0x1d0] sm:$0xff]  ;;  %v4984_v17 = vld [vmem:[%s8175_s3 + $0x1e8] sm:$0xff] }
  0xcc   :  { %582 = vmatprep.mubr.f32.mxu0 %v8183_v41 }
  0xcd   :  { %v6095_v22 = vpop.permute.xlu1 %469 }
  0xce   :  { %v6097_v23 = vpop.permute.xlu0 %464  ;;  %1652 = vperm.xlu1 %5565, %v4974_v18   ;;  %v4881_v18 = vld [vmem:[%s8177_s5 + $0x2d8] sm:$0xff] }
  0xcf   :  { %583 = vmatmul.mubr.f32.gmra.mrb[2].mxu0 %v4871_v21  ;;  %1647 = vperm.xlu0 %5564, %v4973_v24  }
  0xd0   :  { %588 = vmatprep.mubr.f32.mxu0 %v8183_v41 }
  0xd1   :  { %v6109_v27 = vpop.permute.xlu1 %479 }
  0xd2   :  { %v6111_v28 = vpop.permute.xlu0 %474  ;;  %1800 = vperm.xlu1 %5565, %v4990_v25   ;;  %v4983_v25 = vld [vmem:[%s8175_s3 + $0x1e0] sm:$0xff] }
  0xd3   :  { %589 = vmatmul.mubr.f32.gmra.mrb[4].mxu0 %v4872_v26  ;;  %1795 = vperm.xlu0 %5564, %v4989_v29   ;;  %v5000_v26 = vld [vmem:[%s8176_s4 + $0x1e8] sm:$0xff]  ;;  %v4882_v29 = vld [vmem:[%s8177_s5 + $0x2e0] sm:$0xff] }
  0xd4   :  { %594 = vmatprep.mubr.f32.mxu0 %v8183_v41 }
  0xd5   :  { %v6123_v32 = vpop.permute.xlu1 %489 }
  0xd6   :  { %v6125_v33 = vpop.permute.xlu0 %484  ;;  %1662 = vperm.xlu1 %5565, %v4976_v30  }
  0xd7   :  { %595 = vmatmul.mubr.f32.gmra.mrb[6].mxu0 %v4873_v31  ;;  %1657 = vperm.xlu0 %5564, %v4975_v34   ;;  %v4999_v34 = vld [vmem:[%s8176_s4 + $0x1e0] sm:$0xff] }
  0xd8   :  { %600 = vmatprep.mubr.f32.mxu0 %v8183_v41 }
  0xd9   :  { %v6137_v37 = vpop.permute.xlu1 %499 }
  0xda   :  { %v6139_v38 = vpop.permute.xlu0 %494  ;;  %1810 = vperm.xlu1 %5565, %v4992_v35   ;;  %v4986_v35 = vld [vmem:[%s8175_s3 + $0x1f8] sm:$0xff] }
  0xdb   :  { %601 = vmatmul.mubr.f32.gmra.mrb[8].mxu0 %v4874_v36  ;;  %1805 = vperm.xlu0 %5564, %v4991_v39   ;;  %v4883_v36 = vld [vmem:[%s8177_s5 + $0x2e8] sm:$0xff] }
  0xdc   :  { %606 = vmatprep.mubr.f32.mxu0 %v8183_v41 }
  0xdd   :  { %v6151_v43 = vpop.permute.xlu1 %509 }
  0xde   :  { %v6153_v44 = vpop.permute.xlu0 %504  ;;  %1672 = vperm.xlu1 %5565, %v4978_v40  }
  0xdf   :  { %607 = vmatmul.mubr.f32.gmra.mrb[10].mxu0 %v4875_v42  ;;  %1667 = vperm.xlu0 %5564, %v4977_v45   ;;  %v4985_v42 = vld [vmem:[%s8175_s3 + $0x1f0] sm:$0xff]  ;;  %v5002_v45 = vld [vmem:[%s8176_s4 + $0x1f8] sm:$0xff] }
  0xe0   :  { %612 = vmatprep.mubr.f32.mxu0 %v8183_v41 }
  0xe1   :  { %v6165_v48 = vpop.permute.xlu1 %855 }
  0xe2   :  { %v6167_v49 = vpop.permute.xlu0 %743  ;;  %1820 = vperm.xlu1 %5565, %v4994_v46   ;;  %v4884_v46 = vld [vmem:[%s8177_s5 + $0x2f0] sm:$0xff] }
  0xe3   :  { %613 = vmatmul.mubr.f32.gmra.mrb[12].mxu0 %v4876_v47  ;;  %1815 = vperm.xlu0 %5564, %v4993_v50  }
  0xe4   :  { %618 = vmatprep.mubr.f32.mxu0 %v8183_v41 }
  0xe5   :  { %v6179_v53 = vpop.permute.xlu1 %1003 }
  0xe6   :  { %v6181_v55 = vpop.permute.xlu0 %860  ;;  %1682 = vperm.xlu1 %5565, %v4980_v51   ;;  %v5001_v51 = vld [vmem:[%s8176_s4 + $0x1f0] sm:$0xff] }
  0xe7   :  { %619 = vmatmul.mubr.f32.gmra.mrb[14].mxu0 %v4877_v52  ;;  %1677 = vperm.xlu0 %5564, %v4979_v19   ;;  %v5020_v52 = vld [vmem:[%s8178_s6 + $0x188] sm:$0xff]  ;;  %v4885_v19 = vld [vmem:[%s8177_s5 + $0x2f8] sm:$0xff] }
  0xe8   :  { %624 = vmatprep.mubr.f32.mxu0 %v8183_v41 }
  0xe9   :  { %v6193_v57 = vpop.permute.xlu1 %865 }
  0xea   :  { %v6195_v58 = vpop.permute.xlu0 %1008  ;;  %1830 = vperm.xlu1 %5565, %v4996_v20  }
  0xeb   :  { %625 = vmatmul.mubr.f32.gmra.mrb[16].mxu0 %v4878_v56  ;;  %1825 = vperm.xlu0 %5564, %v4995_v61   ;;  %v5019_v61 = vld [vmem:[%s8178_s6 + $0x180] sm:$0xff] }
  0xec   :  { %630 = vmatprep.mubr.f32.mxu0 %v8183_v41 }
  0xed   :  { %v6207_v0 = vpop.permute.xlu1 %1013 }
  0xee   :  { %v6209_v2 = vpop.permute.xlu0 %870  ;;  %1692 = vperm.xlu1 %5565, %v4982_v62   ;;  %v5022_v62 = vld [vmem:[%s8178_s6 + $0x198] sm:$0xff] }
  0xef   :  { %631 = vmatmul.mubr.f32.gmra.mrb[18].mxu0 %v4879_v63  ;;  %1687 = vperm.xlu0 %5564, %v4981_v3   ;;  %v5021_v3 = vld [vmem:[%s8178_s6 + $0x190] sm:$0xff] }
  0xf0   :  { %636 = vmatprep.mubr.f32.mxu0 %v8183_v41 }
  0xf1   :  { %v6221_v9 = vpop.permute.xlu1 %875 }
  0xf2   :  { %v6223_v13 = vpop.permute.xlu0 %1018  ;;  %1840 = vperm.xlu1 %5565, %v4998_v4  }
  0xf3   :  { %637 = vmatmul.mubr.f32.gmra.mrb[20].mxu0 %v4880_v8  ;;  %1835 = vperm.xlu0 %5564, %v4997_v14   ;;  %v5024_v8 = vld [vmem:[%s8178_s6 + $0x1a8] sm:$0xff] }
  0xf4   :  { %642 = vmatprep.mubr.f32.mxu0 %v8183_v41 }
  0xf5   :  { %v6235_v21 = vpop.permute.xlu1 %1023 }
  0xf6   :  { %v6237_v24 = vpop.permute.xlu0 %880  ;;  %1702 = vperm.xlu1 %5565, %v4984_v17   ;;  %v5023_v17 = vld [vmem:[%s8178_s6 + $0x1a0] sm:$0xff] }
  0xf7   :  { %643 = vmatmul.mubr.f32.gmra.mrb[22].mxu0 %v4881_v18  ;;  %1697 = vperm.xlu0 %5564, %v4983_v25   ;;  %v5026_v25 = vld [vmem:[%s8178_s6 + $0x1b8] sm:$0xff] }
  0xf8   :  { %648 = vmatprep.mubr.f32.mxu0 %v8183_v41 }
  0xf9   :  { %v6249_v30 = vpop.permute.xlu1 %885 }
  0xfa   :  { %v6251_v31 = vpop.permute.xlu0 %1028  ;;  %1850 = vperm.xlu1 %5565, %v5000_v26   ;;  %v5025_v26 = vld [vmem:[%s8178_s6 + $0x1b0] sm:$0xff] }
  0xfb   :  { %649 = vmatmul.mubr.f32.gmra.mrb[24].mxu0 %v4882_v29  ;;  %1845 = vperm.xlu0 %5564, %v4999_v34  }
  0xfc   :  { %654 = vmatprep.mubr.f32.mxu0 %v8183_v41 }
  0xfd   :  { %v6263_v39 = vpop.permute.xlu1 %1033 }
  0xfe   :  { %v6265_v40 = vpop.permute.xlu0 %890  ;;  %1712 = vperm.xlu1 %5565, %v4986_v35   ;;  %v5028_v35 = vld [vmem:[%s8178_s6 + $0x1c8] sm:$0xff] }
  0xff   :  { %655 = vmatmul.mubr.f32.gmra.mrb[26].mxu0 %v4883_v36  ;;  %1707 = vperm.xlu0 %5564, %v4985_v42   ;;  %v5027_v36 = vld [vmem:[%s8178_s6 + $0x1c0] sm:$0xff] }
 0x100   :  { %660 = vmatprep.mubr.f32.mxu0 %v8183_v41 }
 0x101   :  { %v6277_v47 = vpop.permute.xlu1 %895 }
 0x102   :  { %v6279_v50 = vpop.permute.xlu0 %1038  ;;  %1860 = vperm.xlu1 %5565, %v5002_v45  }
 0x103   :  { %661 = vmatmul.mubr.f32.gmra.mrb[28].mxu0 %v4884_v46  ;;  %1855 = vperm.xlu0 %5564, %v5001_v51   ;;  %v5030_v46 = vld [vmem:[%s8178_s6 + $0x1d8] sm:$0xff]  ;;  %v5029_v51 = vld [vmem:[%s8178_s6 + $0x1d0] sm:$0xff] }
 0x104   :  { %666 = vmatprep.mubr.f32.mxu0 %v8183_v41 }
 0x105   :  { %v6291_v20 = vpop.permute.xlu1 %1043 }
 0x106   :  { %v6293_v56 = vpop.permute.xlu0 %900  ;;  %2000 = vperm.xlu1 %5565, %v5020_v52  }
 0x107   :  { %667 = vmatmul.mubr.f32.gmra.mrb[30].mxu0 %v4885_v19  ;;  %1995 = vperm.xlu0 %5564, %v5019_v61   ;;  %v5032_v61 = vld [vmem:[%s8178_s6 + $0x1e8] sm:$0xff] }
 0x108   :  { %1589 = vmatprep.mubr.f32.mxu0 %v8183_v41  ;;  %v5039_v41 = vld [vmem:[%s8175_s3 + $0x110] sm:$0xff] }
 0x109   :  { %v6302_v63 = vpop.permute.xlu1 %905 }
 0x10a   :  { %v6307_v4 = vpop.permute.xlu0 %1048  ;;  %2010 = vperm.xlu1 %5565, %v5022_v62   ;;  %v5031_v62 = vld [vmem:[%s8178_s6 + $0x1e0] sm:$0xff] }
 0x10b   :  { %2005 = vperm.xlu0 %5564, %v5021_v3  }
 0x10d   :  { %v6312_v14 = vpop.permute.xlu1 %1053 }
 0x10e   :  { %v6317_v18 = vpop.permute.xlu0 %910  ;;  %2020 = vperm.xlu1 %5565, %v5024_v8  }
 0x10f   :  { %2015 = vperm.xlu0 %5564, %v5023_v17   ;;  %v5034_v17 = vld [vmem:[%s8178_s6 + $0x1f8] sm:$0xff] }
 0x111   :  { %v6325_v29 = vpop.permute.xlu1 %915 }
 0x112   :  { %v6327_v34 = vpop.permute.xlu0 %1058  ;;  %2030 = vperm.xlu1 %5565, %v5026_v25   ;;  %v5033_v25 = vld [vmem:[%s8178_s6 + $0x1f0] sm:$0xff] }
 0x113   :  { %2025 = vperm.xlu0 %5564, %v5025_v26  }
 0x115   :  { %v6335_v42 = vpop.permute.xlu1 %1063 }
 0x116   :  { %v6337_v45 = vpop.permute.xlu0 %920  ;;  %2040 = vperm.xlu1 %5565, %v5028_v35  }
 0x117   :  { %2035 = vperm.xlu0 %5564, %v5027_v36   ;;  %v5037_v36 = vld [vmem:[%s8175_s3 + $0x100] sm:$0xff] }
 0x119   :  { %v6345_v52 = vpop.permute.xlu1 %925 }
 0x11a   :  { %8314 = vst [vmem:[#allocation11_spill] sm:$0xff] %v6345_v52  ;;  %v6347_v19 = vpop.permute.xlu0 %1068  ;;  %2050 = vperm.xlu1 %5565, %v5030_v46   ;;  %v5036_v46 = vld [vmem:[%s8180_s8 + $0x6] sm:$0x3] }
 0x11b   :  { %8315 = vst [vmem:[#allocation12_spill] sm:$0xff] %v6347_v19  ;;  %2045 = vperm.xlu0 %5564, %v5029_v51  }
 0x11d   :  { %v6355_v3 = vpop.permute.xlu1 %1073 }
 0x11e   :  { %8316 = vst [vmem:[#allocation13_spill] sm:$0xff] %v6355_v3  ;;  %v6357_v8 = vpop.permute.xlu0 %930  ;;  %2060 = vperm.xlu1 %5565, %v5032_v61  }
 0x11f   :  { %8317 = vst [vmem:[#allocation14_spill] sm:$0xff] %v6357_v8  ;;  %2055 = vperm.xlu0 %5564, %v5031_v62   ;;  %v5053_v62 = vld [vmem:[%s8176_s4 + $0x100] sm:$0xff] }
 0x121   :  { %v6365_v26 = vpop.permute.xlu1 %1213 }
 0x122   :  { %8318 = vst [vmem:[#allocation15_spill] sm:$0xff] %v6365_v26  ;;  %v6367_v35 = vpop.permute.xlu0 %1078  ;;  %2070 = vperm.xlu1 %5565, %v5034_v17   ;;  %v5038_v17 = vld [vmem:[%s8175_s3 + $0x108] sm:$0xff] }
 0x123   :  { %8319 = vst [vmem:[#allocation16_spill] sm:$0xff] %v6367_v35  ;;  %2065 = vperm.xlu0 %5564, %v5033_v25  }
 0x125   :  { %v6375_v51 = vpop.permute.xlu1 %1223 }
 0x126   :  { %8320 = vst [vmem:[#allocation17_spill] sm:$0xff] %v6375_v51  ;;  %v6377_v61 = vpop.permute.xlu0 %1218  ;;  %2418 = vperm.xlu1 %5565, %v5037_v36   ;;  %v5054_v36 = vld [vmem:[%s8176_s4 + $0x108] sm:$0xff] }
 0x127   :  { %8321 = vst [vmem:[#allocation18_spill] sm:$0xff] %v6377_v61  ;;  %2304 = vperm.xlu0 %5564, %v5036_v46  }
 0x129   :  { %v6385_v25 = vpop.permute.xlu1 %1233 }
 0x12a   :  { %8322 = vst [vmem:[#allocation19_spill] sm:$0xff] %v6385_v25  ;;  %v6387_v1 = vpop.permute.xlu0 %1228  ;;  %2566 = vperm.xlu1 %5565, %v5053_v62   ;;  %v5040_v62 = vld [vmem:[%s8175_s3 + $0x118] sm:$0xff] }
 0x12b   :  { %8323 = vst [vmem:[#allocation20_spill] sm:$0xff] %v6387_v1  ;;  %2423 = vperm.xlu0 %5564, %v5038_v17  }
 0x12d   :  { %v6395_v46 = vpop.permute.xlu1 %1243 }
 0x12e   :  { %8324 = vst [vmem:[#allocation21_spill] sm:$0xff] %v6395_v46  ;;  %v6397_v54 = vpop.permute.xlu0 %1238  ;;  %2428 = vperm.xlu1 %5565, %v5039_v41   ;;  %v5041_v46 = vld [vmem:[%s8175_s3 + $0x120] sm:$0xff]  ;;  %v5056_v41 = vld [vmem:[%s8176_s4 + $0x118] sm:$0xff] }
 0x12f   :  { %8325 = vst [vmem:[#allocation22_spill] sm:$0xff] %v6397_v54  ;;  %2571 = vperm.xlu0 %5564, %v5054_v36  }
 0x131   :  { %v6405_v17 = vpop.permute.xlu1 %1253 }
 0x132   :  { %8326 = vst [vmem:[#allocation23_spill] sm:$0xff] %v6405_v17  ;;  %v6407_v10 = vpop.permute.xlu0 %1248  ;;  %2576 = vperm.xlu1 %5565, %v5055_v11   ;;  %v5057_v17 = vld [vmem:[%s8176_s4 + $0x120] sm:$0xff]  ;;  %v5042_v11 = vld [vmem:[%s8175_s3 + $0x128] sm:$0xff] }
 0x133   :  { %8327 = vst [vmem:[#allocation24_spill] sm:$0xff] %v6407_v10  ;;  %2433 = vperm.xlu0 %5564, %v5040_v62  }
 0x135   :  { %v6415_v36 = vpop.permute.xlu1 %1263 }
 0x136   :  { %8328 = vst [vmem:[#allocation25_spill] sm:$0xff] %v6415_v36  ;;  %v6417_v54 = vpop.permute.xlu0 %1258  ;;  %2438 = vperm.xlu1 %5565, %v5041_v46   ;;  %v5043_v36 = vld [vmem:[%s8175_s3 + $0x130] sm:$0xff]  ;;  %v5058_v46 = vld [vmem:[%s8176_s4 + $0x128] sm:$0xff] }
 0x137   :  { %8329 = vst [vmem:[#allocation26_spill] sm:$0xff] %v6417_v54  ;;  %2581 = vperm.xlu0 %5564, %v5056_v41  }
 0x139   :  { %v6425_v62 = vpop.permute.xlu1 %1273 }
 0x13a   :  { %8330 = vst [vmem:[#allocation27_spill] sm:$0xff] %v6425_v62  ;;  %v6427_v10 = vpop.permute.xlu0 %1268  ;;  %2586 = vperm.xlu1 %5565, %v5057_v17   ;;  %v5059_v62 = vld [vmem:[%s8176_s4 + $0x130] sm:$0xff]  ;;  %v5044_v17 = vld [vmem:[%s8175_s3 + $0x138] sm:$0xff] }
 0x13b   :  { %8331 = vst [vmem:[#allocation28_spill] sm:$0xff] %v6427_v10  ;;  %2443 = vperm.xlu0 %5564, %v5042_v11  }
 0x13d   :  { %v6435_v41 = vpop.permute.xlu1 %1283 }
 0x13e   :  { %8332 = vst [vmem:[#allocation29_spill] sm:$0xff] %v6435_v41  ;;  %v6437_v54 = vpop.permute.xlu0 %1278  ;;  %2448 = vperm.xlu1 %5565, %v5043_v36   ;;  %v5045_v41 = vld [vmem:[%s8175_s3 + $0x140] sm:$0xff]  ;;  %v5060_v36 = vld [vmem:[%s8176_s4 + $0x138] sm:$0xff] }
 0x13f   :  { %8333 = vst [vmem:[#allocation30_spill] sm:$0xff] %v6437_v54  ;;  %2591 = vperm.xlu0 %5564, %v5058_v46  }
 0x141   :  { %v6445_v11 = vpop.permute.xlu1 %1522 }
 0x142   :  { %8334 = vst [vmem:[#allocation31_spill] sm:$0xff] %v6445_v11  ;;  %v6447_v10 = vpop.permute.xlu0 %1288  ;;  %2596 = vperm.xlu1 %5565, %v5059_v62   ;;  %v5061_v11 = vld [vmem:[%s8176_s4 + $0x140] sm:$0xff]  ;;  %v5046_v62 = vld [vmem:[%s8175_s3 + $0x148] sm:$0xff] }
 0x143   :  { %8335 = vst [vmem:[#allocation32_spill] sm:$0xff] %v6447_v10  ;;  %2453 = vperm.xlu0 %5564, %v5044_v17  }
 0x145   :  { %v6455_v46 = vpop.permute.xlu1 %1642 }
 0x146   :  { %8336 = vst [vmem:[#allocation33_spill] sm:$0xff] %v6455_v46  ;;  %v6457_v54 = vpop.permute.xlu0 %1637  ;;  %2458 = vperm.xlu1 %5565, %v5045_v41   ;;  %v5047_v46 = vld [vmem:[%s8175_s3 + $0x150] sm:$0xff]  ;;  %v5062_v41 = vld [vmem:[%s8176_s4 + $0x148] sm:$0xff] }
 0x147   :  { %8337 = vst [vmem:[#allocation34_spill] sm:$0xff] %v6457_v54  ;;  %2601 = vperm.xlu0 %5564, %v5060_v36  }
 0x149   :  { %v6465_v17 = vpop.permute.xlu1 %1790 }
 0x14a   :  { %8338 = vst [vmem:[#allocation35_spill] sm:$0xff] %v6465_v17  ;;  %v6467_v10 = vpop.permute.xlu0 %1785  ;;  %2606 = vperm.xlu1 %5565, %v5061_v11   ;;  %v5063_v17 = vld [vmem:[%s8176_s4 + $0x150] sm:$0xff]  ;;  %v5048_v11 = vld [vmem:[%s8175_s3 + $0x158] sm:$0xff] }
 0x14b   :  { %8339 = vst [vmem:[#allocation36_spill] sm:$0xff] %v6467_v10  ;;  %2463 = vperm.xlu0 %5564, %v5046_v62  }
 0x14d   :  { %v6475_v36 = vpop.permute.xlu1 %1652 }
 0x14e   :  { %8340 = vst [vmem:[#allocation37_spill] sm:$0xff] %v6475_v36  ;;  %v6477_v54 = vpop.permute.xlu0 %1647  ;;  %2468 = vperm.xlu1 %5565, %v5047_v46   ;;  %v5049_v36 = vld [vmem:[%s8175_s3 + $0x160] sm:$0xff]  ;;  %v5064_v46 = vld [vmem:[%s8176_s4 + $0x158] sm:$0xff] }
 0x14f   :  { %8341 = vst [vmem:[#allocation38_spill] sm:$0xff] %v6477_v54  ;;  %2611 = vperm.xlu0 %5564, %v5062_v41  }
 0x151   :  { %v6485_v62 = vpop.permute.xlu1 %1800 }
 0x152   :  { %8342 = vst [vmem:[#allocation39_spill] sm:$0xff] %v6485_v62  ;;  %v6487_v10 = vpop.permute.xlu0 %1795  ;;  %2616 = vperm.xlu1 %5565, %v5063_v17   ;;  %v5065_v62 = vld [vmem:[%s8176_s4 + $0x160] sm:$0xff]  ;;  %v5050_v17 = vld [vmem:[%s8175_s3 + $0x168] sm:$0xff] }
 0x153   :  { %8343 = vst [vmem:[#allocation40_spill] sm:$0xff] %v6487_v10  ;;  %2473 = vperm.xlu0 %5564, %v5048_v11  }
 0x155   :  { %v6495_v41 = vpop.permute.xlu1 %1662 }
 0x156   :  { %8344 = vst [vmem:[#allocation41_spill] sm:$0xff] %v6495_v41  ;;  %v6497_v54 = vpop.permute.xlu0 %1657  ;;  %2478 = vperm.xlu1 %5565, %v5049_v36   ;;  %v5051_v41 = vld [vmem:[%s8175_s3 + $0x170] sm:$0xff]  ;;  %v5066_v36 = vld [vmem:[%s8176_s4 + $0x168] sm:$0xff] }
 0x157   :  { %8345 = vst [vmem:[#allocation42_spill] sm:$0xff] %v6497_v54  ;;  %2621 = vperm.xlu0 %5564, %v5064_v46  }
 0x159   :  { %v6505_v11 = vpop.permute.xlu1 %1810 }
 0x15a   :  { %8346 = vst [vmem:[#allocation43_spill] sm:$0xff] %v6505_v11  ;;  %v6507_v10 = vpop.permute.xlu0 %1805  ;;  %2626 = vperm.xlu1 %5565, %v5065_v62   ;;  %v5067_v11 = vld [vmem:[%s8176_s4 + $0x170] sm:$0xff]  ;;  %v5052_v62 = vld [vmem:[%s8175_s3 + $0x178] sm:$0xff] }
 0x15b   :  { %8347 = vst [vmem:[#allocation44_spill] sm:$0xff] %v6507_v10  ;;  %2483 = vperm.xlu0 %5564, %v5050_v17  }
 0x15d   :  { %v6515_v46 = vpop.permute.xlu1 %1672 }
 0x15e   :  { %8348 = vst [vmem:[#allocation45_spill] sm:$0xff] %v6515_v46  ;;  %v6517_v54 = vpop.permute.xlu0 %1667  ;;  %2488 = vperm.xlu1 %5565, %v5051_v41   ;;  %v5085_v46 = vld [vmem:[%s8178_s6 + $0x100] sm:$0xff]  ;;  %v5068_v41 = vld [vmem:[%s8176_s4 + $0x178] sm:$0xff] }
 0x15f   :  { %8349 = vst [vmem:[#allocation46_spill] sm:$0xff] %v6517_v54  ;;  %2631 = vperm.xlu0 %5564, %v5066_v36  }
 0x161   :  { %v6525_v17 = vpop.permute.xlu1 %1820 }
 0x162   :  { %8350 = vst [vmem:[#allocation47_spill] sm:$0xff] %v6525_v17  ;;  %v6527_v10 = vpop.permute.xlu0 %1815  ;;  %2636 = vperm.xlu1 %5565, %v5067_v11   ;;  %v5087_v17 = vld [vmem:[%s8178_s6 + $0x110] sm:$0xff]  ;;  %v5086_v11 = vld [vmem:[%s8178_s6 + $0x108] sm:$0xff] }
 0x163   :  { %8351 = vst [vmem:[#allocation48_spill] sm:$0xff] %v6527_v10  ;;  %2493 = vperm.xlu0 %5564, %v5052_v62  }
 0x165   :  { %v6535_v36 = vpop.permute.xlu1 %1682 }
 0x166   :  { %8352 = vst [vmem:[#allocation49_spill] sm:$0xff] %v6535_v36  ;;  %v6537_v54 = vpop.permute.xlu0 %1677  ;;  %2776 = vperm.xlu1 %5565, %v5085_v46   ;;  %v5089_v36 = vld [vmem:[%s8178_s6 + $0x120] sm:$0xff]  ;;  %v5088_v46 = vld [vmem:[%s8178_s6 + $0x118] sm:$0xff] }
 0x167   :  { %8353 = vst [vmem:[#allocation50_spill] sm:$0xff] %v6537_v54  ;;  %2641 = vperm.xlu0 %5564, %v5068_v41  }
 0x169   :  { %v6545_v62 = vpop.permute.xlu1 %1830 }
 0x16a   :  { %8354 = vst [vmem:[#allocation51_spill] sm:$0xff] %v6545_v62  ;;  %v6547_v10 = vpop.permute.xlu0 %1825  ;;  %2786 = vperm.xlu1 %5565, %v5087_v17   ;;  %v5091_v62 = vld [vmem:[%s8178_s6 + $0x130] sm:$0xff]  ;;  %v5090_v17 = vld [vmem:[%s8178_s6 + $0x128] sm:$0xff] }
 0x16b   :  { %8355 = vst [vmem:[#allocation52_spill] sm:$0xff] %v6547_v10  ;;  %2781 = vperm.xlu0 %5564, %v5086_v11  }
 0x16d   :  { %v6555_v41 = vpop.permute.xlu1 %1692 }
 0x16e   :  { %8356 = vst [vmem:[#allocation53_spill] sm:$0xff] %v6555_v41  ;;  %v6557_v54 = vpop.permute.xlu0 %1687  ;;  %2796 = vperm.xlu1 %5565, %v5089_v36   ;;  %v5093_v41 = vld [vmem:[%s8178_s6 + $0x140] sm:$0xff]  ;;  %v5092_v36 = vld [vmem:[%s8178_s6 + $0x138] sm:$0xff] }
 0x16f   :  { %8357 = vst [vmem:[#allocation54_spill] sm:$0xff] %v6557_v54  ;;  %2791 = vperm.xlu0 %5564, %v5088_v46  }
 0x171   :  { %v6565_v11 = vpop.permute.xlu1 %1840 }
 0x172   :  { %8358 = vst [vmem:[#allocation55_spill] sm:$0xff] %v6565_v11  ;;  %v6567_v10 = vpop.permute.xlu0 %1835  ;;  %2806 = vperm.xlu1 %5565, %v5091_v62   ;;  %v5095_v11 = vld [vmem:[%s8178_s6 + $0x150] sm:$0xff]  ;;  %v5094_v62 = vld [vmem:[%s8178_s6 + $0x148] sm:$0xff] }
 0x173   :  { %8359 = vst [vmem:[#allocation56_spill] sm:$0xff] %v6567_v10  ;;  %2801 = vperm.xlu0 %5564, %v5090_v17  }
 0x175   :  { %v6575_v46 = vpop.permute.xlu1 %1702 }
 0x176   :  { %8360 = vst [vmem:[#allocation57_spill] sm:$0xff] %v6575_v46  ;;  %v6577_v54 = vpop.permute.xlu0 %1697  ;;  %2816 = vperm.xlu1 %5565, %v5093_v41   ;;  %v5097_v46 = vld [vmem:[%s8178_s6 + $0x160] sm:$0xff]  ;;  %v5096_v41 = vld [vmem:[%s8178_s6 + $0x158] sm:$0xff] }
 0x177   :  { %8361 = vst [vmem:[#allocation58_spill] sm:$0xff] %v6577_v54  ;;  %2811 = vperm.xlu0 %5564, %v5092_v36  }
 0x179   :  { %v6585_v17 = vpop.permute.xlu1 %1850 }
 0x17a   :  { %8362 = vst [vmem:[#allocation59_spill] sm:$0xff] %v6585_v17  ;;  %v6587_v10 = vpop.permute.xlu0 %1845  ;;  %2826 = vperm.xlu1 %5565, %v5095_v11   ;;  %v5099_v17 = vld [vmem:[%s8178_s6 + $0x170] sm:$0xff]  ;;  %v5098_v11 = vld [vmem:[%s8178_s6 + $0x168] sm:$0xff] }
 0x17b   :  { %8363 = vst [vmem:[#allocation60_spill] sm:$0xff] %v6587_v10  ;;  %2821 = vperm.xlu0 %5564, %v5094_v62   ;;  %v5102_v62 = vld [vmem:[%s8180_s8 + $0x4] sm:$0x3] }
 0x17d   :  { %v6595_v36 = vpop.permute.xlu1 %1712 }
 0x17e   :  { %8364 = vst [vmem:[#allocation61_spill] sm:$0xff] %v6595_v36  ;;  %2836 = vperm.xlu1 %5565, %v5097_v46   ;;  %v6597_v54 = vpop.permute.xlu0 %1707  ;;  %v5100_v46 = vld [vmem:[%s8178_s6 + $0x178] sm:$0xff]  ;;  %v5105_v36 = vld [vmem:[%s8175_s3 + $0x88] sm:$0xff] }
 0x17f   :  { %8365 = vst [vmem:[#allocation62_spill] sm:$0xff] %v6597_v54  ;;  %2831 = vperm.xlu0 %5564, %v5096_v41  }
 0x181   :  { %v6608_v10 = vpop.permute.xlu1 %1860 }
 0x182   :  { %2846 = vperm.xlu1 %5565, %v5099_v17   ;;  %8366 = vst [vmem:[#allocation63_spill] sm:$0xff] %v6608_v10  ;;  %v6613_v41 = vpop.permute.xlu0 %1855  ;;  %v5104_v17 = vld [vmem:[%s8175_s3 + $0x80] sm:$0xff] }
 0x183   :  { %2841 = vperm.xlu0 %5564, %v5098_v11   ;;  %8367 = vst [vmem:[#allocation64_spill] sm:$0xff] %v6613_v41  ;;  %v5121_v41 = vld [vmem:[%s8176_s4 + $0x88] sm:$0xff] }
 0x185   :  { %v6621_v11 = vpop.permute.xlu1 %2000 }
 0x186   :  { %3085 = vperm.xlu1 %5565, %v5102_v62   ;;  %8368 = vst [vmem:[#allocation65_spill] sm:$0xff] %v6621_v11  ;;  %v6623_v10 = vpop.permute.xlu0 %1995  ;;  %v5120_v62 = vld [vmem:[%s8176_s4 + $0x80] sm:$0xff]  ;;  %v5123_v11 = vld [vmem:[%s8176_s4 + $0x98] sm:$0xff] }
 0x187   :  { %2851 = vperm.xlu0 %5564, %v5100_v46   ;;  %8369 = vst [vmem:[#allocation66_spill] sm:$0xff] %v6623_v10  ;;  %v5107_v46 = vld [vmem:[%s8175_s3 + $0x98] sm:$0xff] }
 0x189   :  { %v6634_v54 = vpop.permute.xlu1 %2010 }
 0x18a   :  { %3205 = vperm.xlu1 %5565, %v5105_v36   ;;  %8370 = vst [vmem:[#allocation67_spill] sm:$0xff] %v6634_v54  ;;  %v5106_v36 = vld [vmem:[%s8175_s3 + $0x90] sm:$0xff] }
 0x18b   :  { %3200 = vperm.xlu0 %5564, %v5104_v17   ;;  %v6639_v17 = vpop.permute.xlu0 %2005 }
 0x18c   :  { %8371 = vst [vmem:[#allocation68_spill] sm:$0xff] %v6639_v17  ;;  %v5109_v17 = vld [vmem:[%s8175_s3 + $0xa8] sm:$0xff] }
 0x18e   :  { %3353 = vperm.xlu1 %5565, %v5121_v41   ;;  %v5122_v41 = vld [vmem:[%s8176_s4 + $0x90] sm:$0xff] }
 0x18f   :  { %3348 = vperm.xlu0 %5564, %v5120_v62   ;;  %v6647_v62 = vpop.permute.xlu1 %2020  ;;  %v6649_v54 = vpop.permute.xlu0 %2015 }
 0x190   :  { %8372 = vst [vmem:[#allocation69_spill] sm:$0xff] %v6647_v62  ;;  %8373 = vst [vmem:[#allocation70_spill] sm:$0xff] %v6649_v54 }
 0x192   :  { %3215 = vperm.xlu1 %5565, %v5107_v46   ;;  %v5108_v46 = vld [vmem:[%s8175_s3 + $0xa0] sm:$0xff] }
 0x193   :  { %3210 = vperm.xlu0 %5564, %v5106_v36   ;;  %v5125_v36 = vld [vmem:[%s8176_s4 + $0xa8] sm:$0xff]  ;;  %v6660_v10 = vpop.permute.xlu1 %2030 }
 0x194   :  { %8374 = vst [vmem:[#allocation71_spill] sm:$0xff] %v6660_v10  ;;  %v5110_v10 = vld [vmem:[%s8175_s3 + $0xb0] sm:$0xff] }
 0x196   :  { %3363 = vperm.xlu1 %5565, %v5123_v11   ;;  %v5124_v11 = vld [vmem:[%s8176_s4 + $0xa0] sm:$0xff] }
 0x197   :  { %3358 = vperm.xlu0 %5564, %v5122_v41   ;;  %v6665_v41 = vpop.permute.xlu0 %2025  ;;  %v6675_v51 = vpop.permute.xlu1 %2040 }
 0x198   :  { %8375 = vst [vmem:[#allocation72_spill] sm:$0xff] %v6665_v41  ;;  %8376 = vst [vmem:[#allocation73_spill] sm:$0xff] %v6675_v51  ;;  %v5126_v51 = vld [vmem:[%s8176_s4 + $0xb0] sm:$0xff] }
 0x19a   :  { %3225 = vperm.xlu1 %5565, %v5109_v17  }
 0x19b   :  { %3220 = vperm.xlu0 %5564, %v5108_v46   ;;  %v5111_v46 = vld [vmem:[%s8175_s3 + $0xb8] sm:$0xff]  ;;  %v6692_v19 = vpop.permute.xlu1 %2050 }
 0x19c   :  { %8378 = vst [vmem:[#allocation75_spill] sm:$0xff] %v6692_v19  ;;  %v5115_v19 = vld [vmem:[%s8175_s3 + $0xd8] sm:$0xff] }
 0x19e   :  { %v578_v62 = vpop.f32.mrb[0].mxu0  ;;  %3373 = vperm.xlu1 %5565, %v5125_v36   ;;  %v6678_v36 = vpop.permute.xlu0 %2035 }
 0x19f   :  { %v579_v54 = vadd.f32 %v578_v62, %v6060_v60  ;;  %v580_v25 = vpop.f32.mrb[1].mxu0  ;;  %3368 = vperm.xlu0 %5564, %v5124_v11   ;;  %8377 = vst [vmem:[#allocation74_spill] sm:$0xff] %v6678_v36 }
 0x1a0   :  { %v581_v17 = vadd.f32 %v580_v25, %v6060_v60  ;;  %v5127_v25 = vld [vmem:[%s8176_s4 + $0xb8] sm:$0xff] }
 0x1a1   :  { %v673_v41 = vmul.f32 0.01, %v579_v54 }
 0x1a2   :  { %v584_v1 = vpop.f32.mrb[2].mxu0  ;;  %3235 = vperm.xlu1 %5565, %v5111_v46   ;;  %v674_v11 = vmul.f32 0.01, %v581_v17 }
 0x1a3   :  { %v585_v61 = vadd.f32 %v584_v1, %v6058_v59  ;;  %v586_v62 = vpop.f32.mrb[3].mxu0  ;;  %3230 = vperm.xlu0 %5564, %v5110_v10   ;;  %v705_v1 = vmax.f32 %v579_v54, %v673_v41  ;;  %v5112_v54 = vld [vmem:[%s8175_s3 + $0xc0] sm:$0xff] }
 0x1a4   :  { %v587_v60 = vadd.f32 %v586_v62, %v6058_v59  ;;  %v5113_v59 = vld [vmem:[%s8175_s3 + $0xc8] sm:$0xff]  ;;  %v706_v62 = vmax.f32 %v581_v17, %v674_v11 }
 0x1a5   :  { %v675_v26 = vmul.f32 0.01, %v585_v61  ;;  %v5129_v17 = vld [vmem:[%s8176_s4 + $0xc8] sm:$0xff] }
 0x1a6   :  { %v676_v35 = vmul.f32 0.01, %v587_v60  ;;  %v590_v3 = vpop.f32.mrb[4].mxu0  ;;  %3383 = vperm.xlu1 %5565, %v5127_v25  }
 0x1a7   :  { %v707_v46 = vmax.f32 %v585_v61, %v675_v26  ;;  %v591_v8 = vadd.f32 %v590_v3, %v6070_v7  ;;  %v592_v36 = vpop.f32.mrb[5].mxu0  ;;  %3378 = vperm.xlu0 %5564, %v5126_v51   ;;  %v6697_v61 = vpop.permute.xlu0 %2045 }
 0x1a8   :  { %v593_v10 = vadd.f32 %v592_v36, %v6070_v7  ;;  %v708_v52 = vmax.f32 %v587_v60, %v676_v35 }
 0x1a9   :  { %v5209_v26 = vpack.c.bf16 %v707_v46, %v705_v1  ;;  %v677_v51 = vmul.f32 0.01, %v591_v8  ;;  %v6707_v46 = vpop.permute.xlu1 %2060 }
 0x1aa   :  { %v596_v3 = vpop.f32.mrb[6].mxu0  ;;  %v5207_v41 = vpack.c.bf16 %v708_v52, %v706_v62  ;;  %3245 = vperm.xlu1 %5565, %v5113_v59   ;;  %v678_v25 = vmul.f32 0.01, %v593_v10  ;;  %v5128_v52 = vld [vmem:[%s8176_s4 + $0xc0] sm:$0xff] }
 0x1ab   :  { %v597_v7 = vadd.f32 %v596_v3, %v6068_v6  ;;  %v598_v36 = vpop.f32.mrb[7].mxu0  ;;  %3240 = vperm.xlu0 %5564, %v5112_v54   ;;  %v709_v59 = vmax.f32 %v591_v8, %v677_v51  ;;  %v6710_v3 = vpop.permute.xlu0 %2055  ;;  %v5114_v8 = vld [vmem:[%s8175_s3 + $0xd0] sm:$0xff] }
 0x1ac   :  { %v599_v35 = vadd.f32 %v598_v36, %v6068_v6  ;;  %5208 = vmatprep.subr.bf16.mxu1 %v5207_v41  ;;  %v710_v41 = vmax.f32 %v593_v10, %v678_v25 }
 0x1ad   :  { %v679_v11 = vmul.f32 0.01, %v597_v7  ;;  %5210 = vmatpush1.bf16.msra.mxu1 %v5209_v26 }
 0x1ae   :  { %v680_v60 = vmul.f32 0.01, %v599_v35  ;;  %v602_v1 = vpop.f32.mrb[8].mxu0  ;;  %3393 = vperm.xlu1 %5565, %v5129_v17  }
 0x1af   :  { %v711_v62 = vmax.f32 %v597_v7, %v679_v11  ;;  %v603_v54 = vadd.f32 %v602_v1, %v6083_v16  ;;  %v604_v6 = vpop.f32.mrb[9].mxu0  ;;  %3388 = vperm.xlu0 %5564, %v5128_v52   ;;  %v6724_v52 = vpop.permute.xlu1 %2070 }
 0x1b0   :  { %v712_v36 = vmax.f32 %v599_v35, %v680_v60  ;;  %v605_v26 = vadd.f32 %v604_v6, %v6083_v16  ;;  %v5131_v35 = vld [vmem:[%s8176_s4 + $0xd8] sm:$0xff]  ;;  %8379 = vst [vmem:[#allocation76_spill] sm:$0xff] %v6724_v52  ;;  %v5116_v52 = vld [vmem:[%s8175_s3 + $0xe0] sm:$0xff] }
 0x1b1   :  { %v5213_v51 = vpack.c.bf16 %v711_v62, %v709_v59  ;;  %v681_v17 = vmul.f32 0.01, %v603_v54  ;;  %v5130_v59 = vld [vmem:[%s8176_s4 + $0xd0] sm:$0xff]  ;;  %v6729_v62 = vpop.permute.xlu0 %2065 }
 0x1b2   :  { %v608_v7 = vpop.f32.mrb[10].mxu0  ;;  %v5211_v11 = vpack.c.bf16 %v712_v36, %v710_v41  ;;  %3255 = vperm.xlu1 %5565, %v5115_v19   ;;  %v682_v25 = vmul.f32 0.01, %v605_v26  ;;  %8380 = vst [vmem:[#allocation77_spill] sm:$0xff] %v6729_v62 }
 0x1b3   :  { %v609_v1 = vadd.f32 %v608_v7, %v6081_v15  ;;  %v610_v10 = vpop.f32.mrb[11].mxu0  ;;  %3250 = vperm.xlu0 %5564, %v5114_v8   ;;  %v713_v41 = vmax.f32 %v603_v54, %v681_v17 }
 0x1b4   :  { %v611_v16 = vadd.f32 %v610_v10, %v6081_v15  ;;  %5212 = vmatprep.subr.bf16.mxu1 %v5211_v11  ;;  %v714_v7 = vmax.f32 %v605_v26, %v682_v25 }
 0x1b5   :  { %v683_v60 = vmul.f32 0.01, %v609_v1  ;;  %5214 = vmatpush1.bf16.msra.mxu1 %v5213_v51  ;;  %v5117_v51 = vld [vmem:[%s8175_s3 + $0xe8] sm:$0xff] }
 0x1b6   :  { %v684_v19 = vmul.f32 0.01, %v611_v16  ;;  %v614_v6 = vpop.f32.mrb[12].mxu0  ;;  %3403 = vperm.xlu1 %5565, %v5131_v35  }
 0x1b7   :  { %v715_v36 = vmax.f32 %v609_v1, %v683_v60  ;;  %v615_v15 = vadd.f32 %v614_v6, %v6097_v23  ;;  %v616_v8 = vpop.f32.mrb[13].mxu0  ;;  %3398 = vperm.xlu0 %5564, %v5130_v59   ;;  %v6739_v1 = vpop.permute.xlu1 %2418  ;;  %v5133_v59 = vld [vmem:[%s8176_s4 + $0xe8] sm:$0xff]  ;;  %v5132_v6 = vld [vmem:[%s8176_s4 + $0xe0] sm:$0xff] }
 0x1b8   :  { %v716_v11 = vmax.f32 %v611_v16, %v684_v19  ;;  %v617_v10 = vadd.f32 %v616_v8, %v6097_v23  ;;  %8381 = vst [vmem:[#allocation78_spill] sm:$0xff] %v6739_v1  ;;  %v6742_v16 = vpop.permute.xlu0 %2304 }
 0x1b9   :  { %v5217_v62 = vpack.c.bf16 %v715_v36, %v713_v41  ;;  %v685_v35 = vmul.f32 0.01, %v615_v15 }
 0x1ba   :  { %v620_v54 = vpop.f32.mrb[14].mxu0  ;;  %v5215_v17 = vpack.c.bf16 %v716_v11, %v714_v7  ;;  %3265 = vperm.xlu1 %5565, %v5117_v51   ;;  %v686_v23 = vmul.f32 0.01, %v617_v10 }
 0x1bb   :  { %v621_v26 = vadd.f32 %v620_v54, %v6095_v22  ;;  %v622_v25 = vpop.f32.mrb[15].mxu0  ;;  %3260 = vperm.xlu0 %5564, %v5116_v52   ;;  %v717_v8 = vmax.f32 %v615_v15, %v685_v35  ;;  %v5118_v15 = vld [vmem:[%s8175_s3 + $0xf0] sm:$0xff] }
 0x1bc   :  { %v623_v60 = vadd.f32 %v622_v25, %v6095_v22  ;;  %5216 = vmatprep.subr.bf16.mxu1 %v5215_v17  ;;  %v718_v22 = vmax.f32 %v617_v10, %v686_v23  ;;  %v6756_v17 = vpop.permute.xlu1 %2566 }
 0x1bd   :  { %v687_v19 = vmul.f32 0.01, %v621_v26  ;;  %5218 = vmatpush1.bf16.msra.mxu1 %v5217_v62  ;;  %v5119_v62 = vld [vmem:[%s8175_s3 + $0xf8] sm:$0xff]  ;;  %8382 = vst [vmem:[#allocation79_spill] sm:$0xff] %v6756_v17 }
 0x1be   :  { %v688_v41 = vmul.f32 0.01, %v623_v60  ;;  %v626_v36 = vpop.f32.mrb[16].mxu0  ;;  %3413 = vperm.xlu1 %5565, %v5133_v59  }
 0x1bf   :  { %v719_v7 = vmax.f32 %v621_v26, %v687_v19  ;;  %v627_v11 = vadd.f32 %v626_v36, %v6111_v28  ;;  %v628_v52 = vpop.f32.mrb[17].mxu0  ;;  %3408 = vperm.xlu0 %5564, %v5132_v6   ;;  %v6761_v26 = vpop.permute.xlu0 %2423  ;;  %v5135_v6 = vld [vmem:[%s8176_s4 + $0xf8] sm:$0xff]  ;;  %v5134_v36 = vld [vmem:[%s8176_s4 + $0xf0] sm:$0xff] }
 0x1c0   :  { %v720_v51 = vmax.f32 %v623_v60, %v688_v41  ;;  %v629_v54 = vadd.f32 %v628_v52, %v6111_v28  ;;  %8383 = vst [vmem:[#allocation80_spill] sm:$0xff] %v6761_v26  ;;  %v6771_v52 = vpop.permute.xlu1 %2428 }
 0x1c1   :  { %v5221_v35 = vpack.c.bf16 %v719_v7, %v717_v8  ;;  %v689_v10 = vmul.f32 0.01, %v627_v11  ;;  %8384 = vst [vmem:[#allocation81_spill] sm:$0xff] %v6771_v52 }
 0x1c2   :  { %v632_v25 = vpop.f32.mrb[18].mxu0  ;;  %v5219_v59 = vpack.c.bf16 %v720_v51, %v718_v22  ;;  %3275 = vperm.xlu1 %5565, %v5119_v62   ;;  %v690_v60 = vmul.f32 0.01, %v629_v54 }
 0x1c3   :  { %v633_v23 = vadd.f32 %v632_v25, %v6109_v27  ;;  %v634_v28 = vpop.f32.mrb[19].mxu0  ;;  %3270 = vperm.xlu0 %5564, %v5118_v15   ;;  %v721_v22 = vmax.f32 %v627_v11, %v689_v10  ;;  %v6774_v15 = vpop.permute.xlu0 %2571  ;;  %v5152_v11 = vld [vmem:[%s8178_s6 + $0x80] sm:$0xff] }
 0x1c4   :  { %v635_v19 = vadd.f32 %v634_v28, %v6109_v27  ;;  %5220 = vmatprep.subr.bf16.mxu1 %v5219_v59  ;;  %8385 = vst [vmem:[#allocation82_spill] sm:$0xff] %v6774_v15  ;;  %v722_v25 = vmax.f32 %v629_v54, %v690_v60  ;;  %v5153_v28 = vld [vmem:[%s8178_s6 + $0x88] sm:$0xff] }
 0x1c5   :  { %v691_v41 = vmul.f32 0.01, %v633_v23  ;;  %5222 = vmatpush1.bf16.msra.mxu1 %v5221_v35 }
 0x1c6   :  { %v692_v8 = vmul.f32 0.01, %v635_v19  ;;  %v638_v7 = vpop.f32.mrb[20].mxu0  ;;  %3423 = vperm.xlu1 %5565, %v5135_v6  }
 0x1c7   :  { %v723_v51 = vmax.f32 %v633_v23, %v691_v41  ;;  %v639_v62 = vadd.f32 %v638_v7, %v6125_v33  ;;  %v640_v27 = vpop.f32.mrb[21].mxu0  ;;  %3418 = vperm.xlu0 %5564, %v5134_v36   ;;  %v6788_v36 = vpop.permute.xlu1 %2576 }
 0x1c8   :  { %v724_v59 = vmax.f32 %v635_v19, %v692_v8  ;;  %v641_v35 = vadd.f32 %v640_v27, %v6125_v33  ;;  %v5155_v19 = vld [vmem:[%s8178_s6 + $0x98] sm:$0xff]  ;;  %8386 = vst [vmem:[#allocation83_spill] sm:$0xff] %v6788_v36  ;;  %v5156_v36 = vld [vmem:[%s8178_s6 + $0xa0] sm:$0xff] }
 0x1c9   :  { %v5225_v10 = vpack.c.bf16 %v723_v51, %v721_v22  ;;  %v693_v6 = vmul.f32 0.01, %v639_v62  ;;  %v5154_v22 = vld [vmem:[%s8178_s6 + $0x90] sm:$0xff]  ;;  %v6793_v51 = vpop.permute.xlu0 %2433 }
 0x1ca   :  { %v644_v23 = vpop.f32.mrb[22].mxu0  ;;  %v5223_v41 = vpack.c.bf16 %v724_v59, %v722_v25  ;;  %3563 = vperm.xlu1 %5565, %v5153_v28   ;;  %v694_v60 = vmul.f32 0.01, %v641_v35  ;;  %8387 = vst [vmem:[#allocation84_spill] sm:$0xff] %v6793_v51 }
 0x1cb   :  { %v645_v7 = vadd.f32 %v644_v23, %v6123_v32  ;;  %v646_v54 = vpop.f32.mrb[23].mxu0  ;;  %3558 = vperm.xlu0 %5564, %v5152_v11   ;;  %v725_v59 = vmax.f32 %v639_v62, %v693_v6 }
 0x1cc   :  { %v647_v33 = vadd.f32 %v646_v54, %v6123_v32  ;;  %5224 = vmatprep.subr.bf16.mxu1 %v5223_v41  ;;  %v726_v23 = vmax.f32 %v641_v35, %v694_v60 }
 0x1cd   :  { %v695_v8 = vmul.f32 0.01, %v645_v7  ;;  %5226 = vmatpush1.bf16.msra.mxu1 %v5225_v10  ;;  %v5157_v10 = vld [vmem:[%s8178_s6 + $0xa8] sm:$0xff] }
 0x1ce   :  { %v696_v27 = vmul.f32 0.01, %v647_v33  ;;  %v650_v25 = vpop.f32.mrb[24].mxu0  ;;  %3573 = vperm.xlu1 %5565, %v5155_v19  }
 0x1cf   :  { %v727_v28 = vmax.f32 %v645_v7, %v695_v8  ;;  %v651_v32 = vadd.f32 %v650_v25, %v6139_v38  ;;  %v652_v11 = vpop.f32.mrb[25].mxu0  ;;  %3568 = vperm.xlu0 %5564, %v5154_v22   ;;  %v6803_v7 = vpop.permute.xlu1 %2438  ;;  %v5159_v22 = vld [vmem:[%s8178_s6 + $0xb8] sm:$0xff]  ;;  %v5158_v25 = vld [vmem:[%s8178_s6 + $0xb0] sm:$0xff] }
 0x1d0   :  { %v728_v41 = vmax.f32 %v647_v33, %v696_v27  ;;  %v653_v54 = vadd.f32 %v652_v11, %v6139_v38  ;;  %8388 = vst [vmem:[#allocation85_spill] sm:$0xff] %v6803_v7  ;;  %v6806_v33 = vpop.permute.xlu0 %2581 }
 0x1d1   :  { %v5229_v15 = vpack.c.bf16 %v727_v28, %v725_v59  ;;  %v697_v19 = vmul.f32 0.01, %v651_v32  ;;  %8389 = vst [vmem:[#allocation86_spill] sm:$0xff] %v6806_v33 }
 0x1d2   :  { %v656_v62 = vpop.f32.mrb[26].mxu0  ;;  %v5227_v6 = vpack.c.bf16 %v728_v41, %v726_v23  ;;  %3583 = vperm.xlu1 %5565, %v5157_v10   ;;  %v698_v38 = vmul.f32 0.01, %v653_v54 }
 0x1d3   :  { %v657_v35 = vadd.f32 %v656_v62, %v6137_v37  ;;  %v658_v60 = vpop.f32.mrb[27].mxu0  ;;  %3578 = vperm.xlu0 %5564, %v5156_v36   ;;  %v729_v11 = vmax.f32 %v651_v32, %v697_v19  ;;  %v5160_v32 = vld [vmem:[%s8178_s6 + $0xc0] sm:$0xff] }
 0x1d4   :  { %v659_v8 = vadd.f32 %v658_v60, %v6137_v37  ;;  %5228 = vmatprep.subr.bf16.mxu1 %v5227_v6  ;;  %v730_v37 = vmax.f32 %v653_v54, %v698_v38  ;;  %v6820_v6 = vpop.permute.xlu1 %2586 }
 0x1d5   :  { %v699_v27 = vmul.f32 0.01, %v657_v35  ;;  %5230 = vmatpush1.bf16.msra.mxu1 %v5229_v15  ;;  %v5161_v15 = vld [vmem:[%s8178_s6 + $0xc8] sm:$0xff]  ;;  %8390 = vst [vmem:[#allocation87_spill] sm:$0xff] %v6820_v6 }
 0x1d6   :  { %v700_v59 = vmul.f32 0.01, %v659_v8  ;;  %v662_v28 = vpop.f32.mrb[28].mxu0  ;;  %3593 = vperm.xlu1 %5565, %v5159_v22  }
 0x1d7   :  { %v731_v23 = vmax.f32 %v657_v35, %v699_v27  ;;  %v663_v41 = vadd.f32 %v662_v28, %v6153_v44  ;;  %v664_v36 = vpop.f32.mrb[29].mxu0  ;;  %3588 = vperm.xlu0 %5564, %v5158_v25   ;;  %v6825_v35 = vpop.permute.xlu0 %2443  ;;  %v5163_v25 = vld [vmem:[%s8178_s6 + $0xd8] sm:$0xff]  ;;  %v5162_v28 = vld [vmem:[%s8178_s6 + $0xd0] sm:$0xff] }
 0x1d8   :  { %v732_v10 = vmax.f32 %v659_v8, %v700_v59  ;;  %v665_v62 = vadd.f32 %v664_v36, %v6153_v44  ;;  %8391 = vst [vmem:[#allocation88_spill] sm:$0xff] %v6825_v35 }
 0x1d9   :  { %v5233_v19 = vpack.c.bf16 %v731_v23, %v729_v11  ;;  %v701_v54 = vmul.f32 0.01, %v663_v41  ;;  %v6835_v23 = vpop.permute.xlu1 %2448 }
 0x1da   :  { %v668_v60 = vpop.f32.mrb[30].mxu0  ;;  %v5231_v22 = vpack.c.bf16 %v732_v10, %v730_v37  ;;  %3603 = vperm.xlu1 %5565, %v5161_v15   ;;  %v702_v8 = vmul.f32 0.01, %v665_v62  ;;  %8392 = vst [vmem:[#allocation89_spill] sm:$0xff] %v6835_v23 }
 0x1db   :  { %v669_v38 = vadd.f32 %v668_v60, %v6151_v43  ;;  %v670_v44 = vpop.f32.mrb[31].mxu0  ;;  %3598 = vperm.xlu0 %5564, %v5160_v32   ;;  %v733_v36 = vmax.f32 %v663_v41, %v701_v54  ;;  %v6837_v10 = vpop.permute.xlu0 %2591  ;;  %v5165_v32 = vld [vmem:[%s8178_s6 + $0xe8] sm:$0xff]  ;;  %v5167_v41 = vld [vmem:[%s8178_s6 + $0xf8] sm:$0xff]  ;;  %v5166_v54 = vld [vmem:[%s8178_s6 + $0xf0] sm:$0xff] }
 0x1dc   :  { %v671_v27 = vadd.f32 %v670_v44, %v6151_v43  ;;  %5232 = vmatprep.subr.bf16.mxu1 %v5231_v22  ;;  %8393 = vst [vmem:[#allocation90_spill] sm:$0xff] %v6837_v10  ;;  %v734_v43 = vmax.f32 %v665_v62, %v702_v8  ;;  %v3962_v8 = vld [vmem:[%s8175_s3] sm:$0xff] }
 0x1dd   :  { %v703_v59 = vmul.f32 0.01, %v669_v38  ;;  %5234 = vmatpush1.bf16.msra.mxu1 %v5233_v19  ;;  %v5164_v19 = vld [vmem:[%s8178_s6 + $0xe0] sm:$0xff]  ;;  %v6848_v62 = vpop.permute.xlu1 %2596 }
 0x1de   :  { %v704_v11 = vmul.f32 0.01, %v671_v27  ;;  %3613 = vperm.xlu1 %5565, %v5163_v25   ;;  %8394 = vst [vmem:[#allocation91_spill] sm:$0xff] %v6848_v62  ;;  %v8396_v25 = vmov 0.0  }
 0x1df   :  { %v735_v37 = vmax.f32 %v669_v38, %v703_v59  ;;  %3608 = vperm.xlu0 %5564, %v5162_v28   ;;  %v4902_v38 = vld [vmem:[%s8179_s7 + $0xa] sm:$0x3]  ;;  %v6856_v44 = vpop.permute.xlu0 %2453 }
 0x1e0   :  { %v736_v15 = vmax.f32 %v671_v27, %v704_v11  ;;  %8395 = vst [vmem:[#allocation92_spill] sm:$0xff] %v6856_v44  ;;  %v5169_v27 = vld [vmem:[%s8180_s8 + $0x2] sm:$0x3] }
 0x1e1   :  { %v5237_v60 = vpack.c.bf16 %v735_v37, %v733_v36  ;;  %v6865_v59 = vpop.permute.xlu1 %2458  ;;  %v4109_v11 = vld [vmem:[%s8176_s4] sm:$0xff]  ;;  %v3963_v36 = vld [vmem:[%s8175_s3 + $0x8] sm:$0xff]  ;;  %v3964_v37 = vld [vmem:[%s8175_s3 + $0x10] sm:$0xff] }
 0x1e2   :  { %v5235_v22 = vpack.c.bf16 %v736_v15, %v734_v43  ;;  %3623 = vperm.xlu1 %5565, %v5165_v32   ;;  %8397 = vst [vmem:[#allocation93_spill] sm:$0xff] %v6865_v59  ;;  %v4110_v15 = vld [vmem:[%s8176_s4 + $0x8] sm:$0xff] }
 0x1e3   :  { %3618 = vperm.xlu0 %5564, %v5164_v19   ;;  %v6867_v28 = vpop.permute.xlu0 %2601  ;;  %v4111_v19 = vld [vmem:[%s8176_s4 + $0x10] sm:$0xff] }
 0x1e4   :  { %5236 = vmatprep.subr.bf16.mxu1 %v5235_v22  ;;  %8398 = vst [vmem:[#allocation94_spill] sm:$0xff] %v6867_v28 }
 0x1e5   :  { %5238 = vmatpush1.bf16.msra.mxu1 %v5237_v60  ;;  %v6878_v43 = vpop.permute.xlu1 %2606  ;;  %v3965_v60 = vld [vmem:[%s8175_s3 + $0x18] sm:$0xff] }
 0x1e6   :  { %3633 = vperm.xlu1 %5565, %v5167_v41   ;;  %8399 = vst [vmem:[#allocation95_spill] sm:$0xff] %v6878_v43  ;;  %v7094_v43 = vsub.s32 5, %v5888_v5 }
 0x1e7   :  { %3628 = vperm.xlu0 %5564, %v5166_v54   ;;  %v6883_v32 = vpop.permute.xlu0 %2463  ;;  %v3966_v54 = vld [vmem:[%s8175_s3 + $0x20] sm:$0xff] }
 0x1e8   :  { %811 = vmatmul.mubr.f32.vlgmr.msra.gmra.mrb[0].mxu1 %v4902_v38  ;;  %8400 = vst [vmem:[#allocation96_spill] sm:$0xff] %v6883_v32  ;;  %v4112_v38 = vld [vmem:[%s8176_s4 + $0x18] sm:$0xff] }
 0x1e9   :  { %1355 = vmatprep.mubr.f32.mxu1 %v8396_v25  ;;  %v6891_v22 = vpop.permute.xlu1 %2468 }
 0x1ea   :  { %3980 = vperm.xlu1 %5565, %v3962_v8   ;;  %8401 = vst [vmem:[#allocation97_spill] sm:$0xff] %v6891_v22  ;;  %v4113_v8 = vld [vmem:[%s8176_s4 + $0x20] sm:$0xff] }
 0x1eb   :  { %3867 = vperm.xlu0 %5564, %v5169_v27   ;;  %v6893_v41 = vpop.permute.xlu0 %2611 }
 0x1ec   :  { %8402 = vst [vmem:[#allocation98_spill] sm:$0xff] %v6893_v41 }
 0x1ed   :  { %v6904_v27 = vpop.permute.xlu1 %2616 }
 0x1ee   :  { %4127 = vperm.xlu1 %5565, %v4109_v11   ;;  %8403 = vst [vmem:[#allocation99_spill] sm:$0xff] %v6904_v27  ;;  %v3967_v11 = vld [vmem:[%s8175_s3 + $0x28] sm:$0xff] }
 0x1ef   :  { %3985 = vperm.xlu0 %5564, %v3963_v36   ;;  %v6909_v36 = vpop.permute.xlu0 %2473 }
 0x1f0   :  { %8404 = vst [vmem:[#allocation100_spill] sm:$0xff] %v6909_v36 }
 0x1f2   :  { %3990 = vperm.xlu1 %5565, %v3964_v37   ;;  %v3968_v37 = vld [vmem:[%s8175_s3 + $0x30] sm:$0xff] }
 0x1f3   :  { %4132 = vperm.xlu0 %5564, %v4110_v15   ;;  %v4114_v15 = vld [vmem:[%s8176_s4 + $0x28] sm:$0xff] }
 0x1f6   :  { %4137 = vperm.xlu1 %5565, %v4111_v19   ;;  %v6917_v19 = vpop.permute.xlu1 %2478 }
 0x1f7   :  { %3995 = vperm.xlu0 %5564, %v3965_v60   ;;  %8405 = vst [vmem:[#allocation101_spill] sm:$0xff] %v6917_v19  ;;  %v6919_v60 = vpop.permute.xlu0 %2621  ;;  %v4117_v19 = vld [vmem:[%s8176_s4 + $0x40] sm:$0xff] }
 0x1f8   :  { %8406 = vst [vmem:[#allocation102_spill] sm:$0xff] %v6919_v60 }
 0x1fa   :  { %4000 = vperm.xlu1 %5565, %v3966_v54   ;;  %v4115_v54 = vld [vmem:[%s8176_s4 + $0x30] sm:$0xff] }
 0x1fb   :  { %4142 = vperm.xlu0 %5564, %v4112_v38   ;;  %v3969_v38 = vld [vmem:[%s8175_s3 + $0x38] sm:$0xff] }
 0x1fe   :  { %4147 = vperm.xlu1 %5565, %v4113_v8   ;;  %v3970_v8 = vld [vmem:[%s8175_s3 + $0x40] sm:$0xff] }
 0x1ff   :  { %4005 = vperm.xlu0 %5564, %v3967_v11   ;;  %v6930_v11 = vpop.permute.xlu1 %2626 }
 0x200   :  { %8407 = vst [vmem:[#allocation103_spill] sm:$0xff] %v6930_v11 }
 0x202   :  { %4010 = vperm.xlu1 %5565, %v3968_v37   ;;  %v4116_v37 = vld [vmem:[%s8176_s4 + $0x38] sm:$0xff] }
 0x203   :  { %4152 = vperm.xlu0 %5564, %v4114_v15   ;;  %v6935_v15 = vpop.permute.xlu0 %2483 }
 0x204   :  { %8408 = vst [vmem:[#allocation104_spill] sm:$0xff] %v6935_v15  ;;  %v3972_v15 = vld [vmem:[%s8175_s3 + $0x50] sm:$0xff] }
 0x206   :  { %4157 = vperm.xlu1 %5565, %v4115_v54   ;;  %v3971_v54 = vld [vmem:[%s8175_s3 + $0x48] sm:$0xff] }
 0x207   :  { %4015 = vperm.xlu0 %5564, %v3969_v38   ;;  %v6943_v38 = vpop.permute.xlu1 %2488  ;;  %v6945_v11 = vpop.permute.xlu0 %2631 }
 0x208   :  { %8409 = vst [vmem:[#allocation105_spill] sm:$0xff] %v6943_v38  ;;  %8410 = vst [vmem:[#allocation106_spill] sm:$0xff] %v6945_v11  ;;  %v3974_v38 = vld [vmem:[%s8175_s3 + $0x60] sm:$0xff] }
 0x20a   :  { %4020 = vperm.xlu1 %5565, %v3970_v8   ;;  %v4118_v8 = vld [vmem:[%s8176_s4 + $0x48] sm:$0xff] }
 0x20b   :  { %4162 = vperm.xlu0 %5564, %v4116_v37   ;;  %v4119_v37 = vld [vmem:[%s8176_s4 + $0x50] sm:$0xff]  ;;  %v6956_v60 = vpop.permute.xlu1 %2636 }
 0x20c   :  { %8411 = vst [vmem:[#allocation107_spill] sm:$0xff] %v6956_v60 }
 0x20e   :  { %4167 = vperm.xlu1 %5565, %v4117_v19   ;;  %v3973_v19 = vld [vmem:[%s8175_s3 + $0x58] sm:$0xff] }
 0x20f   :  { %4025 = vperm.xlu0 %5564, %v3971_v54   ;;  %v6961_v54 = vpop.permute.xlu0 %2493 }
 0x210   :  { %8412 = vst [vmem:[#allocation108_spill] sm:$0xff] %v6961_v54  ;;  %v4121_v54 = vld [vmem:[%s8176_s4 + $0x60] sm:$0xff] }
 0x212   :  { %4030 = vperm.xlu1 %5565, %v3972_v15   ;;  %v4120_v15 = vld [vmem:[%s8176_s4 + $0x58] sm:$0xff] }
 0x213   :  { %4172 = vperm.xlu0 %5564, %v4118_v8   ;;  %v6969_v8 = vpop.permute.xlu1 %2776  ;;  %v6971_v60 = vpop.permute.xlu0 %2641 }
 0x214   :  { %8413 = vst [vmem:[#allocation109_spill] sm:$0xff] %v6969_v8  ;;  %8414 = vst [vmem:[#allocation110_spill] sm:$0xff] %v6971_v60  ;;  %v4123_v8 = vld [vmem:[%s8176_s4 + $0x70] sm:$0xff] }
 0x216   :  { %4177 = vperm.xlu1 %5565, %v4119_v37   ;;  %v3975_v37 = vld [vmem:[%s8175_s3 + $0x68] sm:$0xff] }
 0x217   :  { %4035 = vperm.xlu0 %5564, %v3973_v19   ;;  %v3976_v19 = vld [vmem:[%s8175_s3 + $0x70] sm:$0xff]  ;;  %v6982_v11 = vpop.permute.xlu1 %2786 }
 0x218   :  { %8415 = vst [vmem:[#allocation111_spill] sm:$0xff] %v6982_v11 }
 0x21a   :  { %4040 = vperm.xlu1 %5565, %v3974_v38   ;;  %v4122_v38 = vld [vmem:[%s8176_s4 + $0x68] sm:$0xff] }
 0x21b   :  { %4182 = vperm.xlu0 %5564, %v4120_v15   ;;  %v6987_v15 = vpop.permute.xlu0 %2781 }
 0x21c   :  { %8416 = vst [vmem:[#allocation112_spill] sm:$0xff] %v6987_v15  ;;  %v4317_v15 = vld [vmem:[%s8178_s6] sm:$0xff] }
 0x21e   :  { %4187 = vperm.xlu1 %5565, %v4121_v54   ;;  %v3977_v54 = vld [vmem:[%s8175_s3 + $0x78] sm:$0xff] }
 0x21f   :  { %4045 = vperm.xlu0 %5564, %v3975_v37   ;;  %v6995_v37 = vpop.permute.xlu1 %2796  ;;  %v6997_v11 = vpop.permute.xlu0 %2791 }
 0x220   :  { %8417 = vst [vmem:[#allocation113_spill] sm:$0xff] %v6995_v37  ;;  %8418 = vst [vmem:[#allocation114_spill] sm:$0xff] %v6997_v11  ;;  %v4321_v37 = vld [vmem:[%s8178_s6 + $0x20] sm:$0xff] }
 0x222   :  { %4050 = vperm.xlu1 %5565, %v3976_v19   ;;  %v4124_v19 = vld [vmem:[%s8176_s4 + $0x78] sm:$0xff] }
 0x223   :  { %4192 = vperm.xlu0 %5564, %v4122_v38   ;;  %v4319_v38 = vld [vmem:[%s8178_s6 + $0x10] sm:$0xff]  ;;  %v7008_v60 = vpop.permute.xlu1 %2806 }
 0x224   :  { %8419 = vst [vmem:[#allocation115_spill] sm:$0xff] %v7008_v60 }
 0x226   :  { %4197 = vperm.xlu1 %5565, %v4123_v8   ;;  %v4318_v8 = vld [vmem:[%s8178_s6 + $0x8] sm:$0xff] }
 0x227   :  { %4055 = vperm.xlu0 %5564, %v3977_v54   ;;  %v7013_v54 = vpop.permute.xlu0 %2801 }
 0x228   :  { %8420 = vst [vmem:[#allocation116_spill] sm:$0xff] %v7013_v54  ;;  %v4323_v54 = vld [vmem:[%s8178_s6 + $0x30] sm:$0xff] }
 0x22a   :  { %4335 = vperm.xlu1 %5565, %v4317_v15   ;;  %v4320_v15 = vld [vmem:[%s8178_s6 + $0x18] sm:$0xff] }
 0x22b   :  { %4202 = vperm.xlu0 %5564, %v4124_v19   ;;  %v7021_v19 = vpop.permute.xlu1 %2816  ;;  %v7023_v60 = vpop.permute.xlu0 %2811 }
 0x22c   :  { %8421 = vst [vmem:[#allocation117_spill] sm:$0xff] %v7021_v19  ;;  %8422 = vst [vmem:[#allocation118_spill] sm:$0xff] %v7023_v60  ;;  %v4327_v19 = vld [vmem:[%s8178_s6 + $0x50] sm:$0xff] }
 0x22e   :  { %4345 = vperm.xlu1 %5565, %v4319_v38   ;;  %v4322_v38 = vld [vmem:[%s8178_s6 + $0x28] sm:$0xff] }
 0x22f   :  { %4340 = vperm.xlu0 %5564, %v4318_v8   ;;  %v4325_v8 = vld [vmem:[%s8178_s6 + $0x40] sm:$0xff]  ;;  %v7034_v11 = vpop.permute.xlu1 %2826 }
 0x230   :  { %8423 = vst [vmem:[#allocation119_spill] sm:$0xff] %v7034_v11 }
 0x232   :  { %4355 = vperm.xlu1 %5565, %v4321_v37   ;;  %v4324_v37 = vld [vmem:[%s8178_s6 + $0x38] sm:$0xff] }
 0x233   :  { %4350 = vperm.xlu0 %5564, %v4320_v15   ;;  %v7039_v15 = vpop.permute.xlu0 %2821 }
 0x234   :  { %8424 = vst [vmem:[#allocation120_spill] sm:$0xff] %v7039_v15  ;;  %v4329_v15 = vld [vmem:[%s8178_s6 + $0x60] sm:$0xff] }
 0x236   :  { %4365 = vperm.xlu1 %5565, %v4323_v54   ;;  %v4326_v54 = vld [vmem:[%s8178_s6 + $0x48] sm:$0xff] }
 0x237   :  { %4360 = vperm.xlu0 %5564, %v4322_v38   ;;  %v7047_v38 = vpop.permute.xlu1 %2836  ;;  %v7049_v11 = vpop.permute.xlu0 %2831 }
 0x238   :  { %8425 = vst [vmem:[#allocation121_spill] sm:$0xff] %v7047_v38  ;;  %8426 = vst [vmem:[#allocation122_spill] sm:$0xff] %v7049_v11  ;;  %v4639_v38 = vld [vmem:[%s8180_s8] sm:$0x3] }
 0x23a   :  { %4375 = vperm.xlu1 %5565, %v4325_v8   ;;  %v4328_v8 = vld [vmem:[%s8178_s6 + $0x58] sm:$0xff] }
 0x23b   :  { %4370 = vperm.xlu0 %5564, %v4324_v37   ;;  %v4331_v37 = vld [vmem:[%s8178_s6 + $0x70] sm:$0xff]  ;;  %v7060_v60 = vpop.permute.xlu1 %2846 }
 0x23c   :  { %8427 = vst [vmem:[#allocation123_spill] sm:$0xff] %v7060_v60 }
 0x23e   :  { %4385 = vperm.xlu1 %5565, %v4327_v19   ;;  %v4330_v19 = vld [vmem:[%s8178_s6 + $0x68] sm:$0xff] }
 0x23f   :  { %4380 = vperm.xlu0 %5564, %v4326_v54   ;;  %v7065_v54 = vpop.permute.xlu0 %2841 }
 0x240   :  { %8428 = vst [vmem:[#allocation124_spill] sm:$0xff] %v7065_v54 }
 0x242   :  { %4395 = vperm.xlu1 %5565, %v4329_v15   ;;  %v4332_v15 = vld [vmem:[%s8178_s6 + $0x78] sm:$0xff] }
 0x243   :  { %4390 = vperm.xlu0 %5564, %v4328_v8   ;;  %v7073_v8 = vpop.permute.xlu1 %3085  ;;  %v7075_v60 = vpop.permute.xlu0 %2851 }
 0x244   :  { %8429 = vst [vmem:[#allocation125_spill] sm:$0xff] %v7073_v8  ;;  %8430 = vst [vmem:[#allocation126_spill] sm:$0xff] %v7075_v60  ;;  %v7091_v60 = vsub.s32 1, %v5888_v5 }
 0x246   :  { %4405 = vperm.xlu1 %5565, %v4331_v37  }
 0x247   :  { %4400 = vperm.xlu0 %5564, %v4330_v19  }
 0x24a   :  { %4642 = vperm.xlu1 %5565, %v4639_v38  }
 0x24b   :  { %4410 = vperm.xlu0 %5564, %v4332_v15  }
 0x2bb   :  { %v812_v11 = vpop.f32.mrb[0].mxu1 }
 0x2bc   :  { %v813_v27 = vadd.f32 %v812_v11, %v6167_v49  ;;  %v814_v54 = vpop.f32.mrb[1].mxu1 }
 0x2bd   :  { %v815_v37 = vadd.f32 %v814_v54, %v6167_v49 }
 0x2be   :  { %5572 = vtanh.f32 %v813_v27 }
 0x2bf   :  { %5574 = vtanh.f32 %v815_v37  ;;  %v821_v19 = vcombine.low %v813_v27, %v815_v37 }
 0x2c1   :  { %v823_v27 = vsub.f32 %v5903_v12, %v821_v19 }
 0x2c8   :  { %v7079_v36 = vpop.eup %5572 }
 0x2c9   :  { %v7081_v22 = vpop.eup %5574  ;;  %v8291_v41 = vsub.f32 0.0, %v7079_v36 }
 0x2ca   :  { %v8292_v38 = vsub.f32 0.0, %v7081_v22 }
 0x2cb   :  { %v826_v15 = vmul.f32 1.442695, %v8291_v41 }
 0x2cc   :  { %v828_v11 = vmul.f32 1.442695, %v8292_v38 }
 0x2cd   :  { %5576 = vpow2.f32 %v826_v15 }
 0x2ce   :  { %5578 = vpow2.f32 %v828_v11 }
 0x2d7   :  { %v5577_v49 = vpop.eup %5576 }
 0x2d8   :  { %v5579_v54 = vpop.eup %5578 }
 0x2d9   :  { %v832_v8 = vcombine.low %v5577_v49, %v5579_v54 }
 0x2db   :  { %v833_v37 = vrot.slane %v832_v8, 7 }
 0x2dd   :  { %v7096_v32 = vmul.f32 %v833_v37, %v823_v27 }
 0x2df   :  { %v937_v41 = vrot.slane %v7096_v32, %v7091_v60  ;;  %v941_v15 = vrot.slane %v7096_v32, %v7094_v43 }
 0x2e1   :  { %v7103_v11 = vrot.slane %v937_v41, %v7091_v60  ;;  %v7106_v19 = vrot.slane %v941_v15, %v7091_v60 }
 0x2e3   :  { %v953_v8 = vmul.f32 %v7106_v19, %v6165_v48  ;;  %v955_v49 = vmul.f32 %v7106_v19, %v6181_v55  ;;  %v952_v54 = vmul.f32 %v7103_v11, %v6165_v48  ;;  %v954_v27 = vmul.f32 %v7103_v11, %v6181_v55 }
 0x2e4   :  { %v957_v37 = vmul.f32 %v7106_v19, %v6193_v57  ;;  %v959_v41 = vmul.f32 %v7106_v19, %v6209_v2  ;;  %v956_v15 = vmul.f32 %v7103_v11, %v6193_v57  ;;  %v958_v38 = vmul.f32 %v7103_v11, %v6209_v2 }
 0x2e5   :  { %v1082_v5 = vadd.f32 %v6179_v53, %v953_v8  ;;  %v1084_v59 = vadd.f32 %v6195_v58, %v955_v49  ;;  %v1081_v48 = vadd.f32 %v6179_v53, %v952_v54  ;;  %v1083_v55 = vadd.f32 %v6195_v58, %v954_v27 }
 0x2e6   :  { %v1086_v28 = vadd.f32 %v6207_v0, %v957_v37  ;;  %v1088_v62 = vadd.f32 %v6223_v13, %v959_v41  ;;  %v1085_v44 = vadd.f32 %v6207_v0, %v956_v15  ;;  %v1087_v23 = vadd.f32 %v6223_v13, %v958_v38 }
 0x2e7   :  { %v1114_v57 = vmul.f32 0.01, %v1082_v5  ;;  %v1116_v10 = vmul.f32 0.01, %v1084_v59  ;;  %v1113_v6 = vmul.f32 0.01, %v1081_v48  ;;  %v961_v2 = vmul.f32 %v7106_v19, %v6221_v9 }
 0x2e8   :  { %v1115_v8 = vmul.f32 0.01, %v1083_v55  ;;  %v1118_v49 = vmul.f32 0.01, %v1086_v28  ;;  %v1120_v35 = vmul.f32 0.01, %v1088_v62  ;;  %v963_v53 = vmul.f32 %v7106_v19, %v6237_v24 }
 0x2e9   :  { %v1146_v58 = vmax.f32 %v1082_v5, %v1114_v57  ;;  %v1148_v54 = vmax.f32 %v1084_v59, %v1116_v10  ;;  %v1145_v27 = vmax.f32 %v1081_v48, %v1113_v6  ;;  %v1117_v37 = vmul.f32 0.01, %v1085_v44 }
 0x2ea   :  { %v1147_v41 = vmax.f32 %v1083_v55, %v1115_v8  ;;  %v1150_v0 = vmax.f32 %v1086_v28, %v1118_v49  ;;  %v1152_v15 = vmax.f32 %v1088_v62, %v1120_v35  ;;  %v1119_v13 = vmul.f32 0.01, %v1087_v23 }
 0x2eb   :  { %v5239_v38 = vpack.c.bf16 %v1148_v54, %v1146_v58  ;;  %v1149_v7 = vmax.f32 %v1085_v44, %v1117_v37  ;;  %v1090_v33 = vadd.f32 %v6235_v21, %v961_v2  ;;  %v1092_v17 = vadd.f32 %v6251_v31, %v963_v53 }
 0x2ec   :  { %v5241_v51 = vpack.c.bf16 %v1147_v41, %v1145_v27  ;;  %v5243_v52 = vpack.c.bf16 %v1152_v15, %v1150_v0  ;;  %v1151_v26 = vmax.f32 %v1087_v23, %v1119_v13  ;;  %v960_v1 = vmul.f32 %v7103_v11, %v6221_v9 }
 0x2ed   :  { %5240 = vmatprep.subr.bf16.mxu1 %v5239_v38  ;;  %v1122_v5 = vmul.f32 0.01, %v1090_v33  ;;  %v1124_v6 = vmul.f32 0.01, %v1092_v17  ;;  %v962_v10 = vmul.f32 %v7103_v11, %v6237_v24  ;;  %v965_v35 = vmul.f32 %v7106_v19, %v6249_v30 }
 0x2ee   :  { %5242 = vmatpush1.bf16.msra.mxu1 %v5241_v51  ;;  %v5245_v62 = vpack.c.bf16 %v1151_v26, %v1149_v7  ;;  %v1089_v44 = vadd.f32 %v6235_v21, %v960_v1  ;;  %v967_v59 = vmul.f32 %v7106_v19, %v6265_v40  ;;  %v964_v23 = vmul.f32 %v7103_v11, %v6249_v30 }
 0x2ef   :  { %5244 = vmatprep.subr.bf16.mxu1 %v5243_v52  ;;  %v1154_v9 = vmax.f32 %v1090_v33, %v1122_v5  ;;  %v1156_v28 = vmax.f32 %v1092_v17, %v1124_v6  ;;  %v1091_v48 = vadd.f32 %v6251_v31, %v962_v10  ;;  %v1094_v24 = vadd.f32 %v6263_v39, %v965_v35 }
 0x2f0   :  { %v1121_v55 = vmul.f32 0.01, %v1089_v44  ;;  %v1096_v57 = vadd.f32 %v6279_v50, %v967_v59  ;;  %v966_v26 = vmul.f32 %v7103_v11, %v6265_v40  ;;  %v1093_v21 = vadd.f32 %v6263_v39, %v964_v23 }
 0x2f1   :  { %v5247_v1 = vpack.c.bf16 %v1156_v28, %v1154_v9  ;;  %v1123_v51 = vmul.f32 0.01, %v1091_v48  ;;  %v1126_v7 = vmul.f32 0.01, %v1094_v24  ;;  %v969_v30 = vmul.f32 %v7106_v19, %v6277_v47 }
 0x2f2   :  { %5246 = vmatpush1.bf16.msra.mxu1 %v5245_v62  ;;  %v1153_v17 = vmax.f32 %v1089_v44, %v1121_v55  ;;  %v1128_v52 = vmul.f32 0.01, %v1096_v57  ;;  %v1095_v31 = vadd.f32 %v6279_v50, %v966_v26  ;;  %v1125_v33 = vmul.f32 0.01, %v1093_v21 }
 0x2f3   :  { %5248 = vmatprep.subr.bf16.mxu1 %v5247_v1  ;;  %v1155_v2 = vmax.f32 %v1091_v48, %v1123_v51  ;;  %v1158_v8 = vmax.f32 %v1094_v24, %v1126_v7  ;;  %v971_v40 = vmul.f32 %v7106_v19, %v6293_v56  ;;  %v1098_v39 = vadd.f32 %v6291_v20, %v969_v30 }
 0x2f4   :  { %v1160_v49 = vmax.f32 %v1096_v57, %v1128_v52  ;;  %v1127_v53 = vmul.f32 0.01, %v1095_v31  ;;  %v1157_v58 = vmax.f32 %v1093_v21, %v1125_v33  ;;  %v968_v54 = vmul.f32 %v7103_v11, %v6277_v47 }
 0x2f5   :  { %v5249_v27 = vpack.c.bf16 %v1155_v2, %v1153_v17  ;;  %v1100_v37 = vadd.f32 %v6307_v4, %v971_v40  ;;  %v1130_v41 = vmul.f32 0.01, %v1098_v39  ;;  %v970_v50 = vmul.f32 %v7103_v11, %v6293_v56 }
 0x2f6   :  { %v5251_v0 = vpack.c.bf16 %v1160_v49, %v1158_v8  ;;  %v1159_v15 = vmax.f32 %v1095_v31, %v1127_v53  ;;  %v1097_v13 = vadd.f32 %v6291_v20, %v968_v54  ;;  %v973_v38 = vmul.f32 %v7106_v19, %v6302_v63  ;;  %v8431_v31 = vld [vmem:[#allocation12_spill] sm:$0xff]  ;;  %v8432_v49 = vld [vmem:[#allocation11_spill] sm:$0xff] }
 0x2f7   :  { %5250 = vmatpush1.bf16.msra.mxu1 %v5249_v27  ;;  %v1132_v5 = vmul.f32 0.01, %v1100_v37  ;;  %v1162_v6 = vmax.f32 %v1098_v39, %v1130_v41  ;;  %v1099_v10 = vadd.f32 %v6307_v4, %v970_v50  ;;  %v975_v47 = vmul.f32 %v7106_v19, %v6317_v18 }
 0x2f8   :  { %5252 = vmatprep.subr.bf16.mxu1 %v5251_v0  ;;  %v5253_v35 = vpack.c.bf16 %v1159_v15, %v1157_v58  ;;  %v1129_v62 = vmul.f32 0.01, %v1097_v13  ;;  %v1102_v56 = vadd.f32 %v6312_v14, %v973_v38  ;;  %v972_v44 = vmul.f32 %v7103_v11, %v6302_v63  ;;  %v8434_v0 = vld [vmem:[#allocation13_spill] sm:$0xff]  ;;  %v8435_v38 = vld [vmem:[#allocation16_spill] sm:$0xff] }
 0x2f9   :  { %v1164_v20 = vmax.f32 %v1100_v37, %v1132_v5  ;;  %v1131_v59 = vmul.f32 0.01, %v1099_v10  ;;  %v1104_v23 = vadd.f32 %v6327_v34, %v975_v47  ;;  %v974_v9 = vmul.f32 %v7103_v11, %v6317_v18 }
 0x2fa   :  { %v1161_v28 = vmax.f32 %v1097_v13, %v1129_v62  ;;  %v1134_v4 = vmul.f32 0.01, %v1102_v56  ;;  %v1101_v48 = vadd.f32 %v6312_v14, %v972_v44  ;;  %v977_v24 = vmul.f32 %v7106_v19, %v6325_v29 }
 0x2fb   :  { %5254 = vmatpush1.bf16.msra.mxu1 %v5253_v35  ;;  %v5255_v55 = vpack.c.bf16 %v1164_v20, %v1162_v6  ;;  %v1163_v57 = vmax.f32 %v1099_v10, %v1131_v59  ;;  %v1136_v26 = vmul.f32 0.01, %v1104_v23  ;;  %v1103_v63 = vadd.f32 %v6327_v34, %v974_v9 }
 0x2fc   :  { %v1166_v21 = vmax.f32 %v1102_v56, %v1134_v4  ;;  %v1133_v1 = vmul.f32 0.01, %v1101_v48  ;;  %v979_v51 = vmul.f32 %v7106_v19, %v6337_v45  ;;  %v1106_v18 = vadd.f32 %v6335_v42, %v977_v24 }
 0x2fd   :  { %5256 = vmatprep.subr.bf16.mxu1 %v5255_v55  ;;  %v5257_v7 = vpack.c.bf16 %v1163_v57, %v1161_v28  ;;  %v1168_v30 = vmax.f32 %v1104_v23, %v1136_v26  ;;  %v1135_v14 = vmul.f32 0.01, %v1103_v63  ;;  %v976_v17 = vmul.f32 %v7103_v11, %v6325_v29  ;;  %v8433_v29 = vld [vmem:[#allocation14_spill] sm:$0xff]  ;;  %v4937_v57 = vld [vmem:[%s8177_s5 + $0x208] sm:$0xff]  ;;  %v4938_v26 = vld [vmem:[%s8177_s5 + $0x210] sm:$0xff] }
 0x2fe   :  { %v1165_v52 = vmax.f32 %v1101_v48, %v1133_v1  ;;  %v1108_v33 = vadd.f32 %v8431_v31, %v979_v51  ;;  %v1138_v2 = vmul.f32 0.01, %v1106_v18  ;;  %v978_v34 = vmul.f32 %v7103_v11, %v6337_v45  ;;  %v4936_v55 = vld [vmem:[%s8177_s5 + $0x200] sm:$0xff]  ;;  %v4941_v1 = vld [vmem:[%s8177_s5 + $0x228] sm:$0xff]  ;;  %v4942_v51 = vld [vmem:[%s8177_s5 + $0x230] sm:$0xff] }
 0x2ff   :  { %5258 = vmatpush1.bf16.msra.mxu1 %v5257_v7  ;;  %v5259_v8 = vpack.c.bf16 %v1168_v30, %v1166_v21  ;;  %v1167_v40 = vmax.f32 %v1103_v63, %v1135_v14  ;;  %v1105_v39 = vadd.f32 %v6335_v42, %v976_v17  ;;  %v981_v53 = vmul.f32 %v7106_v19, %v8432_v49  ;;  %v4939_v63 = vld [vmem:[%s8177_s5 + $0x218] sm:$0xff]  ;;  %v4940_v21 = vld [vmem:[%s8177_s5 + $0x220] sm:$0xff]  ;;  %v4945_v30 = vld [vmem:[%s8177_s5 + $0x248] sm:$0xff] }
 0x300   :  { %v1140_v58 = vmul.f32 0.01, %v1108_v33  ;;  %v1170_v54 = vmax.f32 %v1106_v18, %v1138_v2  ;;  %v1107_v27 = vadd.f32 %v8431_v31, %v978_v34  ;;  %v983_v37 = vmul.f32 %v7106_v19, %v8433_v29  ;;  %v4943_v18 = vld [vmem:[%s8177_s5 + $0x238] sm:$0xff]  ;;  %v4944_v7 = vld [vmem:[%s8177_s5 + $0x240] sm:$0xff]  ;;  %v4946_v14 = vld [vmem:[%s8177_s5 + $0x250] sm:$0xff] }
 0x301   :  { %5260 = vmatprep.subr.bf16.mxu1 %v5259_v8  ;;  %v5261_v41 = vpack.c.bf16 %v1167_v40, %v1165_v52  ;;  %v1137_v50 = vmul.f32 0.01, %v1105_v39  ;;  %v1110_v45 = vadd.f32 %v8434_v0, %v981_v53  ;;  %v980_v15 = vmul.f32 %v7103_v11, %v8432_v49  ;;  %v4947_v17 = vld [vmem:[%s8177_s5 + $0x258] sm:$0xff]  ;;  %v4948_v52 = vld [vmem:[%s8177_s5 + $0x260] sm:$0xff]  ;;  %v4949_v31 = vld [vmem:[%s8177_s5 + $0x268] sm:$0xff] }
 0x302   :  { %v1172_v13 = vmax.f32 %v1108_v33, %v1140_v58  ;;  %v1139_v42 = vmul.f32 0.01, %v1107_v27  ;;  %v1112_v5 = vadd.f32 %v8435_v38, %v983_v37  ;;  %v982_v6 = vmul.f32 %v7103_v11, %v8433_v29  ;;  %v4950_v33 = vld [vmem:[%s8177_s5 + $0x270] sm:$0xff]  ;;  %v4951_v2 = vld [vmem:[%s8177_s5 + $0x278] sm:$0xff]  ;;  %v8436_v8 = vld [vmem:[#allocation15_spill] sm:$0xff] }
 0x303   :  { %5262 = vmatpush1.bf16.msra.mxu1 %v5261_v41  ;;  %v1169_v10 = vmax.f32 %v1105_v39, %v1137_v50  ;;  %v1142_v47 = vmul.f32 0.01, %v1110_v45  ;;  %v1109_v19 = vadd.f32 %v8434_v0, %v980_v15 }
 0x304   :  { %v5263_v35 = vpack.c.bf16 %v1172_v13, %v1170_v54  ;;  %v1171_v62 = vmax.f32 %v1107_v27, %v1139_v42  ;;  %v1144_v56 = vmul.f32 0.01, %v1112_v5  ;;  %v1111_v44 = vadd.f32 %v8435_v38, %v982_v6  ;;  %v8437_v54 = vld [vmem:[#allocation18_spill] sm:$0xff]  ;;  %v8438_v42 = vld [vmem:[#allocation17_spill] sm:$0xff] }
 0x305   :  { %v1174_v20 = vmax.f32 %v1110_v45, %v1142_v47  ;;  %v1141_v59 = vmul.f32 0.01, %v1109_v19 }
 0x306   :  { %5264 = vmatprep.subr.bf16.mxu1 %v5263_v35  ;;  %v5265_v23 = vpack.c.bf16 %v1171_v62, %v1169_v10  ;;  %v1176_v9 = vmax.f32 %v1112_v5, %v1144_v56  ;;  %v1143_v28 = vmul.f32 0.01, %v1111_v44 }
 0x307   :  { %v1173_v4 = vmax.f32 %v1109_v19, %v1141_v59 }
 0x308   :  { %5266 = vmatpush1.bf16.msra.mxu1 %v5265_v23  ;;  %v5267_v48 = vpack.c.bf16 %v1176_v9, %v1174_v20  ;;  %v1175_v11 = vmax.f32 %v1111_v44, %v1143_v28  ;;  %v8439_v44 = vld [vmem:[#allocation20_spill] sm:$0xff] }
 0x30a   :  { %5268 = vmatprep.subr.bf16.mxu1 %v5267_v48  ;;  %v5269_v24 = vpack.c.bf16 %v1175_v11, %v1173_v4 }
 0x30c   :  { %5270 = vmatpush1.bf16.msra.mxu1 %v5269_v24 }
 0x30f   :  { %1356 = vmatmul.mubr.f32.vlgmr.msra.gmra.mrb[2].mxu1 %v4936_v55  ;;  %v8440_v55 = vld [vmem:[#allocation19_spill] sm:$0xff] }
 0x310   :  { %1361 = vmatprep.mubr.f32.mxu1 %v8396_v25 }
 0x313   :  { %1362 = vmatmul.mubr.f32.gmra.mrb[4].mxu1 %v4937_v57 }
 0x314   :  { %1367 = vmatprep.mubr.f32.mxu1 %v8396_v25 }
 0x317   :  { %1368 = vmatmul.mubr.f32.gmra.mrb[6].mxu1 %v4938_v26 }
 0x318   :  { %1373 = vmatprep.mubr.f32.mxu1 %v8396_v25 }
 0x31b   :  { %1374 = vmatmul.mubr.f32.gmra.mrb[8].mxu1 %v4939_v63 }
 0x31c   :  { %1379 = vmatprep.mubr.f32.mxu1 %v8396_v25 }
 0x31f   :  { %1380 = vmatmul.mubr.f32.gmra.mrb[10].mxu1 %v4940_v21 }
 0x320   :  { %1385 = vmatprep.mubr.f32.mxu1 %v8396_v25 }
 0x323   :  { %1386 = vmatmul.mubr.f32.gmra.mrb[12].mxu1 %v4941_v1 }
 0x324   :  { %1391 = vmatprep.mubr.f32.mxu1 %v8396_v25 }
 0x327   :  { %1392 = vmatmul.mubr.f32.gmra.mrb[14].mxu1 %v4942_v51 }
 0x328   :  { %1397 = vmatprep.mubr.f32.mxu1 %v8396_v25 }
 0x32b   :  { %1398 = vmatmul.mubr.f32.gmra.mrb[16].mxu1 %v4943_v18 }
 0x32c   :  { %1403 = vmatprep.mubr.f32.mxu1 %v8396_v25 }
 0x32f   :  { %1404 = vmatmul.mubr.f32.gmra.mrb[18].mxu1 %v4944_v7 }
 0x330   :  { %1409 = vmatprep.mubr.f32.mxu1 %v8396_v25 }
 0x333   :  { %1410 = vmatmul.mubr.f32.gmra.mrb[20].mxu1 %v4945_v30 }
 0x334   :  { %1415 = vmatprep.mubr.f32.mxu1 %v8396_v25 }
 0x337   :  { %1416 = vmatmul.mubr.f32.gmra.mrb[22].mxu1 %v4946_v14  ;;  %v8441_v14 = vld [vmem:[#allocation22_spill] sm:$0xff] }
 0x338   :  { %1421 = vmatprep.mubr.f32.mxu1 %v8396_v25 }
 0x33b   :  { %1422 = vmatmul.mubr.f32.gmra.mrb[24].mxu1 %v4947_v17 }
 0x33c   :  { %1427 = vmatprep.mubr.f32.mxu1 %v8396_v25 }
 0x33f   :  { %1428 = vmatmul.mubr.f32.gmra.mrb[26].mxu1 %v4948_v52 }
 0x340   :  { %1433 = vmatprep.mubr.f32.mxu1 %v8396_v25 }
 0x343   :  { %1434 = vmatmul.mubr.f32.gmra.mrb[28].mxu1 %v4949_v31 }
 0x344   :  { %1439 = vmatprep.mubr.f32.mxu1 %v8396_v25 }
 0x347   :  { %1440 = vmatmul.mubr.f32.gmra.mrb[30].mxu1 %v4950_v33 }
 0x348   :  { %1445 = vmatprep.mubr.f32.mxu1 %v8396_v25 }
 0x34b   :  { %1446 = vmatmul.mubr.f32.gmra.mrb[32].mxu1 %v4951_v2 }
 0x34c   :  { %2371 = vmatprep.mubr.f32.mxu1 %v8396_v25 }
 0x3e2   :  { %v1357_v34 = vpop.f32.mrb[2].mxu1 }
 0x3e3   :  { %v1358_v40 = vadd.f32 %v1357_v34, %v8436_v8  ;;  %v1359_v39 = vpop.f32.mrb[3].mxu1 }
 0x3e4   :  { %v1360_v49 = vadd.f32 %v1359_v39, %v8436_v8 }
 0x3e5   :  { %v1452_v58 = vmul.f32 0.01, %v1358_v40 }
 0x3e6   :  { %v1363_v53 = vpop.f32.mrb[4].mxu1  ;;  %v1453_v37 = vmul.f32 0.01, %v1360_v49 }
 0x3e7   :  { %v1364_v27 = vadd.f32 %v1363_v53, %v8437_v54  ;;  %v1365_v29 = vpop.f32.mrb[5].mxu1  ;;  %v1484_v15 = vmax.f32 %v1358_v40, %v1452_v58 }
 0x3e8   :  { %v1366_v41 = vadd.f32 %v1365_v29, %v8437_v54  ;;  %v1485_v6 = vmax.f32 %v1360_v49, %v1453_v37  ;;  %v8442_v49 = vld [vmem:[#allocation21_spill] sm:$0xff] }
 0x3e9   :  { %v1454_v50 = vmul.f32 0.01, %v1364_v27 }
 0x3ea   :  { %v1455_v0 = vmul.f32 0.01, %v1366_v41  ;;  %v1369_v45 = vpop.f32.mrb[6].mxu1 }
 0x3eb   :  { %v1486_v13 = vmax.f32 %v1364_v27, %v1454_v50  ;;  %v1370_v38 = vadd.f32 %v1369_v45, %v8438_v42  ;;  %v1371_v5 = vpop.f32.mrb[7].mxu1  ;;  %v8443_v45 = vld [vmem:[#allocation24_spill] sm:$0xff] }
 0x3ec   :  { %v1487_v10 = vmax.f32 %v1366_v41, %v1455_v0  ;;  %v1372_v47 = vadd.f32 %v1371_v5, %v8438_v42 }
 0x3ed   :  { %v5273_v19 = vpack.c.bf16 %v1486_v13, %v1484_v15  ;;  %v1456_v56 = vmul.f32 0.01, %v1370_v38 }
 0x3ee   :  { %v1375_v35 = vpop.f32.mrb[8].mxu1  ;;  %v5271_v62 = vpack.c.bf16 %v1487_v10, %v1485_v6  ;;  %v1457_v23 = vmul.f32 0.01, %v1372_v47 }
 0x3ef   :  { %v1376_v20 = vadd.f32 %v1375_v35, %v8439_v44  ;;  %v1377_v59 = vpop.f32.mrb[9].mxu1  ;;  %v1488_v11 = vmax.f32 %v1370_v38, %v1456_v56  ;;  %v8444_v35 = vld [vmem:[#allocation23_spill] sm:$0xff] }
 0x3f0   :  { %v1378_v9 = vadd.f32 %v1377_v59, %v8439_v44  ;;  %5272 = vmatprep.subr.bf16.mxu0 %v5271_v62  ;;  %v1489_v63 = vmax.f32 %v1372_v47, %v1457_v23 }
 0x3f1   :  { %v1458_v28 = vmul.f32 0.01, %v1376_v20  ;;  %5274 = vmatpush1.bf16.msra.mxu0 %v5273_v19 }
 0x3f2   :  { %v1459_v4 = vmul.f32 0.01, %v1378_v9  ;;  %v1381_v48 = vpop.f32.mrb[10].mxu1 }
 0x3f3   :  { %v1490_v24 = vmax.f32 %v1376_v20, %v1458_v28  ;;  %v1382_v57 = vadd.f32 %v1381_v48, %v8440_v55  ;;  %v1383_v26 = vpop.f32.mrb[11].mxu1  ;;  %v8445_v48 = vld [vmem:[#allocation26_spill] sm:$0xff] }
 0x3f4   :  { %v1491_v21 = vmax.f32 %v1378_v9, %v1459_v4  ;;  %v1384_v1 = vadd.f32 %v1383_v26, %v8440_v55 }
 0x3f5   :  { %v5277_v51 = vpack.c.bf16 %v1490_v24, %v1488_v11  ;;  %v1460_v30 = vmul.f32 0.01, %v1382_v57 }
 0x3f6   :  { %v1387_v18 = vpop.f32.mrb[12].mxu1  ;;  %v5275_v7 = vpack.c.bf16 %v1491_v21, %v1489_v63  ;;  %v1461_v31 = vmul.f32 0.01, %v1384_v1 }
 0x3f7   :  { %v1388_v17 = vadd.f32 %v1387_v18, %v8441_v14  ;;  %v1389_v52 = vpop.f32.mrb[13].mxu1  ;;  %v1492_v40 = vmax.f32 %v1382_v57, %v1460_v30  ;;  %v8446_v18 = vld [vmem:[#allocation25_spill] sm:$0xff] }
 0x3f8   :  { %v1390_v33 = vadd.f32 %v1389_v52, %v8441_v14  ;;  %5276 = vmatprep.subr.bf16.mxu0 %v5275_v7  ;;  %v1493_v54 = vmax.f32 %v1384_v1, %v1461_v31 }
 0x3f9   :  { %v1462_v2 = vmul.f32 0.01, %v1388_v17  ;;  %5278 = vmatpush1.bf16.msra.mxu0 %v5277_v51 }
 0x3fa   :  { %v1463_v34 = vmul.f32 0.01, %v1390_v33  ;;  %v1393_v8 = vpop.f32.mrb[14].mxu1 }
 0x3fb   :  { %v1494_v39 = vmax.f32 %v1388_v17, %v1462_v2  ;;  %v1394_v53 = vadd.f32 %v1393_v8, %v8442_v49  ;;  %v1395_v58 = vpop.f32.mrb[15].mxu1  ;;  %v8447_v8 = vld [vmem:[#allocation28_spill] sm:$0xff] }
 0x3fc   :  { %v1495_v27 = vmax.f32 %v1390_v33, %v1463_v34  ;;  %v1396_v29 = vadd.f32 %v1395_v58, %v8442_v49 }
 0x3fd   :  { %v5281_v37 = vpack.c.bf16 %v1494_v39, %v1492_v40  ;;  %v1464_v0 = vmul.f32 0.01, %v1394_v53 }
 0x3fe   :  { %v1399_v41 = vpop.f32.mrb[16].mxu1  ;;  %v5279_v50 = vpack.c.bf16 %v1495_v27, %v1493_v54  ;;  %v1465_v42 = vmul.f32 0.01, %v1396_v29 }
 0x3ff   :  { %v1400_v15 = vadd.f32 %v1399_v41, %v8443_v45  ;;  %v1401_v13 = vpop.f32.mrb[17].mxu1  ;;  %v1496_v47 = vmax.f32 %v1394_v53, %v1464_v0  ;;  %v8448_v41 = vld [vmem:[#allocation27_spill] sm:$0xff] }
 0x400   :  { %v1402_v38 = vadd.f32 %v1401_v13, %v8443_v45  ;;  %5280 = vmatprep.subr.bf16.mxu0 %v5279_v50  ;;  %v1497_v44 = vmax.f32 %v1396_v29, %v1465_v42 }
 0x401   :  { %v1466_v5 = vmul.f32 0.01, %v1400_v15  ;;  %5282 = vmatpush1.bf16.msra.mxu0 %v5281_v37 }
 0x402   :  { %v1467_v6 = vmul.f32 0.01, %v1402_v38  ;;  %v1405_v10 = vpop.f32.mrb[18].mxu1 }
 0x403   :  { %v1498_v19 = vmax.f32 %v1400_v15, %v1466_v5  ;;  %v1406_v62 = vadd.f32 %v1405_v10, %v8444_v35  ;;  %v1407_v56 = vpop.f32.mrb[19].mxu1  ;;  %v8449_v10 = vld [vmem:[#allocation30_spill] sm:$0xff] }
 0x404   :  { %v1499_v20 = vmax.f32 %v1402_v38, %v1467_v6  ;;  %v1408_v59 = vadd.f32 %v1407_v56, %v8444_v35 }
 0x405   :  { %v5285_v23 = vpack.c.bf16 %v1498_v19, %v1496_v47  ;;  %v1468_v4 = vmul.f32 0.01, %v1406_v62 }
 0x406   :  { %v1411_v9 = vpop.f32.mrb[20].mxu1  ;;  %v5283_v28 = vpack.c.bf16 %v1499_v20, %v1497_v44  ;;  %v1469_v55 = vmul.f32 0.01, %v1408_v59 }
 0x407   :  { %v1412_v11 = vadd.f32 %v1411_v9, %v8445_v48  ;;  %v1413_v24 = vpop.f32.mrb[21].mxu1  ;;  %v1500_v1 = vmax.f32 %v1406_v62, %v1468_v4  ;;  %v8450_v9 = vld [vmem:[#allocation29_spill] sm:$0xff] }
 0x408   :  { %v1414_v57 = vadd.f32 %v1413_v24, %v8445_v48  ;;  %5284 = vmatprep.subr.bf16.mxu0 %v5283_v28  ;;  %v1501_v14 = vmax.f32 %v1408_v59, %v1469_v55 }
 0x409   :  { %v1470_v26 = vmul.f32 0.01, %v1412_v11  ;;  %5286 = vmatpush1.bf16.msra.mxu0 %v5285_v23 }
 0x40a   :  { %v1471_v63 = vmul.f32 0.01, %v1414_v57  ;;  %v1417_v21 = vpop.f32.mrb[22].mxu1 }
 0x40b   :  { %v1502_v51 = vmax.f32 %v1412_v11, %v1470_v26  ;;  %v1418_v7 = vadd.f32 %v1417_v21, %v8446_v18  ;;  %v1419_v30 = vpop.f32.mrb[23].mxu1  ;;  %v8451_v21 = vld [vmem:[#allocation32_spill] sm:$0xff] }
 0x40c   :  { %v1503_v17 = vmax.f32 %v1414_v57, %v1471_v63  ;;  %v1420_v52 = vadd.f32 %v1419_v30, %v8446_v18 }
 0x40d   :  { %v5289_v31 = vpack.c.bf16 %v1502_v51, %v1500_v1  ;;  %v1472_v34 = vmul.f32 0.01, %v1418_v7 }
 0x40e   :  { %v1423_v33 = vpop.f32.mrb[24].mxu1  ;;  %v5287_v2 = vpack.c.bf16 %v1503_v17, %v1501_v14  ;;  %v1473_v49 = vmul.f32 0.01, %v1420_v52 }
 0x40f   :  { %v1424_v40 = vadd.f32 %v1423_v33, %v8447_v8  ;;  %v1425_v39 = vpop.f32.mrb[25].mxu1  ;;  %v1504_v29 = vmax.f32 %v1418_v7, %v1472_v34 }
 0x410   :  { %v1426_v53 = vadd.f32 %v1425_v39, %v8447_v8  ;;  %5288 = vmatprep.subr.bf16.mxu0 %v5287_v2  ;;  %v1505_v45 = vmax.f32 %v1420_v52, %v1473_v49  ;;  %v4968_v8 = vld [vmem:[%s8179_s7 + $0x8] sm:$0x3] }
 0x411   :  { %v1474_v58 = vmul.f32 0.01, %v1424_v40  ;;  %5290 = vmatpush1.bf16.msra.mxu0 %v5289_v31  ;;  %v8452_v39 = vld [vmem:[#allocation31_spill] sm:$0xff] }
 0x412   :  { %v1475_v54 = vmul.f32 0.01, %v1426_v53  ;;  %v1429_v27 = vpop.f32.mrb[26].mxu1 }
 0x413   :  { %v1506_v37 = vmax.f32 %v1424_v40, %v1474_v58  ;;  %v1430_v50 = vadd.f32 %v1429_v27, %v8448_v41  ;;  %v1431_v0 = vpop.f32.mrb[27].mxu1 }
 0x414   :  { %v1507_v15 = vmax.f32 %v1426_v53, %v1475_v54  ;;  %v1432_v13 = vadd.f32 %v1431_v0, %v8448_v41 }
 0x415   :  { %v5293_v42 = vpack.c.bf16 %v1506_v37, %v1504_v29  ;;  %v1476_v6 = vmul.f32 0.01, %v1430_v50 }
 0x416   :  { %v1435_v38 = vpop.f32.mrb[28].mxu1  ;;  %v5291_v5 = vpack.c.bf16 %v1507_v15, %v1505_v45  ;;  %v1477_v35 = vmul.f32 0.01, %v1432_v13 }
 0x417   :  { %v1436_v47 = vadd.f32 %v1435_v38, %v8449_v10  ;;  %v1437_v19 = vpop.f32.mrb[29].mxu1  ;;  %v1508_v59 = vmax.f32 %v1430_v50, %v1476_v6  ;;  %v8453_v6 = vld [vmem:[#allocation9_spill] sm:$0xff] }
 0x418   :  { %v1438_v62 = vadd.f32 %v1437_v19, %v8449_v10  ;;  %5292 = vmatprep.subr.bf16.mxu0 %v5291_v5  ;;  %v1509_v48 = vmax.f32 %v1432_v13, %v1477_v35 }
 0x419   :  { %v1478_v56 = vmul.f32 0.01, %v1436_v47  ;;  %5294 = vmatpush1.bf16.msra.mxu0 %v5293_v42 }
 0x41a   :  { %v1479_v44 = vmul.f32 0.01, %v1438_v62  ;;  %v1441_v20 = vpop.f32.mrb[30].mxu1 }
 0x41b   :  { %v1510_v23 = vmax.f32 %v1436_v47, %v1478_v56  ;;  %v1442_v28 = vadd.f32 %v1441_v20, %v8450_v9  ;;  %v1443_v4 = vpop.f32.mrb[31].mxu1  ;;  %v8454_v47 = vld [vmem:[#allocation10_spill] sm:$0xff]  ;;  %v8456_v20 = vld [vmem:[#allocation33_spill] sm:$0xff] }
 0x41c   :  { %v1511_v11 = vmax.f32 %v1438_v62, %v1479_v44  ;;  %v1444_v24 = vadd.f32 %v1443_v4, %v8450_v9  ;;  %v8455_v56 = vld [vmem:[#allocation34_spill] sm:$0xff] }
 0x41d   :  { %v5297_v55 = vpack.c.bf16 %v1510_v23, %v1508_v59  ;;  %v1480_v63 = vmul.f32 0.01, %v1442_v28 }
 0x41e   :  { %v1447_v57 = vpop.f32.mrb[32].mxu1  ;;  %v5295_v26 = vpack.c.bf16 %v1511_v11, %v1509_v48  ;;  %v1481_v18 = vmul.f32 0.01, %v1444_v24  ;;  %v8458_v48 = vld [vmem:[#allocation37_spill] sm:$0xff] }
 0x41f   :  { %v1448_v1 = vadd.f32 %v1447_v57, %v8451_v21  ;;  %v1449_v51 = vpop.f32.mrb[33].mxu1  ;;  %v1512_v17 = vmax.f32 %v1442_v28, %v1480_v63  ;;  %v8457_v28 = vld [vmem:[#allocation38_spill] sm:$0xff]  ;;  %v8459_v57 = vld [vmem:[#allocation36_spill] sm:$0xff]  ;;  %v8460_v63 = vld [vmem:[#allocation35_spill] sm:$0xff] }
 0x420   :  { %v1450_v7 = vadd.f32 %v1449_v51, %v8451_v21  ;;  %5296 = vmatprep.subr.bf16.mxu0 %v5295_v26  ;;  %v1513_v31 = vmax.f32 %v1444_v24, %v1481_v18  ;;  %v8461_v18 = vld [vmem:[#allocation40_spill] sm:$0xff] }
 0x421   :  { %v1482_v30 = vmul.f32 0.01, %v1448_v1  ;;  %5298 = vmatpush1.bf16.msra.mxu0 %v5297_v55 }
 0x422   :  { %v1483_v14 = vmul.f32 0.01, %v1450_v7 }
 0x423   :  { %v1514_v52 = vmax.f32 %v1448_v1, %v1482_v30  ;;  %v8462_v30 = vld [vmem:[#allocation39_spill] sm:$0xff] }
 0x424   :  { %v1515_v33 = vmax.f32 %v1450_v7, %v1483_v14 }
 0x425   :  { %v5301_v2 = vpack.c.bf16 %v1514_v52, %v1512_v17 }
 0x426   :  { %v5299_v34 = vpack.c.bf16 %v1515_v33, %v1513_v31 }
 0x428   :  { %5300 = vmatprep.subr.bf16.mxu0 %v5299_v34  ;;  %v8463_v34 = vld [vmem:[#allocation42_spill] sm:$0xff] }
 0x429   :  { %5302 = vmatpush1.bf16.msra.mxu0 %v5301_v2 }
 0x42c   :  { %1590 = vmatmul.mubr.f32.vlgmr.msra.gmra.mrb[32].mxu0 %v4968_v8 }
 0x42d   :  { %2137 = vmatprep.mubr.f32.mxu0 %v8396_v25 }
 0x4ff   :  { %v1591_v40 = vpop.f32.mrb[32].mxu0 }
 0x500   :  { %v1592_v49 = vadd.f32 %v1591_v40, %v8452_v39  ;;  %v1593_v53 = vpop.f32.mrb[33].mxu0 }
 0x501   :  { %v1594_v58 = vadd.f32 %v1593_v53, %v8452_v39  ;;  %v8464_v53 = vld [vmem:[#allocation41_spill] sm:$0xff] }
 0x502   :  { %5580 = vtanh.f32 %v1592_v49 }
 0x503   :  { %5582 = vtanh.f32 %v1594_v58  ;;  %v1600_v54 = vcombine.low %v1592_v49, %v1594_v58 }
 0x505   :  { %v4970_v45 = vrot.slane %v1600_v54, 9 }
 0x507   :  { %v1604_v42 = vsub.f32 %v5903_v12, %v4970_v45 }
 0x50c   :  { %v7306_v27 = vpop.eup %5580 }
 0x50d   :  { %v7308_v29 = vpop.eup %5582  ;;  %v1605_v37 = vsub.f32 0.0, %v7306_v27 }
 0x50e   :  { %v1606_v41 = vsub.f32 0.0, %v7308_v29 }
 0x50f   :  { %v1607_v50 = vmul.f32 1.442695, %v1605_v37 }
 0x510   :  { %v1609_v0 = vmul.f32 1.442695, %v1606_v41 }
 0x511   :  { %5584 = vpow2.f32 %v1607_v50 }
 0x512   :  { %5586 = vpow2.f32 %v1609_v0 }
 0x51b   :  { %v5585_v15 = vpop.eup %5584 }
 0x51c   :  { %v5587_v13 = vpop.eup %5586 }
 0x51d   :  { %v1613_v38 = vcombine.low %v5585_v15, %v5587_v13 }
 0x51f   :  { %v7313_v5 = vmul.f32 %v1613_v38, %v1604_v42 }
 0x521   :  { %v1719_v10 = vrot.slane %v7313_v5, %v8453_v6  ;;  %v1723_v19 = vrot.slane %v7313_v5, %v8454_v47 }
 0x523   :  { %v7320_v35 = vrot.slane %v1719_v10, %v8453_v6  ;;  %v7323_v62 = vrot.slane %v1723_v19, %v8453_v6  ;;  %v8465_v10 = vld [vmem:[#allocation44_spill] sm:$0xff] }
 0x525   :  { %v1735_v44 = vmul.f32 %v7323_v62, %v8455_v56  ;;  %v1737_v59 = vmul.f32 %v7323_v62, %v8456_v20  ;;  %v1734_v23 = vmul.f32 %v7320_v35, %v8455_v56  ;;  %v1736_v9 = vmul.f32 %v7320_v35, %v8456_v20  ;;  %v8466_v56 = vld [vmem:[#allocation43_spill] sm:$0xff] }
 0x526   :  { %v1739_v4 = vmul.f32 %v7323_v62, %v8457_v28  ;;  %v1741_v11 = vmul.f32 %v7323_v62, %v8458_v48  ;;  %v1738_v24 = vmul.f32 %v7320_v35, %v8457_v28  ;;  %v1740_v55 = vmul.f32 %v7320_v35, %v8458_v48 }
 0x527   :  { %v1864_v26 = vadd.f32 %v8459_v57, %v1735_v44  ;;  %v1866_v21 = vadd.f32 %v8460_v63, %v1737_v59  ;;  %v1863_v1 = vadd.f32 %v8459_v57, %v1734_v23  ;;  %v1865_v51 = vadd.f32 %v8460_v63, %v1736_v9 }
 0x528   :  { %v1868_v7 = vadd.f32 %v8461_v18, %v1739_v4  ;;  %v1870_v14 = vadd.f32 %v8462_v30, %v1741_v11  ;;  %v1867_v17 = vadd.f32 %v8461_v18, %v1738_v24  ;;  %v1869_v52 = vadd.f32 %v8462_v30, %v1740_v55  ;;  %v8467_v11 = vld [vmem:[#allocation46_spill] sm:$0xff] }
 0x529   :  { %v1896_v31 = vmul.f32 0.01, %v1864_v26  ;;  %v1898_v33 = vmul.f32 0.01, %v1866_v21  ;;  %v1895_v2 = vmul.f32 0.01, %v1863_v1  ;;  %v1743_v8 = vmul.f32 %v7323_v62, %v8463_v34 }
 0x52a   :  { %v1897_v40 = vmul.f32 0.01, %v1865_v51  ;;  %v1900_v39 = vmul.f32 0.01, %v1868_v7  ;;  %v1902_v49 = vmul.f32 0.01, %v1870_v14  ;;  %v1745_v58 = vmul.f32 %v7323_v62, %v8464_v53 }
 0x52b   :  { %v1928_v54 = vmax.f32 %v1864_v26, %v1896_v31  ;;  %v1930_v37 = vmax.f32 %v1866_v21, %v1898_v33  ;;  %v1927_v41 = vmax.f32 %v1863_v1, %v1895_v2  ;;  %v1899_v50 = vmul.f32 0.01, %v1867_v17  ;;  %v8468_v26 = vld [vmem:[#allocation45_spill] sm:$0xff] }
 0x52c   :  { %v1929_v0 = vmax.f32 %v1865_v51, %v1897_v40  ;;  %v1932_v45 = vmax.f32 %v1868_v7, %v1900_v39  ;;  %v1934_v15 = vmax.f32 %v1870_v14, %v1902_v49  ;;  %v1901_v13 = vmul.f32 0.01, %v1869_v52  ;;  %v8469_v7 = vld [vmem:[#allocation48_spill] sm:$0xff]  ;;  %v8471_v40 = vld [vmem:[#allocation50_spill] sm:$0xff] }
 0x52d   :  { %v5303_v42 = vpack.c.bf16 %v1930_v37, %v1928_v54  ;;  %v1931_v38 = vmax.f32 %v1867_v17, %v1899_v50  ;;  %v1872_v19 = vadd.f32 %v8465_v10, %v1743_v8  ;;  %v1874_v44 = vadd.f32 %v8466_v56, %v1745_v58  ;;  %v8470_v17 = vld [vmem:[#allocation47_spill] sm:$0xff]  ;;  %v8472_v50 = vld [vmem:[#allocation49_spill] sm:$0xff] }
 0x52e   :  { %v5305_v20 = vpack.c.bf16 %v1929_v0, %v1927_v41  ;;  %v5307_v59 = vpack.c.bf16 %v1934_v15, %v1932_v45  ;;  %v1933_v23 = vmax.f32 %v1869_v52, %v1901_v13  ;;  %v1742_v9 = vmul.f32 %v7320_v35, %v8463_v34  ;;  %v8473_v45 = vld [vmem:[#allocation52_spill] sm:$0xff] }
 0x52f   :  { %5304 = vmatprep.subr.bf16.mxu0 %v5303_v42  ;;  %v1904_v28 = vmul.f32 0.01, %v1872_v19  ;;  %v1906_v4 = vmul.f32 0.01, %v1874_v44  ;;  %v1744_v48 = vmul.f32 %v7320_v35, %v8464_v53  ;;  %v1747_v24 = vmul.f32 %v7323_v62, %v8467_v11 }
 0x530   :  { %5306 = vmatpush1.bf16.msra.mxu0 %v5305_v20  ;;  %v5309_v55 = vpack.c.bf16 %v1933_v23, %v1931_v38  ;;  %v1871_v57 = vadd.f32 %v8465_v10, %v1742_v9  ;;  %v1749_v63 = vmul.f32 %v7323_v62, %v8468_v26  ;;  %v1746_v21 = vmul.f32 %v7320_v35, %v8467_v11 }
 0x531   :  { %5308 = vmatprep.subr.bf16.mxu0 %v5307_v59  ;;  %v1936_v1 = vmax.f32 %v1872_v19, %v1904_v28  ;;  %v1938_v51 = vmax.f32 %v1874_v44, %v1906_v4  ;;  %v1873_v18 = vadd.f32 %v8466_v56, %v1744_v48  ;;  %v1876_v30 = vadd.f32 %v8469_v7, %v1747_v24  ;;  %v8474_v56 = vld [vmem:[#allocation51_spill] sm:$0xff]  ;;  %v8475_v4 = vld [vmem:[#allocation54_spill] sm:$0xff] }
 0x532   :  { %v1903_v14 = vmul.f32 0.01, %v1871_v57  ;;  %v1878_v52 = vadd.f32 %v8470_v17, %v1749_v63  ;;  %v1748_v31 = vmul.f32 %v7320_v35, %v8468_v26  ;;  %v1875_v33 = vadd.f32 %v8469_v7, %v1746_v21 }
 0x533   :  { %v5311_v2 = vpack.c.bf16 %v1938_v51, %v1936_v1  ;;  %v1905_v34 = vmul.f32 0.01, %v1873_v18  ;;  %v1908_v8 = vmul.f32 0.01, %v1876_v30  ;;  %v1751_v39 = vmul.f32 %v7323_v62, %v8471_v40  ;;  %v8477_v1 = vld [vmem:[#allocation56_spill] sm:$0xff] }
 0x534   :  { %5310 = vmatpush1.bf16.msra.mxu0 %v5309_v55  ;;  %v1935_v49 = vmax.f32 %v1871_v57, %v1903_v14  ;;  %v1910_v53 = vmul.f32 0.01, %v1878_v52  ;;  %v1877_v58 = vadd.f32 %v8470_v17, %v1748_v31  ;;  %v1907_v54 = vmul.f32 0.01, %v1875_v33  ;;  %v8476_v57 = vld [vmem:[#allocation53_spill] sm:$0xff]  ;;  %v8478_v14 = vld [vmem:[#allocation55_spill] sm:$0xff] }
 0x535   :  { %5312 = vmatprep.subr.bf16.mxu0 %v5311_v2  ;;  %v1937_v37 = vmax.f32 %v1873_v18, %v1905_v34  ;;  %v1940_v41 = vmax.f32 %v1876_v30, %v1908_v8  ;;  %v1753_v0 = vmul.f32 %v7323_v62, %v8472_v50  ;;  %v1880_v15 = vadd.f32 %v8473_v45, %v1751_v39  ;;  %v8479_v34 = vld [vmem:[#allocation58_spill] sm:$0xff] }
 0x536   :  { %v1942_v13 = vmax.f32 %v1878_v52, %v1910_v53  ;;  %v1909_v42 = vmul.f32 0.01, %v1877_v58  ;;  %v1939_v38 = vmax.f32 %v1875_v33, %v1907_v54  ;;  %v1750_v10 = vmul.f32 %v7320_v35, %v8471_v40 }
 0x537   :  { %v5313_v19 = vpack.c.bf16 %v1937_v37, %v1935_v49  ;;  %v1882_v44 = vadd.f32 %v8474_v56, %v1753_v0  ;;  %v1912_v20 = vmul.f32 0.01, %v1880_v15  ;;  %v1752_v59 = vmul.f32 %v7320_v35, %v8472_v50  ;;  %v8480_v37 = vld [vmem:[#allocation57_spill] sm:$0xff]  ;;  %v8481_v50 = vld [vmem:[#allocation60_spill] sm:$0xff] }
 0x538   :  { %v5315_v23 = vpack.c.bf16 %v1942_v13, %v1940_v41  ;;  %v1941_v9 = vmax.f32 %v1877_v58, %v1909_v42  ;;  %v1879_v28 = vadd.f32 %v8473_v45, %v1750_v10  ;;  %v1755_v48 = vmul.f32 %v7323_v62, %v8475_v4  ;;  %v8482_v10 = vld [vmem:[#allocation59_spill] sm:$0xff] }
 0x539   :  { %5314 = vmatpush1.bf16.msra.mxu0 %v5313_v19  ;;  %v1914_v11 = vmul.f32 0.01, %v1882_v44  ;;  %v1944_v24 = vmax.f32 %v1880_v15, %v1912_v20  ;;  %v1881_v55 = vadd.f32 %v8474_v56, %v1752_v59  ;;  %v1757_v26 = vmul.f32 %v7323_v62, %v8476_v57 }
 0x53a   :  { %5316 = vmatprep.subr.bf16.mxu0 %v5315_v23  ;;  %v5317_v63 = vpack.c.bf16 %v1941_v9, %v1939_v38  ;;  %v1911_v21 = vmul.f32 0.01, %v1879_v28  ;;  %v1884_v51 = vadd.f32 %v8477_v1, %v1755_v48  ;;  %v1754_v18 = vmul.f32 %v7320_v35, %v8475_v4  ;;  %v8483_v9 = vld [vmem:[#allocation62_spill] sm:$0xff] }
 0x53b   :  { %v1946_v7 = vmax.f32 %v1882_v44, %v1914_v11  ;;  %v1913_v30 = vmul.f32 0.01, %v1881_v55  ;;  %v1886_v17 = vadd.f32 %v8478_v14, %v1757_v26  ;;  %v1756_v52 = vmul.f32 %v7320_v35, %v8476_v57 }
 0x53c   :  { %v1943_v31 = vmax.f32 %v1879_v28, %v1911_v21  ;;  %v1916_v33 = vmul.f32 0.01, %v1884_v51  ;;  %v1883_v2 = vadd.f32 %v8477_v1, %v1754_v18  ;;  %v1759_v8 = vmul.f32 %v7323_v62, %v8479_v34 }
 0x53d   :  { %5318 = vmatpush1.bf16.msra.mxu0 %v5317_v63  ;;  %v5319_v40 = vpack.c.bf16 %v1946_v7, %v1944_v24  ;;  %v1945_v39 = vmax.f32 %v1881_v55, %v1913_v30  ;;  %v1918_v49 = vmul.f32 0.01, %v1886_v17  ;;  %v1885_v53 = vadd.f32 %v8478_v14, %v1756_v52  ;;  %v8484_v24 = vld [vmem:[#allocation61_spill] sm:$0xff]  ;;  %v8485_v63 = vld [vmem:[#allocation64_spill] sm:$0xff]  ;;  %v8486_v7 = vld [vmem:[#allocation63_spill] sm:$0xff] }
 0x53e   :  { %v1948_v58 = vmax.f32 %v1884_v51, %v1916_v33  ;;  %v1915_v54 = vmul.f32 0.01, %v1883_v2  ;;  %v1761_v41 = vmul.f32 %v7323_v62, %v8480_v37  ;;  %v1888_v0 = vadd.f32 %v8481_v50, %v1759_v8 }
 0x53f   :  { %5320 = vmatprep.subr.bf16.mxu0 %v5319_v40  ;;  %v5321_v45 = vpack.c.bf16 %v1945_v39, %v1943_v31  ;;  %v1950_v15 = vmax.f32 %v1886_v17, %v1918_v49  ;;  %v1917_v13 = vmul.f32 0.01, %v1885_v53  ;;  %v1758_v42 = vmul.f32 %v7320_v35, %v8479_v34 }
 0x540   :  { %v1947_v38 = vmax.f32 %v1883_v2, %v1915_v54  ;;  %v1890_v19 = vadd.f32 %v8482_v10, %v1761_v41  ;;  %v1920_v56 = vmul.f32 0.01, %v1888_v0  ;;  %v1760_v44 = vmul.f32 %v7320_v35, %v8480_v37  ;;  %v5003_v41 = vld [vmem:[%s8177_s5 + $0x180] sm:$0xff] }
 0x541   :  { %5322 = vmatpush1.bf16.msra.mxu0 %v5321_v45  ;;  %v5323_v20 = vpack.c.bf16 %v1950_v15, %v1948_v58  ;;  %v1949_v59 = vmax.f32 %v1885_v53, %v1917_v13  ;;  %v1887_v23 = vadd.f32 %v8481_v50, %v1758_v42  ;;  %v1763_v28 = vmul.f32 %v7323_v62, %v8483_v9  ;;  %v5004_v50 = vld [vmem:[%s8177_s5 + $0x188] sm:$0xff]  ;;  %v5006_v45 = vld [vmem:[%s8177_s5 + $0x198] sm:$0xff]  ;;  %v5007_v15 = vld [vmem:[%s8177_s5 + $0x1a0] sm:$0xff] }
 0x542   :  { %v1922_v4 = vmul.f32 0.01, %v1890_v19  ;;  %v1952_v48 = vmax.f32 %v1888_v0, %v1920_v56  ;;  %v1889_v11 = vadd.f32 %v8482_v10, %v1760_v44  ;;  %v1765_v55 = vmul.f32 %v7323_v62, %v8484_v24  ;;  %v5005_v0 = vld [vmem:[%s8177_s5 + $0x190] sm:$0xff]  ;;  %v5008_v13 = vld [vmem:[%s8177_s5 + $0x1a8] sm:$0xff]  ;;  %v5011_v10 = vld [vmem:[%s8177_s5 + $0x1c0] sm:$0xff] }
 0x543   :  { %5324 = vmatprep.subr.bf16.mxu0 %v5323_v20  ;;  %v5325_v57 = vpack.c.bf16 %v1949_v59, %v1947_v38  ;;  %v1919_v26 = vmul.f32 0.01, %v1887_v23  ;;  %v1892_v21 = vadd.f32 %v8485_v63, %v1763_v28  ;;  %v1762_v1 = vmul.f32 %v7320_v35, %v8483_v9  ;;  %v5009_v42 = vld [vmem:[%s8177_s5 + $0x1b0] sm:$0xff]  ;;  %v5010_v38 = vld [vmem:[%s8177_s5 + $0x1b8] sm:$0xff]  ;;  %v5015_v20 = vld [vmem:[%s8177_s5 + $0x1e0] sm:$0xff] }
 0x544   :  { %v1954_v51 = vmax.f32 %v1890_v19, %v1922_v4  ;;  %v1921_v18 = vmul.f32 0.01, %v1889_v11  ;;  %v1894_v30 = vadd.f32 %v8486_v7, %v1765_v55  ;;  %v1764_v14 = vmul.f32 %v7320_v35, %v8484_v24  ;;  %v5012_v19 = vld [vmem:[%s8177_s5 + $0x1c8] sm:$0xff]  ;;  %v5013_v56 = vld [vmem:[%s8177_s5 + $0x1d0] sm:$0xff]  ;;  %v5014_v44 = vld [vmem:[%s8177_s5 + $0x1d8] sm:$0xff] }
 0x545   :  { %5326 = vmatpush1.bf16.msra.mxu0 %v5325_v57  ;;  %v1951_v17 = vmax.f32 %v1887_v23, %v1919_v26  ;;  %v1924_v52 = vmul.f32 0.01, %v1892_v21  ;;  %v1891_v62 = vadd.f32 %v8485_v63, %v1762_v1  ;;  %v5016_v59 = vld [vmem:[%s8177_s5 + $0x1e8] sm:$0xff]  ;;  %v5017_v23 = vld [vmem:[%s8177_s5 + $0x1f0] sm:$0xff]  ;;  %v5018_v9 = vld [vmem:[%s8177_s5 + $0x1f8] sm:$0xff] }
 0x546   :  { %v5327_v31 = vpack.c.bf16 %v1954_v51, %v1952_v48  ;;  %v1953_v33 = vmax.f32 %v1889_v11, %v1921_v18  ;;  %v1926_v2 = vmul.f32 0.01, %v1894_v30  ;;  %v1893_v34 = vadd.f32 %v8486_v7, %v1764_v14  ;;  %v8487_v4 = vld [vmem:[#allocation66_spill] sm:$0xff]  ;;  %v8488_v26 = vld [vmem:[#allocation65_spill] sm:$0xff] }
 0x547   :  { %v1956_v8 = vmax.f32 %v1892_v21, %v1924_v52  ;;  %v1923_v40 = vmul.f32 0.01, %v1891_v62  ;;  %v8489_v52 = vld [vmem:[#allocation68_spill] sm:$0xff] }
 0x548   :  { %5328 = vmatprep.subr.bf16.mxu0 %v5327_v31  ;;  %v5329_v39 = vpack.c.bf16 %v1953_v33, %v1951_v17  ;;  %v1958_v49 = vmax.f32 %v1894_v30, %v1926_v2  ;;  %v1925_v53 = vmul.f32 0.01, %v1893_v34 }
 0x549   :  { %v1955_v58 = vmax.f32 %v1891_v62, %v1923_v40 }
 0x54a   :  { %5330 = vmatpush1.bf16.msra.mxu0 %v5329_v39  ;;  %v5331_v54 = vpack.c.bf16 %v1958_v49, %v1956_v8  ;;  %v1957_v35 = vmax.f32 %v1893_v34, %v1925_v53  ;;  %v8490_v53 = vld [vmem:[#allocation67_spill] sm:$0xff] }
 0x54c   :  { %5332 = vmatprep.subr.bf16.mxu0 %v5331_v54  ;;  %v5333_v37 = vpack.c.bf16 %v1957_v35, %v1955_v58 }
 0x54e   :  { %5334 = vmatpush1.bf16.msra.mxu0 %v5333_v37 }
 0x551   :  { %2138 = vmatmul.mubr.f32.vlgmr.msra.gmra.mrb[34].mxu0 %v5003_v41 }
 0x552   :  { %2143 = vmatprep.mubr.f32.mxu0 %v8396_v25 }
 0x555   :  { %2144 = vmatmul.mubr.f32.gmra.mrb[36].mxu0 %v5004_v50 }
 0x556   :  { %2149 = vmatprep.mubr.f32.mxu0 %v8396_v25 }
 0x559   :  { %2150 = vmatmul.mubr.f32.gmra.mrb[38].mxu0 %v5005_v0 }
 0x55a   :  { %2155 = vmatprep.mubr.f32.mxu0 %v8396_v25 }
 0x55d   :  { %2156 = vmatmul.mubr.f32.gmra.mrb[40].mxu0 %v5006_v45 }
 0x55e   :  { %2161 = vmatprep.mubr.f32.mxu0 %v8396_v25 }
 0x561   :  { %2162 = vmatmul.mubr.f32.gmra.mrb[42].mxu0 %v5007_v15 }
 0x562   :  { %2167 = vmatprep.mubr.f32.mxu0 %v8396_v25 }
 0x565   :  { %2168 = vmatmul.mubr.f32.gmra.mrb[44].mxu0 %v5008_v13  ;;  %v8491_v13 = vld [vmem:[#allocation70_spill] sm:$0xff] }
 0x566   :  { %2173 = vmatprep.mubr.f32.mxu0 %v8396_v25 }
 0x569   :  { %2174 = vmatmul.mubr.f32.gmra.mrb[46].mxu0 %v5009_v42 }
 0x56a   :  { %2179 = vmatprep.mubr.f32.mxu0 %v8396_v25 }
 0x56d   :  { %2180 = vmatmul.mubr.f32.gmra.mrb[48].mxu0 %v5010_v38 }
 0x56e   :  { %2185 = vmatprep.mubr.f32.mxu0 %v8396_v25 }
 0x571   :  { %2186 = vmatmul.mubr.f32.gmra.mrb[50].mxu0 %v5011_v10 }
 0x572   :  { %2191 = vmatprep.mubr.f32.mxu0 %v8396_v25 }
 0x575   :  { %2192 = vmatmul.mubr.f32.gmra.mrb[52].mxu0 %v5012_v19 }
 0x576   :  { %2197 = vmatprep.mubr.f32.mxu0 %v8396_v25 }
 0x579   :  { %2198 = vmatmul.mubr.f32.gmra.mrb[54].mxu0 %v5013_v56 }
 0x57a   :  { %2203 = vmatprep.mubr.f32.mxu0 %v8396_v25 }
 0x57d   :  { %2204 = vmatmul.mubr.f32.gmra.mrb[56].mxu0 %v5014_v44 }
 0x57e   :  { %2209 = vmatprep.mubr.f32.mxu0 %v8396_v25 }
 0x581   :  { %2210 = vmatmul.mubr.f32.gmra.mrb[58].mxu0 %v5015_v20 }
 0x582   :  { %2215 = vmatprep.mubr.f32.mxu0 %v8396_v25 }
 0x585   :  { %2216 = vmatmul.mubr.f32.gmra.mrb[60].mxu0 %v5016_v59 }
 0x586   :  { %2221 = vmatprep.mubr.f32.mxu0 %v8396_v25 }
 0x589   :  { %2222 = vmatmul.mubr.f32.gmra.mrb[62].mxu0 %v5017_v23 }
 0x58a   :  { %2227 = vmatprep.mubr.f32.mxu0 %v8396_v25 }
 0x58d   :  { %2228 = vmatmul.mubr.f32.gmra.mrb[64].mxu0 %v5018_v9  ;;  %v8492_v9 = vld [vmem:[#allocation69_spill] sm:$0xff] }
 0x58e   :  { %3152 = vmatprep.mubr.f32.mxu0 %v8396_v25 }
 0x624   :  { %v2139_v28 = vpop.f32.mrb[34].mxu0 }
 0x625   :  { %v2140_v48 = vadd.f32 %v2139_v28, %v8487_v4  ;;  %v2141_v11 = vpop.f32.mrb[35].mxu0 }
 0x626   :  { %v2142_v24 = vadd.f32 %v2141_v11, %v8487_v4 }
 0x627   :  { %v2234_v57 = vmul.f32 0.01, %v2140_v48 }
 0x628   :  { %v2145_v55 = vpop.f32.mrb[36].mxu0  ;;  %v2235_v1 = vmul.f32 0.01, %v2142_v24 }
 0x629   :  { %v2146_v63 = vadd.f32 %v2145_v55, %v8488_v26  ;;  %v2147_v21 = vpop.f32.mrb[37].mxu0  ;;  %v2266_v14 = vmax.f32 %v2140_v48, %v2234_v57 }
 0x62a   :  { %v2148_v51 = vadd.f32 %v2147_v21, %v8488_v26  ;;  %v2267_v33 = vmax.f32 %v2142_v24, %v2235_v1  ;;  %v8493_v21 = vld [vmem:[#allocation72_spill] sm:$0xff] }
 0x62b   :  { %v2236_v18 = vmul.f32 0.01, %v2146_v63 }
 0x62c   :  { %v2237_v7 = vmul.f32 0.01, %v2148_v51  ;;  %v2151_v30 = vpop.f32.mrb[38].mxu0 }
 0x62d   :  { %v2268_v17 = vmax.f32 %v2146_v63, %v2236_v18  ;;  %v2152_v62 = vadd.f32 %v2151_v30, %v8489_v52  ;;  %v2153_v31 = vpop.f32.mrb[39].mxu0 }
 0x62e   :  { %v2269_v2 = vmax.f32 %v2148_v51, %v2237_v7  ;;  %v2154_v34 = vadd.f32 %v2153_v31, %v8489_v52  ;;  %v8494_v31 = vld [vmem:[#allocation71_spill] sm:$0xff] }
 0x62f   :  { %v5337_v8 = vpack.c.bf16 %v2268_v17, %v2266_v14  ;;  %v2238_v49 = vmul.f32 0.01, %v2152_v62 }
 0x630   :  { %v2157_v40 = vpop.f32.mrb[40].mxu0  ;;  %v5335_v39 = vpack.c.bf16 %v2269_v2, %v2267_v33  ;;  %v2239_v35 = vmul.f32 0.01, %v2154_v34 }
 0x631   :  { %v2158_v58 = vadd.f32 %v2157_v40, %v8490_v53  ;;  %v2159_v54 = vpop.f32.mrb[41].mxu0  ;;  %v2270_v45 = vmax.f32 %v2152_v62, %v2238_v49 }
 0x632   :  { %v2160_v37 = vadd.f32 %v2159_v54, %v8490_v53  ;;  %5336 = vmatprep.subr.bf16.mxu1 %v5335_v39  ;;  %v2271_v10 = vmax.f32 %v2154_v34, %v2239_v35  ;;  %v8495_v54 = vld [vmem:[#allocation74_spill] sm:$0xff] }
 0x633   :  { %v2240_v41 = vmul.f32 0.01, %v2158_v58  ;;  %5338 = vmatpush1.bf16.msra.mxu1 %v5337_v8 }
 0x634   :  { %v2241_v50 = vmul.f32 0.01, %v2160_v37  ;;  %v2163_v0 = vpop.f32.mrb[42].mxu0 }
 0x635   :  { %v2272_v15 = vmax.f32 %v2158_v58, %v2240_v41  ;;  %v2164_v42 = vadd.f32 %v2163_v0, %v8491_v13  ;;  %v2165_v38 = vpop.f32.mrb[43].mxu0 }
 0x636   :  { %v2273_v19 = vmax.f32 %v2160_v37, %v2241_v50  ;;  %v2166_v56 = vadd.f32 %v2165_v38, %v8491_v13  ;;  %v8496_v38 = vld [vmem:[#allocation73_spill] sm:$0xff] }
 0x637   :  { %v5341_v44 = vpack.c.bf16 %v2272_v15, %v2270_v45  ;;  %v2242_v23 = vmul.f32 0.01, %v2164_v42 }
 0x638   :  { %v2169_v20 = vpop.f32.mrb[44].mxu0  ;;  %v5339_v59 = vpack.c.bf16 %v2273_v19, %v2271_v10  ;;  %v2243_v48 = vmul.f32 0.01, %v2166_v56 }
 0x639   :  { %v2170_v28 = vadd.f32 %v2169_v20, %v8492_v9  ;;  %v2171_v4 = vpop.f32.mrb[45].mxu0  ;;  %v2274_v26 = vmax.f32 %v2164_v42, %v2242_v23 }
 0x63a   :  { %v2172_v11 = vadd.f32 %v2171_v4, %v8492_v9  ;;  %5340 = vmatprep.subr.bf16.mxu1 %v5339_v59  ;;  %v2275_v18 = vmax.f32 %v2166_v56, %v2243_v48 }
 0x63b   :  { %v2244_v24 = vmul.f32 0.01, %v2170_v28  ;;  %5342 = vmatpush1.bf16.msra.mxu1 %v5341_v44 }
 0x63c   :  { %v2245_v55 = vmul.f32 0.01, %v2172_v11  ;;  %v2175_v57 = vpop.f32.mrb[46].mxu0 }
 0x63d   :  { %v2276_v63 = vmax.f32 %v2170_v28, %v2244_v24  ;;  %v2176_v1 = vadd.f32 %v2175_v57, %v8493_v21  ;;  %v2177_v51 = vpop.f32.mrb[47].mxu0 }
 0x63e   :  { %v2277_v7 = vmax.f32 %v2172_v11, %v2245_v55  ;;  %v2178_v30 = vadd.f32 %v2177_v51, %v8493_v21 }
 0x63f   :  { %v5345_v14 = vpack.c.bf16 %v2276_v63, %v2274_v26  ;;  %v2246_v62 = vmul.f32 0.01, %v2176_v1 }
 0x640   :  { %v2181_v17 = vpop.f32.mrb[48].mxu0  ;;  %v5343_v52 = vpack.c.bf16 %v2277_v7, %v2275_v18  ;;  %v2247_v34 = vmul.f32 0.01, %v2178_v30 }
 0x641   :  { %v2182_v33 = vadd.f32 %v2181_v17, %v8494_v31  ;;  %v2183_v2 = vpop.f32.mrb[49].mxu0  ;;  %v2278_v53 = vmax.f32 %v2176_v1, %v2246_v62  ;;  %v8497_v1 = vld [vmem:[#allocation75_spill] sm:$0xff] }
 0x642   :  { %v2184_v8 = vadd.f32 %v2183_v2, %v8494_v31  ;;  %5344 = vmatprep.subr.bf16.mxu1 %v5343_v52  ;;  %v2279_v41 = vmax.f32 %v2178_v30, %v2247_v34 }
 0x643   :  { %v2248_v40 = vmul.f32 0.01, %v2182_v33  ;;  %5346 = vmatpush1.bf16.msra.mxu1 %v5345_v14 }
 0x644   :  { %v2249_v39 = vmul.f32 0.01, %v2184_v8  ;;  %v2187_v49 = vpop.f32.mrb[50].mxu0 }
 0x645   :  { %v2280_v58 = vmax.f32 %v2182_v33, %v2248_v40  ;;  %v2188_v35 = vadd.f32 %v2187_v49, %v8495_v54  ;;  %v2189_v37 = vpop.f32.mrb[51].mxu0 }
 0x646   :  { %v2281_v50 = vmax.f32 %v2184_v8, %v2249_v39  ;;  %v2190_v0 = vadd.f32 %v2189_v37, %v8495_v54 }
 0x647   :  { %v5349_v45 = vpack.c.bf16 %v2280_v58, %v2278_v53  ;;  %v2250_v42 = vmul.f32 0.01, %v2188_v35 }
 0x648   :  { %v2193_v15 = vpop.f32.mrb[52].mxu0  ;;  %v5347_v13 = vpack.c.bf16 %v2281_v50, %v2279_v41  ;;  %v2251_v56 = vmul.f32 0.01, %v2190_v0 }
 0x649   :  { %v2194_v10 = vadd.f32 %v2193_v15, %v8496_v38  ;;  %v2195_v19 = vpop.f32.mrb[53].mxu0  ;;  %v2282_v9 = vmax.f32 %v2188_v35, %v2250_v42 }
 0x64a   :  { %v2196_v44 = vadd.f32 %v2195_v19, %v8496_v38  ;;  %5348 = vmatprep.subr.bf16.mxu1 %v5347_v13  ;;  %v2283_v11 = vmax.f32 %v2190_v0, %v2251_v56  ;;  %v8498_v13 = vld [vmem:[#allocation77_spill] sm:$0xff] }
 0x64b   :  { %v2252_v20 = vmul.f32 0.01, %v2194_v10  ;;  %5350 = vmatpush1.bf16.msra.mxu1 %v5349_v45 }
 0x64c   :  { %v2253_v59 = vmul.f32 0.01, %v2196_v44  ;;  %v2199_v23 = vpop.f32.mrb[54].mxu0 }
 0x64d   :  { %v2284_v28 = vmax.f32 %v2194_v10, %v2252_v20  ;;  %v2200_v4 = vadd.f32 %v2199_v23, %v6697_v61  ;;  %v2201_v48 = vpop.f32.mrb[55].mxu0  ;;  %v8499_v23 = vld [vmem:[#allocation76_spill] sm:$0xff] }
 0x64e   :  { %v2285_v24 = vmax.f32 %v2196_v44, %v2253_v59  ;;  %v2202_v55 = vadd.f32 %v2201_v48, %v6697_v61 }
 0x64f   :  { %v5353_v57 = vpack.c.bf16 %v2284_v28, %v2282_v9  ;;  %v2254_v21 = vmul.f32 0.01, %v2200_v4 }
 0x650   :  { %v2205_v26 = vpop.f32.mrb[56].mxu0  ;;  %v5351_v63 = vpack.c.bf16 %v2285_v24, %v2283_v11  ;;  %v2255_v7 = vmul.f32 0.01, %v2202_v55 }
 0x651   :  { %v2206_v51 = vadd.f32 %v2205_v26, %v8497_v1  ;;  %v2207_v18 = vpop.f32.mrb[57].mxu0  ;;  %v2286_v62 = vmax.f32 %v2200_v4, %v2254_v21 }
 0x652   :  { %v2208_v30 = vadd.f32 %v2207_v18, %v8497_v1  ;;  %5352 = vmatprep.subr.bf16.mxu1 %v5351_v63  ;;  %v2287_v2 = vmax.f32 %v2202_v55, %v2255_v7  ;;  %v5035_v1 = vld [vmem:[%s8179_s7 + $0x6] sm:$0x3] }
 0x653   :  { %v2256_v14 = vmul.f32 0.01, %v2206_v51  ;;  %5354 = vmatpush1.bf16.msra.mxu1 %v5353_v57 }
 0x654   :  { %v2257_v17 = vmul.f32 0.01, %v2208_v30  ;;  %v2211_v52 = vpop.f32.mrb[58].mxu0 }
 0x655   :  { %v2288_v31 = vmax.f32 %v2206_v51, %v2256_v14  ;;  %v2212_v33 = vadd.f32 %v2211_v52, %v6710_v3  ;;  %v2213_v61 = vpop.f32.mrb[59].mxu0 }
 0x656   :  { %v2289_v34 = vmax.f32 %v2208_v30, %v2257_v17  ;;  %v2214_v8 = vadd.f32 %v2213_v61, %v6710_v3  ;;  %v8500_v17 = vsub.f32 0.0, %v7079_v36 }
 0x657   :  { %v5357_v40 = vpack.c.bf16 %v2288_v31, %v2286_v62  ;;  %v2258_v53 = vmul.f32 0.01, %v2212_v33  ;;  %v8501_v31 = vsub.f32 0.0, %v7081_v22 }
 0x658   :  { %v2217_v39 = vpop.f32.mrb[60].mxu0  ;;  %v5355_v49 = vpack.c.bf16 %v2289_v34, %v2287_v2  ;;  %v2259_v35 = vmul.f32 0.01, %v2214_v8  ;;  %v7526_v52 = vsub.f32 %v8500_v17, %v7306_v27 }
 0x659   :  { %v2218_v58 = vadd.f32 %v2217_v39, %v6707_v46  ;;  %v2219_v54 = vpop.f32.mrb[61].mxu0  ;;  %v2290_v45 = vmax.f32 %v2212_v33, %v2258_v53  ;;  %v7533_v33 = vsub.f32 %v8501_v31, %v7308_v29 }
 0x65a   :  { %v2220_v37 = vadd.f32 %v2219_v54, %v6707_v46  ;;  %5356 = vmatprep.subr.bf16.mxu1 %v5355_v49  ;;  %v2291_v38 = vmax.f32 %v2214_v8, %v2259_v35 }
 0x65b   :  { %v2260_v41 = vmul.f32 0.01, %v2218_v58  ;;  %5358 = vmatpush1.bf16.msra.mxu1 %v5357_v40 }
 0x65c   :  { %v2261_v50 = vmul.f32 0.01, %v2220_v37  ;;  %v2223_v0 = vpop.f32.mrb[62].mxu0 }
 0x65d   :  { %v2292_v15 = vmax.f32 %v2218_v58, %v2260_v41  ;;  %v2224_v42 = vadd.f32 %v2223_v0, %v8498_v13  ;;  %v2225_v3 = vpop.f32.mrb[63].mxu0  ;;  %v8502_v41 = vld [vmem:[#allocation78_spill] sm:$0xff]  ;;  %v8503_v0 = vld [vmem:[#allocation80_spill] sm:$0xff] }
 0x65e   :  { %v2293_v10 = vmax.f32 %v2220_v37, %v2261_v50  ;;  %v2226_v19 = vadd.f32 %v2225_v3, %v8498_v13  ;;  %v8504_v13 = vld [vmem:[#allocation81_spill] sm:$0xff]  ;;  %v8505_v3 = vld [vmem:[#allocation84_spill] sm:$0xff] }
 0x65f   :  { %v5361_v56 = vpack.c.bf16 %v2292_v15, %v2290_v45  ;;  %v2262_v59 = vmul.f32 0.01, %v2224_v42 }
 0x660   :  { %v2229_v44 = vpop.f32.mrb[64].mxu0  ;;  %v5359_v20 = vpack.c.bf16 %v2293_v10, %v2291_v38  ;;  %v2263_v28 = vmul.f32 0.01, %v2226_v19 }
 0x661   :  { %v2230_v46 = vadd.f32 %v2229_v44, %v8499_v23  ;;  %v2231_v9 = vpop.f32.mrb[65].mxu0  ;;  %v2294_v24 = vmax.f32 %v2224_v42, %v2262_v59 }
 0x662   :  { %v2232_v4 = vadd.f32 %v2231_v9, %v8499_v23  ;;  %5360 = vmatprep.subr.bf16.mxu1 %v5359_v20  ;;  %v2295_v57 = vmax.f32 %v2226_v19, %v2263_v28  ;;  %v8507_v20 = vld [vmem:[#allocation82_spill] sm:$0xff]  ;;  %v8508_v9 = vld [vmem:[#allocation83_spill] sm:$0xff] }
 0x663   :  { %v2264_v48 = vmul.f32 0.01, %v2230_v46  ;;  %5362 = vmatpush1.bf16.msra.mxu1 %v5361_v56  ;;  %v8506_v56 = vld [vmem:[#allocation79_spill] sm:$0xff] }
 0x664   :  { %v2265_v11 = vmul.f32 0.01, %v2232_v4 }
 0x665   :  { %v2296_v55 = vmax.f32 %v2230_v46, %v2264_v48 }
 0x666   :  { %v2297_v26 = vmax.f32 %v2232_v4, %v2265_v11  ;;  %v8509_v4 = vld [vmem:[#allocation86_spill] sm:$0xff] }
 0x667   :  { %v5365_v63 = vpack.c.bf16 %v2296_v55, %v2294_v24 }
 0x668   :  { %v5363_v21 = vpack.c.bf16 %v2297_v26, %v2295_v57 }
 0x66a   :  { %5364 = vmatprep.subr.bf16.mxu1 %v5363_v21 }
 0x66b   :  { %5366 = vmatpush1.bf16.msra.mxu1 %v5365_v63  ;;  %v8510_v63 = vld [vmem:[#allocation85_spill] sm:$0xff] }
 0x66e   :  { %2372 = vmatmul.mubr.f32.vlgmr.msra.gmra.mrb[34].mxu1 %v5035_v1 }
 0x66f   :  { %2918 = vmatprep.mubr.f32.mxu1 %v8396_v25 }
 0x741   :  { %v2373_v51 = vpop.f32.mrb[34].mxu1 }
 0x742   :  { %v2374_v18 = vadd.f32 %v2373_v51, %v6742_v16  ;;  %v2375_v7 = vpop.f32.mrb[35].mxu1 }
 0x743   :  { %v2376_v30 = vadd.f32 %v2375_v7, %v6742_v16  ;;  %v8511_v7 = vld [vmem:[#allocation88_spill] sm:$0xff] }
 0x744   :  { %5588 = vtanh.f32 %v2374_v18 }
 0x745   :  { %5590 = vtanh.f32 %v2376_v30  ;;  %v2382_v14 = vcombine.low %v2374_v18, %v2376_v30 }
 0x747   :  { %v2384_v39 = vsub.f32 %v7096_v32, %v2382_v14 }
 0x74e   :  { %v7528_v62 = vpop.eup %5588 }
 0x74f   :  { %v7535_v61 = vpop.eup %5590  ;;  %v2385_v2 = vsub.f32 0.0, %v7528_v62  ;;  %v2397_v16 = vsub.f32 %v7526_v52, %v7528_v62 }
 0x750   :  { %v2386_v34 = vsub.f32 0.0, %v7535_v61  ;;  %v2398_v36 = vsub.f32 %v7533_v33, %v7535_v61 }
 0x751   :  { %v2387_v27 = vmul.f32 1.442695, %v2385_v2 }
 0x752   :  { %v2389_v8 = vmul.f32 1.442695, %v2386_v34 }
 0x753   :  { %5592 = vpow2.f32 %v2387_v27 }
 0x754   :  { %5594 = vpow2.f32 %v2389_v8 }
 0x75d   :  { %v5593_v40 = vpop.eup %5592 }
 0x75e   :  { %v5595_v22 = vpop.eup %5594 }
 0x75f   :  { %v2393_v29 = vcombine.low %v5593_v40, %v5595_v22 }
 0x761   :  { %v2394_v49 = vrot.slane %v2393_v29, 7 }
 0x763   :  { %v7544_v53 = vmul.f32 %v2394_v49, %v2384_v39  ;;  %v8512_v39 = vld [vmem:[#allocation87_spill] sm:$0xff] }
 0x765   :  { %v2500_v58 = vrot.slane %v7544_v53, %v7091_v60  ;;  %v2504_v54 = vrot.slane %v7544_v53, %v7094_v43 }
 0x767   :  { %v7551_v35 = vrot.slane %v2500_v58, %v7091_v60  ;;  %v7554_v37 = vrot.slane %v2504_v54, %v7091_v60  ;;  %v8513_v58 = vld [vmem:[#allocation90_spill] sm:$0xff] }
 0x769   :  { %v2516_v50 = vmul.f32 %v7554_v37, %v8502_v41  ;;  %v2518_v32 = vmul.f32 %v7554_v37, %v8503_v0  ;;  %v2515_v45 = vmul.f32 %v7551_v35, %v8502_v41  ;;  %v2517_v15 = vmul.f32 %v7551_v35, %v8503_v0 }
 0x76a   :  { %v2520_v42 = vmul.f32 %v7554_v37, %v8504_v13  ;;  %v2522_v38 = vmul.f32 %v7554_v37, %v8505_v3  ;;  %v2519_v10 = vmul.f32 %v7551_v35, %v8504_v13  ;;  %v2521_v19 = vmul.f32 %v7551_v35, %v8505_v3 }
 0x76b   :  { %v2645_v44 = vadd.f32 %v8506_v56, %v2516_v50  ;;  %v2647_v59 = vadd.f32 %v8507_v20, %v2518_v32  ;;  %v2644_v23 = vadd.f32 %v8506_v56, %v2515_v45  ;;  %v2646_v46 = vadd.f32 %v8507_v20, %v2517_v15 }
 0x76c   :  { %v2649_v28 = vadd.f32 %v8508_v9, %v2520_v42  ;;  %v2651_v48 = vadd.f32 %v8509_v4, %v2522_v38  ;;  %v2648_v11 = vadd.f32 %v8508_v9, %v2519_v10  ;;  %v2650_v24 = vadd.f32 %v8509_v4, %v2521_v19  ;;  %v8514_v42 = vld [vmem:[#allocation89_spill] sm:$0xff]  ;;  %v8515_v19 = vld [vmem:[#allocation92_spill] sm:$0xff]  ;;  %v8517_v4 = vld [vmem:[#allocation94_spill] sm:$0xff] }
 0x76d   :  { %v2677_v55 = vmul.f32 0.01, %v2645_v44  ;;  %v2679_v57 = vmul.f32 0.01, %v2647_v59  ;;  %v2676_v26 = vmul.f32 0.01, %v2644_v23  ;;  %v2524_v21 = vmul.f32 %v7554_v37, %v8510_v63 }
 0x76e   :  { %v2678_v1 = vmul.f32 0.01, %v2646_v46  ;;  %v2681_v51 = vmul.f32 0.01, %v2649_v28  ;;  %v2683_v18 = vmul.f32 0.01, %v2651_v48  ;;  %v2526_v30 = vmul.f32 %v7554_v37, %v8511_v7 }
 0x76f   :  { %v2709_v14 = vmax.f32 %v2645_v44, %v2677_v55  ;;  %v2711_v17 = vmax.f32 %v2647_v59, %v2679_v57  ;;  %v2708_v31 = vmax.f32 %v2644_v23, %v2676_v26  ;;  %v2680_v2 = vmul.f32 0.01, %v2648_v11 }
 0x770   :  { %v2710_v34 = vmax.f32 %v2646_v46, %v2678_v1  ;;  %v2713_v27 = vmax.f32 %v2649_v28, %v2681_v51  ;;  %v2715_v8 = vmax.f32 %v2651_v48, %v2683_v18  ;;  %v2682_v40 = vmul.f32 0.01, %v2650_v24  ;;  %v8516_v46 = vld [vmem:[#allocation91_spill] sm:$0xff] }
 0x771   :  { %v5367_v22 = vpack.c.bf16 %v2711_v17, %v2709_v14  ;;  %v2712_v29 = vmax.f32 %v2648_v11, %v2680_v2  ;;  %v2653_v49 = vadd.f32 %v8512_v39, %v2524_v21  ;;  %v2655_v54 = vadd.f32 %v8513_v58, %v2526_v30  ;;  %v8519_v17 = vld [vmem:[#allocation96_spill] sm:$0xff]  ;;  %v8520_v2 = vld [vmem:[#allocation95_spill] sm:$0xff] }
 0x772   :  { %v5369_v41 = vpack.c.bf16 %v2710_v34, %v2708_v31  ;;  %v5371_v50 = vpack.c.bf16 %v2715_v8, %v2713_v27  ;;  %v2714_v0 = vmax.f32 %v2650_v24, %v2682_v40  ;;  %v2523_v32 = vmul.f32 %v7551_v35, %v8510_v63  ;;  %v8518_v63 = vld [vmem:[#allocation93_spill] sm:$0xff] }
 0x773   :  { %5368 = vmatprep.subr.bf16.mxu1 %v5367_v22  ;;  %v2685_v45 = vmul.f32 0.01, %v2653_v49  ;;  %v2687_v15 = vmul.f32 0.01, %v2655_v54  ;;  %v2525_v13 = vmul.f32 %v7551_v35, %v8511_v7  ;;  %v2528_v3 = vmul.f32 %v7554_v37, %v8514_v42 }
 0x774   :  { %5370 = vmatpush1.bf16.msra.mxu1 %v5369_v41  ;;  %v5373_v38 = vpack.c.bf16 %v2714_v0, %v2712_v29  ;;  %v2652_v10 = vadd.f32 %v8512_v39, %v2523_v32  ;;  %v2530_v56 = vmul.f32 %v7554_v37, %v8515_v19  ;;  %v2527_v44 = vmul.f32 %v7551_v35, %v8514_v42  ;;  %v8521_v39 = vld [vmem:[#allocation98_spill] sm:$0xff]  ;;  %v8522_v32 = vld [vmem:[#allocation97_spill] sm:$0xff] }
 0x775   :  { %5372 = vmatprep.subr.bf16.mxu1 %v5371_v50  ;;  %v2717_v20 = vmax.f32 %v2653_v49, %v2685_v45  ;;  %v2719_v59 = vmax.f32 %v2655_v54, %v2687_v15  ;;  %v2654_v23 = vadd.f32 %v8513_v58, %v2525_v13  ;;  %v2657_v9 = vadd.f32 %v8516_v46, %v2528_v3  ;;  %v8523_v3 = vld [vmem:[#allocation100_spill] sm:$0xff] }
 0x776   :  { %v2684_v28 = vmul.f32 0.01, %v2652_v10  ;;  %v2659_v48 = vadd.f32 %v8517_v4, %v2530_v56  ;;  %v2529_v11 = vmul.f32 %v7551_v35, %v8515_v19  ;;  %v2656_v24 = vadd.f32 %v8516_v46, %v2527_v44  ;;  %v8524_v56 = vld [vmem:[#allocation99_spill] sm:$0xff]  ;;  %v8525_v46 = vld [vmem:[#allocation102_spill] sm:$0xff] }
 0x777   :  { %v5375_v55 = vpack.c.bf16 %v2719_v59, %v2717_v20  ;;  %v2686_v57 = vmul.f32 0.01, %v2654_v23  ;;  %v2689_v26 = vmul.f32 0.01, %v2657_v9  ;;  %v2532_v21 = vmul.f32 %v7554_v37, %v8518_v63 }
 0x778   :  { %5374 = vmatpush1.bf16.msra.mxu1 %v5373_v38  ;;  %v2716_v1 = vmax.f32 %v2652_v10, %v2684_v28  ;;  %v2691_v51 = vmul.f32 0.01, %v2659_v48  ;;  %v2658_v18 = vadd.f32 %v8517_v4, %v2529_v11  ;;  %v2688_v7 = vmul.f32 0.01, %v2656_v24 }
 0x779   :  { %5376 = vmatprep.subr.bf16.mxu1 %v5375_v55  ;;  %v2718_v30 = vmax.f32 %v2654_v23, %v2686_v57  ;;  %v2721_v14 = vmax.f32 %v2657_v9, %v2689_v26  ;;  %v2534_v31 = vmul.f32 %v7554_v37, %v8519_v17  ;;  %v2661_v34 = vadd.f32 %v8520_v2, %v2532_v21 }
 0x77a   :  { %v2723_v27 = vmax.f32 %v2659_v48, %v2691_v51  ;;  %v2690_v8 = vmul.f32 0.01, %v2658_v18  ;;  %v2720_v40 = vmax.f32 %v2656_v24, %v2688_v7  ;;  %v2531_v22 = vmul.f32 %v7551_v35, %v8518_v63  ;;  %v8526_v24 = vld [vmem:[#allocation101_spill] sm:$0xff] }
 0x77b   :  { %v5377_v29 = vpack.c.bf16 %v2718_v30, %v2716_v1  ;;  %v2663_v49 = vadd.f32 %v8521_v39, %v2534_v31  ;;  %v2693_v58 = vmul.f32 0.01, %v2661_v34  ;;  %v2533_v54 = vmul.f32 %v7551_v35, %v8519_v17  ;;  %v8528_v30 = vld [vmem:[#allocation103_spill] sm:$0xff] }
 0x77c   :  { %v5379_v41 = vpack.c.bf16 %v2723_v27, %v2721_v14  ;;  %v2722_v50 = vmax.f32 %v2658_v18, %v2690_v8  ;;  %v2660_v0 = vadd.f32 %v8520_v2, %v2531_v22  ;;  %v2536_v45 = vmul.f32 %v7554_v37, %v8522_v32  ;;  %v8527_v18 = vld [vmem:[#allocation104_spill] sm:$0xff]  ;;  %v8529_v8 = vld [vmem:[#allocation106_spill] sm:$0xff] }
 0x77d   :  { %5378 = vmatpush1.bf16.msra.mxu1 %v5377_v29  ;;  %v2695_v15 = vmul.f32 0.01, %v2663_v49  ;;  %v2725_v13 = vmax.f32 %v2661_v34, %v2693_v58  ;;  %v2662_v42 = vadd.f32 %v8521_v39, %v2533_v54  ;;  %v2538_v38 = vmul.f32 %v7554_v37, %v8523_v3  ;;  %v8530_v54 = vld [vmem:[#allocation105_spill] sm:$0xff] }
 0x77e   :  { %5380 = vmatprep.subr.bf16.mxu1 %v5379_v41  ;;  %v5381_v10 = vpack.c.bf16 %v2722_v50, %v2720_v40  ;;  %v2692_v19 = vmul.f32 0.01, %v2660_v0  ;;  %v2665_v44 = vadd.f32 %v8524_v56, %v2536_v45  ;;  %v2535_v20 = vmul.f32 %v7551_v35, %v8522_v32  ;;  %v8531_v45 = vld [vmem:[#allocation108_spill] sm:$0xff] }
 0x77f   :  { %v2727_v59 = vmax.f32 %v2663_v49, %v2695_v15  ;;  %v2694_v23 = vmul.f32 0.01, %v2662_v42  ;;  %v2667_v9 = vadd.f32 %v8525_v46, %v2538_v38  ;;  %v2537_v28 = vmul.f32 %v7551_v35, %v8523_v3  ;;  %v8532_v3 = vld [vmem:[#allocation107_spill] sm:$0xff] }
 0x780   :  { %v2724_v4 = vmax.f32 %v2660_v0, %v2692_v19  ;;  %v2697_v48 = vmul.f32 0.01, %v2665_v44  ;;  %v2664_v11 = vadd.f32 %v8524_v56, %v2535_v20  ;;  %v2540_v55 = vmul.f32 %v7554_v37, %v8526_v24 }
 0x781   :  { %5382 = vmatpush1.bf16.msra.mxu1 %v5381_v10  ;;  %v5383_v57 = vpack.c.bf16 %v2727_v59, %v2725_v13  ;;  %v2726_v26 = vmax.f32 %v2662_v42, %v2694_v23  ;;  %v2699_v63 = vmul.f32 0.01, %v2667_v9  ;;  %v2666_v21 = vadd.f32 %v8525_v46, %v2537_v28 }
 0x782   :  { %v2729_v1 = vmax.f32 %v2665_v44, %v2697_v48  ;;  %v2696_v51 = vmul.f32 0.01, %v2664_v11  ;;  %v2542_v7 = vmul.f32 %v7554_v37, %v8527_v18  ;;  %v2669_v14 = vadd.f32 %v8528_v30, %v2540_v55  ;;  %v8533_v44 = vld [vmem:[#allocation110_spill] sm:$0xff] }
 0x783   :  { %5384 = vmatprep.subr.bf16.mxu1 %v5383_v57  ;;  %v5385_v17 = vpack.c.bf16 %v2726_v26, %v2724_v4  ;;  %v2731_v31 = vmax.f32 %v2667_v9, %v2699_v63  ;;  %v2698_v2 = vmul.f32 0.01, %v2666_v21  ;;  %v2539_v34 = vmul.f32 %v7551_v35, %v8526_v24 }
 0x784   :  { %v2728_v27 = vmax.f32 %v2664_v11, %v2696_v51  ;;  %v2671_v40 = vadd.f32 %v8529_v8, %v2542_v7  ;;  %v2701_v22 = vmul.f32 0.01, %v2669_v14  ;;  %v2541_v29 = vmul.f32 %v7551_v35, %v8527_v18  ;;  %v5069_v51 = vld [vmem:[%s8177_s5 + $0x100] sm:$0xff]  ;;  %v5070_v18 = vld [vmem:[%s8177_s5 + $0x108] sm:$0xff]  ;;  %v5071_v7 = vld [vmem:[%s8177_s5 + $0x110] sm:$0xff] }
 0x785   :  { %5386 = vmatpush1.bf16.msra.mxu1 %v5385_v17  ;;  %v5387_v39 = vpack.c.bf16 %v2731_v31, %v2729_v1  ;;  %v2730_v49 = vmax.f32 %v2666_v21, %v2698_v2  ;;  %v2668_v58 = vadd.f32 %v8528_v30, %v2539_v34  ;;  %v2544_v41 = vmul.f32 %v7554_v37, %v8530_v54  ;;  %v5072_v30 = vld [vmem:[%s8177_s5 + $0x118] sm:$0xff]  ;;  %v5074_v17 = vld [vmem:[%s8177_s5 + $0x128] sm:$0xff]  ;;  %v5075_v31 = vld [vmem:[%s8177_s5 + $0x130] sm:$0xff] }
 0x786   :  { %v2703_v50 = vmul.f32 0.01, %v2671_v40  ;;  %v2733_v0 = vmax.f32 %v2669_v14, %v2701_v22  ;;  %v2670_v32 = vadd.f32 %v8529_v8, %v2541_v29  ;;  %v2546_v15 = vmul.f32 %v7554_v37, %v8531_v45  ;;  %v5073_v14 = vld [vmem:[%s8177_s5 + $0x120] sm:$0xff]  ;;  %v5076_v2 = vld [vmem:[%s8177_s5 + $0x138] sm:$0xff]  ;;  %v5079_v8 = vld [vmem:[%s8177_s5 + $0x150] sm:$0xff] }
 0x787   :  { %5388 = vmatprep.subr.bf16.mxu1 %v5387_v39  ;;  %v5389_v13 = vpack.c.bf16 %v2730_v49, %v2728_v27  ;;  %v2700_v42 = vmul.f32 0.01, %v2668_v58  ;;  %v2673_v38 = vadd.f32 %v8532_v3, %v2544_v41  ;;  %v2543_v10 = vmul.f32 %v7551_v35, %v8530_v54  ;;  %v5077_v34 = vld [vmem:[%s8177_s5 + $0x140] sm:$0xff]  ;;  %v5078_v27 = vld [vmem:[%s8177_s5 + $0x148] sm:$0xff]  ;;  %v5083_v39 = vld [vmem:[%s8177_s5 + $0x170] sm:$0xff] }
 0x788   :  { %v2735_v19 = vmax.f32 %v2671_v40, %v2703_v50  ;;  %v2702_v56 = vmul.f32 0.01, %v2670_v32  ;;  %v2675_v20 = vadd.f32 %v8533_v44, %v2546_v15  ;;  %v2545_v59 = vmul.f32 %v7551_v35, %v8531_v45  ;;  %v5080_v40 = vld [vmem:[%s8177_s5 + $0x158] sm:$0xff]  ;;  %v5081_v22 = vld [vmem:[%s8177_s5 + $0x160] sm:$0xff]  ;;  %v5082_v29 = vld [vmem:[%s8177_s5 + $0x168] sm:$0xff] }
 0x789   :  { %5390 = vmatpush1.bf16.msra.mxu1 %v5389_v13  ;;  %v2732_v23 = vmax.f32 %v2668_v58, %v2700_v42  ;;  %v2705_v46 = vmul.f32 0.01, %v2673_v38  ;;  %v2672_v37 = vadd.f32 %v8532_v3, %v2543_v10  ;;  %v5084_v49 = vld [vmem:[%s8177_s5 + $0x178] sm:$0xff]  ;;  %v8535_v15 = vld [vmem:[#allocation112_spill] sm:$0xff] }
 0x78a   :  { %v5391_v9 = vpack.c.bf16 %v2735_v19, %v2733_v0  ;;  %v2734_v28 = vmax.f32 %v2670_v32, %v2702_v56  ;;  %v2707_v4 = vmul.f32 0.01, %v2675_v20  ;;  %v2674_v48 = vadd.f32 %v8533_v44, %v2545_v59  ;;  %v8534_v54 = vld [vmem:[#allocation109_spill] sm:$0xff]  ;;  %v8536_v59 = vld [vmem:[#allocation111_spill] sm:$0xff] }
 0x78b   :  { %v2737_v11 = vmax.f32 %v2673_v38, %v2705_v46  ;;  %v2704_v24 = vmul.f32 0.01, %v2672_v37 }
 0x78c   :  { %5392 = vmatprep.subr.bf16.mxu1 %v5391_v9  ;;  %v5393_v55 = vpack.c.bf16 %v2734_v28, %v2732_v23  ;;  %v2739_v57 = vmax.f32 %v2675_v20, %v2707_v4  ;;  %v2706_v26 = vmul.f32 0.01, %v2674_v48 }
 0x78d   :  { %v2736_v63 = vmax.f32 %v2672_v37, %v2704_v24 }
 0x78e   :  { %5394 = vmatpush1.bf16.msra.mxu1 %v5393_v55  ;;  %v5395_v21 = vpack.c.bf16 %v2739_v57, %v2737_v11  ;;  %v2738_v35 = vmax.f32 %v2674_v48, %v2706_v26  ;;  %v8537_v55 = vld [vmem:[#allocation114_spill] sm:$0xff] }
 0x790   :  { %5396 = vmatprep.subr.bf16.mxu1 %v5395_v21  ;;  %v5397_v1 = vpack.c.bf16 %v2738_v35, %v2736_v63 }
 0x792   :  { %5398 = vmatpush1.bf16.msra.mxu1 %v5397_v1 }
 0x795   :  { %2919 = vmatmul.mubr.f32.vlgmr.msra.gmra.mrb[36].mxu1 %v5069_v51 }
 0x796   :  { %2924 = vmatprep.mubr.f32.mxu1 %v8396_v25 }
 0x799   :  { %2925 = vmatmul.mubr.f32.gmra.mrb[38].mxu1 %v5070_v18 }
 0x79a   :  { %2930 = vmatprep.mubr.f32.mxu1 %v8396_v25 }
 0x79d   :  { %2931 = vmatmul.mubr.f32.gmra.mrb[40].mxu1 %v5071_v7 }
 0x79e   :  { %2936 = vmatprep.mubr.f32.mxu1 %v8396_v25 }
 0x7a1   :  { %2937 = vmatmul.mubr.f32.gmra.mrb[42].mxu1 %v5072_v30  ;;  %v8538_v30 = vld [vmem:[#allocation113_spill] sm:$0xff] }
 0x7a2   :  { %2942 = vmatprep.mubr.f32.mxu1 %v8396_v25 }
 0x7a5   :  { %2943 = vmatmul.mubr.f32.gmra.mrb[44].mxu1 %v5073_v14 }
 0x7a6   :  { %2948 = vmatprep.mubr.f32.mxu1 %v8396_v25 }
 0x7a9   :  { %2949 = vmatmul.mubr.f32.gmra.mrb[46].mxu1 %v5074_v17 }
 0x7aa   :  { %2954 = vmatprep.mubr.f32.mxu1 %v8396_v25 }
 0x7ad   :  { %2955 = vmatmul.mubr.f32.gmra.mrb[48].mxu1 %v5075_v31 }
 0x7ae   :  { %2960 = vmatprep.mubr.f32.mxu1 %v8396_v25 }
 0x7b1   :  { %2961 = vmatmul.mubr.f32.gmra.mrb[50].mxu1 %v5076_v2 }
 0x7b2   :  { %2966 = vmatprep.mubr.f32.mxu1 %v8396_v25 }
 0x7b5   :  { %2967 = vmatmul.mubr.f32.gmra.mrb[52].mxu1 %v5077_v34 }
 0x7b6   :  { %2972 = vmatprep.mubr.f32.mxu1 %v8396_v25 }
 0x7b9   :  { %2973 = vmatmul.mubr.f32.gmra.mrb[54].mxu1 %v5078_v27 }
 0x7ba   :  { %2978 = vmatprep.mubr.f32.mxu1 %v8396_v25 }
 0x7bd   :  { %2979 = vmatmul.mubr.f32.gmra.mrb[56].mxu1 %v5079_v8 }
 0x7be   :  { %2984 = vmatprep.mubr.f32.mxu1 %v8396_v25 }
 0x7c1   :  { %2985 = vmatmul.mubr.f32.gmra.mrb[58].mxu1 %v5080_v40 }
 0x7c2   :  { %2990 = vmatprep.mubr.f32.mxu1 %v8396_v25 }
 0x7c5   :  { %2991 = vmatmul.mubr.f32.gmra.mrb[60].mxu1 %v5081_v22 }
 0x7c6   :  { %2996 = vmatprep.mubr.f32.mxu1 %v8396_v25 }
 0x7c9   :  { %2997 = vmatmul.mubr.f32.gmra.mrb[62].mxu1 %v5082_v29  ;;  %v8539_v29 = vld [vmem:[#allocation116_spill] sm:$0xff] }
 0x7ca   :  { %3002 = vmatprep.mubr.f32.mxu1 %v8396_v25 }
 0x7cd   :  { %3003 = vmatmul.mubr.f32.gmra.mrb[64].mxu1 %v5083_v39 }
 0x7ce   :  { %3008 = vmatprep.mubr.f32.mxu1 %v8396_v25 }
 0x7d1   :  { %3009 = vmatmul.mubr.f32.gmra.mrb[66].mxu1 %v5084_v49 }
 0x7d2   :  { %3934 = vmatprep.mubr.f32.mxu1 %v8396_v25 }
 0x868   :  { %v2920_v58 = vpop.f32.mrb[36].mxu1 }
 0x869   :  { %v2921_v41 = vadd.f32 %v2920_v58, %v8534_v54  ;;  %v2922_v50 = vpop.f32.mrb[37].mxu1 }
 0x86a   :  { %v2923_v0 = vadd.f32 %v2922_v50, %v8534_v54 }
 0x86b   :  { %v3015_v45 = vmul.f32 0.01, %v2921_v41 }
 0x86c   :  { %v2926_v32 = vpop.f32.mrb[38].mxu1  ;;  %v3016_v3 = vmul.f32 0.01, %v2923_v0 }
 0x86d   :  { %v2927_v13 = vadd.f32 %v2926_v32, %v8535_v15  ;;  %v2928_v42 = vpop.f32.mrb[39].mxu1  ;;  %v3047_v44 = vmax.f32 %v2921_v41, %v3015_v45 }
 0x86e   :  { %v2929_v38 = vadd.f32 %v2928_v42, %v8535_v15  ;;  %v3048_v37 = vmax.f32 %v2923_v0, %v3016_v3  ;;  %v8540_v15 = vld [vmem:[#allocation115_spill] sm:$0xff] }
 0x86f   :  { %v3017_v10 = vmul.f32 0.01, %v2927_v13 }
 0x870   :  { %v3018_v19 = vmul.f32 0.01, %v2929_v38  ;;  %v2932_v56 = vpop.f32.mrb[40].mxu1 }
 0x871   :  { %v3049_v20 = vmax.f32 %v2927_v13, %v3017_v10  ;;  %v2933_v23 = vadd.f32 %v2932_v56, %v8536_v59  ;;  %v2934_v46 = vpop.f32.mrb[41].mxu1 }
 0x872   :  { %v3050_v9 = vmax.f32 %v2929_v38, %v3018_v19  ;;  %v2935_v28 = vadd.f32 %v2934_v46, %v8536_v59  ;;  %v8541_v59 = vld [vmem:[#allocation118_spill] sm:$0xff] }
 0x873   :  { %v5401_v4 = vpack.c.bf16 %v3049_v20, %v3047_v44  ;;  %v3019_v24 = vmul.f32 0.01, %v2933_v23 }
 0x874   :  { %v2938_v48 = vpop.f32.mrb[42].mxu1  ;;  %v5399_v11 = vpack.c.bf16 %v3050_v9, %v3048_v37  ;;  %v3020_v63 = vmul.f32 0.01, %v2935_v28 }
 0x875   :  { %v2939_v57 = vadd.f32 %v2938_v48, %v8537_v55  ;;  %v2940_v26 = vpop.f32.mrb[43].mxu1  ;;  %v3051_v18 = vmax.f32 %v2933_v23, %v3019_v24 }
 0x876   :  { %v2941_v21 = vadd.f32 %v2940_v26, %v8537_v55  ;;  %5400 = vmatprep.subr.bf16.mxu0 %v5399_v11  ;;  %v3052_v31 = vmax.f32 %v2935_v28, %v3020_v63  ;;  %v8542_v55 = vld [vmem:[#allocation117_spill] sm:$0xff] }
 0x877   :  { %v3021_v35 = vmul.f32 0.01, %v2939_v57  ;;  %5402 = vmatpush1.bf16.msra.mxu0 %v5401_v4 }
 0x878   :  { %v3022_v1 = vmul.f32 0.01, %v2941_v21  ;;  %v2944_v51 = vpop.f32.mrb[44].mxu1 }
 0x879   :  { %v3053_v7 = vmax.f32 %v2939_v57, %v3021_v35  ;;  %v2945_v14 = vadd.f32 %v2944_v51, %v8538_v30  ;;  %v2946_v17 = vpop.f32.mrb[45].mxu1 }
 0x87a   :  { %v3054_v2 = vmax.f32 %v2941_v21, %v3022_v1  ;;  %v2947_v34 = vadd.f32 %v2946_v17, %v8538_v30  ;;  %v8543_v30 = vld [vmem:[#allocation120_spill] sm:$0xff] }
 0x87b   :  { %v5405_v27 = vpack.c.bf16 %v3053_v7, %v3051_v18  ;;  %v3023_v22 = vmul.f32 0.01, %v2945_v14 }
 0x87c   :  { %v2950_v8 = vpop.f32.mrb[46].mxu1  ;;  %v5403_v40 = vpack.c.bf16 %v3054_v2, %v3052_v31  ;;  %v3024_v58 = vmul.f32 0.01, %v2947_v34 }
 0x87d   :  { %v2951_v39 = vadd.f32 %v2950_v8, %v8539_v29  ;;  %v2952_v49 = vpop.f32.mrb[47].mxu1  ;;  %v3055_v32 = vmax.f32 %v2945_v14, %v3023_v22 }
 0x87e   :  { %v2953_v54 = vadd.f32 %v2952_v49, %v8539_v29  ;;  %5404 = vmatprep.subr.bf16.mxu0 %v5403_v40  ;;  %v3056_v3 = vmax.f32 %v2947_v34, %v3024_v58  ;;  %v8544_v29 = vld [vmem:[#allocation119_spill] sm:$0xff] }
 0x87f   :  { %v3025_v41 = vmul.f32 0.01, %v2951_v39  ;;  %5406 = vmatpush1.bf16.msra.mxu0 %v5405_v27 }
 0x880   :  { %v3026_v50 = vmul.f32 0.01, %v2953_v54  ;;  %v2956_v0 = vpop.f32.mrb[48].mxu1 }
 0x881   :  { %v3057_v45 = vmax.f32 %v2951_v39, %v3025_v41  ;;  %v2957_v13 = vadd.f32 %v2956_v0, %v8540_v15  ;;  %v2958_v42 = vpop.f32.mrb[49].mxu1 }
 0x882   :  { %v3058_v38 = vmax.f32 %v2953_v54, %v3026_v50  ;;  %v2959_v10 = vadd.f32 %v2958_v42, %v8540_v15  ;;  %v8545_v15 = vld [vmem:[#allocation122_spill] sm:$0xff] }
 0x883   :  { %v5409_v19 = vpack.c.bf16 %v3057_v45, %v3055_v32  ;;  %v3027_v20 = vmul.f32 0.01, %v2957_v13 }
 0x884   :  { %v2962_v56 = vpop.f32.mrb[50].mxu1  ;;  %v5407_v44 = vpack.c.bf16 %v3058_v38, %v3056_v3  ;;  %v3028_v37 = vmul.f32 0.01, %v2959_v10 }
 0x885   :  { %v2963_v23 = vadd.f32 %v2962_v56, %v8541_v59  ;;  %v2964_v46 = vpop.f32.mrb[51].mxu1  ;;  %v3059_v11 = vmax.f32 %v2957_v13, %v3027_v20 }
 0x886   :  { %v2965_v9 = vadd.f32 %v2964_v46, %v8541_v59  ;;  %5408 = vmatprep.subr.bf16.mxu0 %v5407_v44  ;;  %v3060_v63 = vmax.f32 %v2959_v10, %v3028_v37  ;;  %v8546_v59 = vld [vmem:[#allocation121_spill] sm:$0xff] }
 0x887   :  { %v3029_v28 = vmul.f32 0.01, %v2963_v23  ;;  %5410 = vmatpush1.bf16.msra.mxu0 %v5409_v19 }
 0x888   :  { %v3030_v4 = vmul.f32 0.01, %v2965_v9  ;;  %v2968_v48 = vpop.f32.mrb[52].mxu1 }
 0x889   :  { %v3061_v24 = vmax.f32 %v2963_v23, %v3029_v28  ;;  %v2969_v57 = vadd.f32 %v2968_v48, %v8542_v55  ;;  %v2970_v26 = vpop.f32.mrb[53].mxu1 }
 0x88a   :  { %v3062_v21 = vmax.f32 %v2965_v9, %v3030_v4  ;;  %v2971_v35 = vadd.f32 %v2970_v26, %v8542_v55  ;;  %v8547_v55 = vld [vmem:[#allocation124_spill] sm:$0xff] }
 0x88b   :  { %v5413_v1 = vpack.c.bf16 %v3061_v24, %v3059_v11  ;;  %v3031_v7 = vmul.f32 0.01, %v2969_v57 }
 0x88c   :  { %v2974_v51 = vpop.f32.mrb[54].mxu1  ;;  %v5411_v18 = vpack.c.bf16 %v3062_v21, %v3060_v63  ;;  %v3032_v31 = vmul.f32 0.01, %v2971_v35 }
 0x88d   :  { %v2975_v14 = vadd.f32 %v2974_v51, %v8543_v30  ;;  %v2976_v17 = vpop.f32.mrb[55].mxu1  ;;  %v3063_v40 = vmax.f32 %v2969_v57, %v3031_v7 }
 0x88e   :  { %v2977_v2 = vadd.f32 %v2976_v17, %v8543_v30  ;;  %5412 = vmatprep.subr.bf16.mxu0 %v5411_v18  ;;  %v3064_v58 = vmax.f32 %v2971_v35, %v3032_v31  ;;  %v8548_v30 = vld [vmem:[#allocation123_spill] sm:$0xff] }
 0x88f   :  { %v3033_v34 = vmul.f32 0.01, %v2975_v14  ;;  %5414 = vmatpush1.bf16.msra.mxu0 %v5413_v1 }
 0x890   :  { %v3034_v27 = vmul.f32 0.01, %v2977_v2  ;;  %v2980_v8 = vpop.f32.mrb[56].mxu1 }
 0x891   :  { %v3065_v22 = vmax.f32 %v2975_v14, %v3033_v34  ;;  %v2981_v39 = vadd.f32 %v2980_v8, %v8544_v29  ;;  %v2982_v49 = vpop.f32.mrb[57].mxu1 }
 0x892   :  { %v3066_v54 = vmax.f32 %v2977_v2, %v3034_v27  ;;  %v2983_v41 = vadd.f32 %v2982_v49, %v8544_v29  ;;  %v8549_v29 = vld [vmem:[#allocation126_spill] sm:$0xff] }
 0x893   :  { %v5417_v50 = vpack.c.bf16 %v3065_v22, %v3063_v40  ;;  %v3035_v45 = vmul.f32 0.01, %v2981_v39 }
 0x894   :  { %v2986_v0 = vpop.f32.mrb[58].mxu1  ;;  %v5415_v32 = vpack.c.bf16 %v3066_v54, %v3064_v58  ;;  %v3036_v3 = vmul.f32 0.01, %v2983_v41 }
 0x895   :  { %v2987_v13 = vadd.f32 %v2986_v0, %v8545_v15  ;;  %v2988_v42 = vpop.f32.mrb[59].mxu1  ;;  %v3067_v44 = vmax.f32 %v2981_v39, %v3035_v45 }
 0x896   :  { %v2989_v38 = vadd.f32 %v2988_v42, %v8545_v15  ;;  %5416 = vmatprep.subr.bf16.mxu0 %v5415_v32  ;;  %v3068_v37 = vmax.f32 %v2983_v41, %v3036_v3  ;;  %v5101_v3 = vld [vmem:[%s8179_s7 + $0x4] sm:$0x3] }
 0x897   :  { %v3037_v10 = vmul.f32 0.01, %v2987_v13  ;;  %5418 = vmatpush1.bf16.msra.mxu0 %v5417_v50 }
 0x898   :  { %v3038_v19 = vmul.f32 0.01, %v2989_v38  ;;  %v2992_v56 = vpop.f32.mrb[60].mxu1 }
 0x899   :  { %v3069_v20 = vmax.f32 %v2987_v13, %v3037_v10  ;;  %v2993_v23 = vadd.f32 %v2992_v56, %v8546_v59  ;;  %v2994_v46 = vpop.f32.mrb[61].mxu1  ;;  %v3206_v10 = vpop.permute.xlu1 %3205 }
 0x89a   :  { %v3070_v9 = vmax.f32 %v2989_v38, %v3038_v19  ;;  %v2995_v28 = vadd.f32 %v2994_v46, %v8546_v59  ;;  %v3201_v38 = vpop.permute.xlu0 %3200 }
 0x89b   :  { %v5421_v4 = vpack.c.bf16 %v3069_v20, %v3067_v44  ;;  %v3039_v24 = vmul.f32 0.01, %v2993_v23 }
 0x89c   :  { %v2998_v48 = vpop.f32.mrb[62].mxu1  ;;  %v5419_v11 = vpack.c.bf16 %v3070_v9, %v3068_v37  ;;  %v3040_v63 = vmul.f32 0.01, %v2995_v28  ;;  %v8550_v9 = vld [vmem:[#allocation125_spill] sm:$0xff] }
 0x89d   :  { %v2999_v57 = vadd.f32 %v2998_v48, %v8547_v55  ;;  %v3000_v26 = vpop.f32.mrb[63].mxu1  ;;  %v3071_v18 = vmax.f32 %v2993_v23, %v3039_v24  ;;  %v3354_v56 = vpop.permute.xlu1 %3353 }
 0x89e   :  { %v3001_v21 = vadd.f32 %v3000_v26, %v8547_v55  ;;  %5420 = vmatprep.subr.bf16.mxu0 %v5419_v11  ;;  %v3072_v31 = vmax.f32 %v2995_v28, %v3040_v63  ;;  %v3349_v19 = vpop.permute.xlu0 %3348 }
 0x89f   :  { %v3041_v35 = vmul.f32 0.01, %v2999_v57  ;;  %5422 = vmatpush1.bf16.msra.mxu0 %v5421_v4 }
 0x8a0   :  { %v3042_v1 = vmul.f32 0.01, %v3001_v21  ;;  %v3004_v51 = vpop.f32.mrb[64].mxu1 }
 0x8a1   :  { %v3073_v7 = vmax.f32 %v2999_v57, %v3041_v35  ;;  %v3005_v14 = vadd.f32 %v3004_v51, %v8548_v30  ;;  %v3006_v17 = vpop.f32.mrb[65].mxu1  ;;  %v3216_v20 = vpop.permute.xlu1 %3215 }
 0x8a2   :  { %v3074_v2 = vmax.f32 %v3001_v21, %v3042_v1  ;;  %v3007_v34 = vadd.f32 %v3006_v17, %v8548_v30  ;;  %v3211_v44 = vpop.permute.xlu0 %3210 }
 0x8a3   :  { %v5425_v27 = vpack.c.bf16 %v3073_v7, %v3071_v18  ;;  %v3043_v22 = vmul.f32 0.01, %v3005_v14 }
 0x8a4   :  { %v3010_v8 = vpop.f32.mrb[66].mxu1  ;;  %v5423_v40 = vpack.c.bf16 %v3074_v2, %v3072_v31  ;;  %v3044_v58 = vmul.f32 0.01, %v3007_v34 }
 0x8a5   :  { %v3011_v39 = vadd.f32 %v3010_v8, %v8549_v29  ;;  %v3012_v49 = vpop.f32.mrb[67].mxu1  ;;  %v3075_v0 = vmax.f32 %v3005_v14, %v3043_v22  ;;  %v3364_v23 = vpop.permute.xlu1 %3363 }
 0x8a6   :  { %v3013_v54 = vadd.f32 %v3012_v49, %v8549_v29  ;;  %5424 = vmatprep.subr.bf16.mxu0 %v5423_v40  ;;  %v3076_v45 = vmax.f32 %v3007_v34, %v3044_v58  ;;  %v3359_v59 = vpop.permute.xlu0 %3358 }
 0x8a7   :  { %v3045_v41 = vmul.f32 0.01, %v3011_v39  ;;  %5426 = vmatpush1.bf16.msra.mxu0 %v5425_v27 }
 0x8a8   :  { %v3046_v50 = vmul.f32 0.01, %v3013_v54 }
 0x8a9   :  { %v3077_v32 = vmax.f32 %v3011_v39, %v3045_v41  ;;  %v7755_v48 = vpop.permute.xlu1 %3225 }
 0x8aa   :  { %v3078_v15 = vmax.f32 %v3013_v54, %v3046_v50  ;;  %v7752_v37 = vpop.permute.xlu0 %3220 }
 0x8ab   :  { %v5429_v13 = vpack.c.bf16 %v3077_v32, %v3075_v0 }
 0x8ac   :  { %v5427_v42 = vpack.c.bf16 %v3078_v15, %v3076_v45 }
 0x8ad   :  { %v7760_v57 = vpop.permute.xlu1 %3373 }
 0x8ae   :  { %5428 = vmatprep.subr.bf16.mxu0 %v5427_v42  ;;  %v7758_v55 = vpop.permute.xlu0 %3368 }
 0x8af   :  { %5430 = vmatpush1.bf16.msra.mxu0 %v5429_v13 }
 0x8b1   :  { %v7764_v35 = vpop.permute.xlu1 %3235 }
 0x8b2   :  { %3153 = vmatmul.mubr.f32.vlgmr.msra.gmra.mrb[66].mxu0 %v5101_v3  ;;  %v7762_v63 = vpop.permute.xlu0 %3230 }
 0x8b3   :  { %3700 = vmatprep.mubr.f32.mxu0 %v8396_v25 }
 0x8b5   :  { %v7778_v31 = vpop.permute.xlu1 %3383 }
 0x8b6   :  { %v7776_v17 = vpop.permute.xlu0 %3378 }
 0x8b9   :  { %v7782_v34 = vpop.permute.xlu1 %3245 }
 0x8ba   :  { %v7780_v2 = vpop.permute.xlu0 %3240 }
 0x8be   :  { %v7785_v61 = vpop.permute.xlu0 %3388 }
 0x985   :  { %v3154_v46 = vpop.f32.mrb[66].mxu0 }
 0x986   :  { %v3155_v28 = vadd.f32 %v3154_v46, %v8550_v9  ;;  %v3156_v4 = vpop.f32.mrb[67].mxu0 }
 0x987   :  { %v3157_v11 = vadd.f32 %v3156_v4, %v8550_v9 }
 0x988   :  { %5596 = vtanh.f32 %v3155_v28 }
 0x989   :  { %5598 = vtanh.f32 %v3157_v11  ;;  %v3163_v24 = vcombine.low %v3155_v28, %v3157_v11 }
 0x98b   :  { %v5103_v52 = vrot.slane %v3163_v24, 9 }
 0x98d   :  { %v3167_v27 = vsub.f32 %v7313_v5, %v5103_v52  ;;  %v7801_v5 = vpop.permute.xlu0 %3250 }
 0x991   :  { %v7815_v24 = vpop.permute.xlu0 %3398 }
 0x992   :  { %v5597_v26 = vpop.eup %5596 }
 0x993   :  { %v5599_v21 = vpop.eup %5598  ;;  %v3168_v1 = vsub.f32 0.0, %v5597_v26  ;;  %v7769_v51 = vsub.f32 %v2397_v16, %v5597_v26 }
 0x994   :  { %v3169_v18 = vsub.f32 0.0, %v5599_v21  ;;  %v7774_v7 = vsub.f32 %v2398_v36, %v5599_v21  ;;  %v7787_v36 = vpop.permute.xlu1 %3393 }
 0x995   :  { %v3170_v30 = vmul.f32 1.442695, %v3168_v1 }
 0x996   :  { %v3172_v14 = vmul.f32 1.442695, %v3169_v18 }
 0x997   :  { %5600 = vpow2.f32 %v3170_v30 }
 0x998   :  { %5602 = vpow2.f32 %v3172_v14  ;;  %v7803_v49 = vpop.permute.xlu1 %3255 }
 0x9a1   :  { %v5601_v62 = vpop.eup %5600 }
 0x9a2   :  { %v5603_v16 = vpop.eup %5602 }
 0x9a3   :  { %v3176_v33 = vcombine.low %v5601_v62, %v5603_v16 }
 0x9a5   :  { %v7789_v8 = vmul.f32 %v3176_v33, %v3167_v27 }
 0x9a7   :  { %v3282_v40 = vrot.slane %v7789_v8, %v8453_v6  ;;  %v3286_v22 = vrot.slane %v7789_v8, %v8454_v47 }
 0x9a9   :  { %v7796_v29 = vrot.slane %v3282_v40, %v8453_v6  ;;  %v7799_v39 = vrot.slane %v3286_v22, %v8453_v6 }
 0x9ab   :  { %v3298_v58 = vmul.f32 %v7799_v39, %v3201_v38  ;;  %v3300_v54 = vmul.f32 %v7799_v39, %v3206_v10  ;;  %v3297_v41 = vmul.f32 %v7796_v29, %v3201_v38  ;;  %v3299_v50 = vmul.f32 %v7796_v29, %v3206_v10 }
 0x9ac   :  { %v3302_v47 = vmul.f32 %v7799_v39, %v3211_v44  ;;  %v3304_v0 = vmul.f32 %v7799_v39, %v3216_v20  ;;  %v3301_v32 = vmul.f32 %v7796_v29, %v3211_v44  ;;  %v3303_v6 = vmul.f32 %v7796_v29, %v3216_v20 }
 0x9ad   :  { %v3427_v45 = vadd.f32 %v3349_v19, %v3298_v58  ;;  %v3429_v15 = vadd.f32 %v3354_v56, %v3300_v54  ;;  %v3426_v13 = vadd.f32 %v3349_v19, %v3297_v41  ;;  %v3428_v42 = vadd.f32 %v3354_v56, %v3299_v50  ;;  %v7819_v19 = vpop.permute.xlu1 %3403 }
 0x9ae   :  { %v3431_v3 = vadd.f32 %v3359_v59, %v3302_v47  ;;  %v3433_v46 = vadd.f32 %v3364_v23, %v3304_v0  ;;  %v3430_v9 = vadd.f32 %v3359_v59, %v3301_v32  ;;  %v3432_v28 = vadd.f32 %v3364_v23, %v3303_v6  ;;  %v7829_v32 = vpop.permute.xlu0 %3260 }
 0x9af   :  { %v3459_v4 = vmul.f32 0.01, %v3427_v45  ;;  %v3461_v38 = vmul.f32 0.01, %v3429_v15  ;;  %v3458_v11 = vmul.f32 0.01, %v3426_v13  ;;  %v3306_v10 = vmul.f32 %v7799_v39, %v7752_v37 }
 0x9b0   :  { %v3460_v26 = vmul.f32 0.01, %v3428_v42  ;;  %v3463_v44 = vmul.f32 0.01, %v3431_v3  ;;  %v3465_v21 = vmul.f32 0.01, %v3433_v46  ;;  %v3308_v20 = vmul.f32 %v7799_v39, %v7755_v48 }
 0x9b1   :  { %v3491_v56 = vmax.f32 %v3427_v45, %v3459_v4  ;;  %v3493_v1 = vmax.f32 %v3429_v15, %v3461_v38  ;;  %v3490_v59 = vmax.f32 %v3426_v13, %v3458_v11  ;;  %v3462_v23 = vmul.f32 0.01, %v3430_v9  ;;  %v7836_v13 = vpop.permute.xlu1 %3265 }
 0x9b2   :  { %v3492_v18 = vmax.f32 %v3428_v42, %v3460_v26  ;;  %v3495_v30 = vmax.f32 %v3431_v3, %v3463_v44  ;;  %v3497_v14 = vmax.f32 %v3433_v46, %v3465_v21  ;;  %v3464_v52 = vmul.f32 0.01, %v3432_v28 }
 0x9b3   :  { %v5431_v62 = vpack.c.bf16 %v3493_v1, %v3491_v56  ;;  %v3494_v16 = vmax.f32 %v3430_v9, %v3462_v23  ;;  %v3435_v27 = vadd.f32 %v7758_v55, %v3306_v10  ;;  %v3437_v33 = vadd.f32 %v7760_v57, %v3308_v20  ;;  %v3409_v1 = vpop.permute.xlu0 %3408 }
 0x9b4   :  { %v5433_v40 = vpack.c.bf16 %v3492_v18, %v3490_v59  ;;  %v5435_v22 = vpack.c.bf16 %v3497_v14, %v3495_v30  ;;  %v3496_v58 = vmax.f32 %v3432_v28, %v3464_v52  ;;  %v3305_v54 = vmul.f32 %v7796_v29, %v7752_v37 }
 0x9b5   :  { %5432 = vmatprep.subr.bf16.mxu0 %v5431_v62  ;;  %v3467_v41 = vmul.f32 0.01, %v3435_v27  ;;  %v3469_v50 = vmul.f32 0.01, %v3437_v33  ;;  %v3307_v47 = vmul.f32 %v7796_v29, %v7755_v48  ;;  %v3310_v0 = vmul.f32 %v7799_v39, %v7762_v63  ;;  %v3414_v14 = vpop.permute.xlu1 %3413 }
 0x9b6   :  { %5434 = vmatpush1.bf16.msra.mxu0 %v5433_v40  ;;  %v5437_v6 = vpack.c.bf16 %v3496_v58, %v3494_v16  ;;  %v3434_v45 = vadd.f32 %v7758_v55, %v3305_v54  ;;  %v3312_v15 = vmul.f32 %v7799_v39, %v7764_v35  ;;  %v3309_v37 = vmul.f32 %v7796_v29, %v7762_v63 }
 0x9b7   :  { %5436 = vmatprep.subr.bf16.mxu0 %v5435_v22  ;;  %v3499_v42 = vmax.f32 %v3435_v27, %v3467_v41  ;;  %v3501_v48 = vmax.f32 %v3437_v33, %v3469_v50  ;;  %v3436_v3 = vadd.f32 %v7760_v57, %v3307_v47  ;;  %v3439_v46 = vadd.f32 %v7776_v17, %v3310_v0 }
 0x9b8   :  { %v3466_v9 = vmul.f32 0.01, %v3434_v45  ;;  %v3441_v28 = vadd.f32 %v7778_v31, %v3312_v15  ;;  %v3311_v55 = vmul.f32 %v7796_v29, %v7764_v35  ;;  %v3438_v4 = vadd.f32 %v7776_v17, %v3309_v37  ;;  %v3271_v37 = vpop.permute.xlu0 %3270 }
 0x9b9   :  { %v5439_v38 = vpack.c.bf16 %v3501_v48, %v3499_v42  ;;  %v3468_v11 = vmul.f32 0.01, %v3436_v3  ;;  %v3471_v63 = vmul.f32 0.01, %v3439_v46  ;;  %v3314_v10 = vmul.f32 %v7799_v39, %v7780_v2 }
 0x9ba   :  { %5438 = vmatpush1.bf16.msra.mxu0 %v5437_v6  ;;  %v3498_v26 = vmax.f32 %v3434_v45, %v3466_v9  ;;  %v3473_v44 = vmul.f32 0.01, %v3441_v28  ;;  %v3440_v57 = vadd.f32 %v7778_v31, %v3311_v55  ;;  %v3470_v21 = vmul.f32 0.01, %v3438_v4 }
 0x9bb   :  { %5440 = vmatprep.subr.bf16.mxu0 %v5439_v38  ;;  %v3500_v20 = vmax.f32 %v3436_v3, %v3468_v11  ;;  %v3503_v56 = vmax.f32 %v3439_v46, %v3471_v63  ;;  %v3316_v35 = vmul.f32 %v7799_v39, %v7782_v34  ;;  %v3443_v17 = vadd.f32 %v7785_v61, %v3314_v10  ;;  %v3276_v46 = vpop.permute.xlu1 %3275 }
 0x9bc   :  { %v3505_v59 = vmax.f32 %v3441_v28, %v3473_v44  ;;  %v3472_v23 = vmul.f32 0.01, %v3440_v57  ;;  %v3502_v18 = vmax.f32 %v3438_v4, %v3470_v21  ;;  %v3313_v30 = vmul.f32 %v7796_v29, %v7780_v2 }
 0x9bd   :  { %v5441_v52 = vpack.c.bf16 %v3500_v20, %v3498_v26  ;;  %v3445_v31 = vadd.f32 %v7787_v36, %v3316_v35  ;;  %v3475_v62 = vmul.f32 0.01, %v3443_v17  ;;  %v3315_v16 = vmul.f32 %v7796_v29, %v7782_v34 }
 0x9be   :  { %v5443_v27 = vpack.c.bf16 %v3505_v59, %v3503_v56  ;;  %v3504_v33 = vmax.f32 %v3440_v57, %v3472_v23  ;;  %v3442_v40 = vadd.f32 %v7785_v61, %v3313_v30  ;;  %v3318_v22 = vmul.f32 %v7799_v39, %v7801_v5  ;;  %v3419_v59 = vpop.permute.xlu0 %3418 }
 0x9bf   :  { %5442 = vmatpush1.bf16.msra.mxu0 %v5441_v52  ;;  %v3477_v58 = vmul.f32 0.01, %v3445_v31  ;;  %v3507_v54 = vmax.f32 %v3443_v17, %v3475_v62  ;;  %v3444_v2 = vadd.f32 %v7787_v36, %v3315_v16  ;;  %v3320_v41 = vmul.f32 %v7799_v39, %v7803_v49 }
 0x9c0   :  { %5444 = vmatprep.subr.bf16.mxu0 %v5443_v27  ;;  %v5445_v50 = vpack.c.bf16 %v3504_v33, %v3502_v18  ;;  %v3474_v47 = vmul.f32 0.01, %v3442_v40  ;;  %v3447_v34 = vadd.f32 %v7815_v24, %v3318_v22  ;;  %v3317_v0 = vmul.f32 %v7796_v29, %v7801_v5 }
 0x9c1   :  { %v3509_v61 = vmax.f32 %v3445_v31, %v3477_v58  ;;  %v3476_v6 = vmul.f32 0.01, %v3444_v2  ;;  %v3449_v45 = vadd.f32 %v7819_v19, %v3320_v41  ;;  %v3319_v15 = vmul.f32 %v7796_v29, %v7803_v49  ;;  %v3424_v31 = vpop.permute.xlu1 %3423 }
 0x9c2   :  { %v3506_v36 = vmax.f32 %v3442_v40, %v3474_v47  ;;  %v3479_v42 = vmul.f32 0.01, %v3447_v34  ;;  %v3446_v48 = vadd.f32 %v7815_v24, %v3317_v0  ;;  %v3322_v3 = vmul.f32 %v7799_v39, %v7829_v32 }
 0x9c3   :  { %5446 = vmatpush1.bf16.msra.mxu0 %v5445_v50  ;;  %v5447_v9 = vpack.c.bf16 %v3509_v61, %v3507_v54  ;;  %v3508_v28 = vmax.f32 %v3444_v2, %v3476_v6  ;;  %v3481_v5 = vmul.f32 0.01, %v3449_v45  ;;  %v3448_v55 = vadd.f32 %v7819_v19, %v3319_v15 }
 0x9c4   :  { %v3511_v4 = vmax.f32 %v3447_v34, %v3479_v42  ;;  %v3478_v38 = vmul.f32 0.01, %v3446_v48  ;;  %v3324_v49 = vmul.f32 %v7799_v39, %v7836_v13  ;;  %v3451_v11 = vadd.f32 %v3409_v1, %v3322_v3  ;;  %v5138_v42 = vld [vmem:[%s8177_s5 + $0x90] sm:$0xff]  ;;  %v5140_v3 = vld [vmem:[%s8177_s5 + $0xa0] sm:$0xff] }
 0x9c5   :  { %5448 = vmatprep.subr.bf16.mxu0 %v5447_v9  ;;  %v5449_v63 = vpack.c.bf16 %v3508_v28, %v3506_v36  ;;  %v3513_v10 = vmax.f32 %v3449_v45, %v3481_v5  ;;  %v3480_v24 = vmul.f32 0.01, %v3448_v55  ;;  %v3321_v26 = vmul.f32 %v7796_v29, %v7829_v32  ;;  %v5137_v36 = vld [vmem:[%s8177_s5 + $0x88] sm:$0xff]  ;;  %v5142_v9 = vld [vmem:[%s8177_s5 + $0xb0] sm:$0xff]  ;;  %v5143_v28 = vld [vmem:[%s8177_s5 + $0xb8] sm:$0xff] }
 0x9c6   :  { %v3510_v44 = vmax.f32 %v3446_v48, %v3478_v38  ;;  %v3453_v57 = vadd.f32 %v3414_v14, %v3324_v49  ;;  %v3483_v21 = vmul.f32 0.01, %v3451_v11  ;;  %v3323_v20 = vmul.f32 %v7796_v29, %v7836_v13  ;;  %v5139_v48 = vld [vmem:[%s8177_s5 + $0x98] sm:$0xff]  ;;  %v5144_v5 = vld [vmem:[%s8177_s5 + $0xc0] sm:$0xff] }
 0x9c7   :  { %5450 = vmatpush1.bf16.msra.mxu0 %v5449_v63  ;;  %v5451_v19 = vpack.c.bf16 %v3513_v10, %v3511_v4  ;;  %v3512_v56 = vmax.f32 %v3448_v55, %v3480_v24  ;;  %v3450_v35 = vadd.f32 %v3409_v1, %v3321_v26  ;;  %v3326_v17 = vmul.f32 %v7799_v39, %v3271_v37  ;;  %v5145_v55 = vld [vmem:[%s8177_s5 + $0xc8] sm:$0xff]  ;;  %v5146_v4 = vld [vmem:[%s8177_s5 + $0xd0] sm:$0xff]  ;;  %v5147_v38 = vld [vmem:[%s8177_s5 + $0xd8] sm:$0xff]  ;;  %v3559_v24 = vpop.permute.xlu0 %3558 }
 0x9c8   :  { %v3485_v23 = vmul.f32 0.01, %v3453_v57  ;;  %v3515_v18 = vmax.f32 %v3451_v11, %v3483_v21  ;;  %v3452_v30 = vadd.f32 %v3414_v14, %v3323_v20  ;;  %v3328_v52 = vmul.f32 %v7799_v39, %v3276_v46  ;;  %v5148_v49 = vld [vmem:[%s8177_s5 + $0xe0] sm:$0xff]  ;;  %v5149_v11 = vld [vmem:[%s8177_s5 + $0xe8] sm:$0xff]  ;;  %v5150_v63 = vld [vmem:[%s8177_s5 + $0xf0] sm:$0xff]  ;;  %v3564_v20 = vpop.permute.xlu1 %3563 }
 0x9c9   :  { %5452 = vmatprep.subr.bf16.mxu0 %v5451_v19  ;;  %v5453_v32 = vpack.c.bf16 %v3512_v56, %v3510_v44  ;;  %v3482_v62 = vmul.f32 0.01, %v3450_v35  ;;  %v3455_v16 = vadd.f32 %v3419_v59, %v3326_v17  ;;  %v3325_v27 = vmul.f32 %v7796_v29, %v3271_v37  ;;  %v5136_v37 = vld [vmem:[%s8177_s5 + $0x80] sm:$0xff]  ;;  %v5151_v10 = vld [vmem:[%s8177_s5 + $0xf8] sm:$0xff] }
 0x9ca   :  { %v3517_v13 = vmax.f32 %v3453_v57, %v3485_v23  ;;  %v3484_v33 = vmul.f32 0.01, %v3452_v30  ;;  %v3457_v40 = vadd.f32 %v3424_v31, %v3328_v52  ;;  %v3327_v1 = vmul.f32 %v7796_v29, %v3276_v46  ;;  %v5141_v46 = vld [vmem:[%s8177_s5 + $0xa8] sm:$0xff] }
 0x9cb   :  { %5454 = vmatpush1.bf16.msra.mxu0 %v5453_v32  ;;  %v3514_v22 = vmax.f32 %v3450_v35, %v3482_v62  ;;  %v3487_v58 = vmul.f32 0.01, %v3455_v16  ;;  %v3454_v54 = vadd.f32 %v3419_v59, %v3325_v27 }
 0x9cc   :  { %v5455_v2 = vpack.c.bf16 %v3517_v13, %v3515_v18  ;;  %v3516_v14 = vmax.f32 %v3452_v30, %v3484_v33  ;;  %v3489_v41 = vmul.f32 0.01, %v3457_v40  ;;  %v3456_v39 = vadd.f32 %v3424_v31, %v3327_v1  ;;  %v3569_v30 = vpop.permute.xlu0 %3568 }
 0x9cd   :  { %v3519_v50 = vmax.f32 %v3455_v16, %v3487_v58  ;;  %v3486_v47 = vmul.f32 0.01, %v3454_v54 }
 0x9ce   :  { %5456 = vmatprep.subr.bf16.mxu0 %v5455_v2  ;;  %v5457_v34 = vpack.c.bf16 %v3516_v14, %v3514_v22  ;;  %v3521_v0 = vmax.f32 %v3457_v40, %v3489_v41  ;;  %v3488_v61 = vmul.f32 0.01, %v3456_v39  ;;  %v3574_v22 = vpop.permute.xlu1 %3573 }
 0x9cf   :  { %v3518_v6 = vmax.f32 %v3454_v54, %v3486_v47 }
 0x9d0   :  { %5458 = vmatpush1.bf16.msra.mxu0 %v5457_v34  ;;  %v5459_v45 = vpack.c.bf16 %v3521_v0, %v3519_v50  ;;  %v3520_v15 = vmax.f32 %v3456_v39, %v3488_v61  ;;  %v3579_v34 = vpop.permute.xlu0 %3578 }
 0x9d2   :  { %5460 = vmatprep.subr.bf16.mxu0 %v5459_v45  ;;  %v5461_v29 = vpack.c.bf16 %v3520_v15, %v3518_v6 }
 0x9d4   :  { %5462 = vmatpush1.bf16.msra.mxu0 %v5461_v29 }
 0x9d7   :  { %3701 = vmatmul.mubr.f32.vlgmr.msra.gmra.mrb[68].mxu0 %v5136_v37 }
 0x9d8   :  { %3706 = vmatprep.mubr.f32.mxu0 %v8396_v25 }
 0x9db   :  { %3707 = vmatmul.mubr.f32.gmra.mrb[70].mxu0 %v5137_v36 }
 0x9dc   :  { %3712 = vmatprep.mubr.f32.mxu0 %v8396_v25 }
 0x9df   :  { %3713 = vmatmul.mubr.f32.gmra.mrb[72].mxu0 %v5138_v42 }
 0x9e0   :  { %3718 = vmatprep.mubr.f32.mxu0 %v8396_v25 }
 0x9e3   :  { %3719 = vmatmul.mubr.f32.gmra.mrb[74].mxu0 %v5139_v48 }
 0x9e4   :  { %3724 = vmatprep.mubr.f32.mxu0 %v8396_v25 }
 0x9e7   :  { %3725 = vmatmul.mubr.f32.gmra.mrb[76].mxu0 %v5140_v3  ;;  %v3584_v3 = vpop.permute.xlu1 %3583 }
 0x9e8   :  { %3730 = vmatprep.mubr.f32.mxu0 %v8396_v25 }
 0x9eb   :  { %3731 = vmatmul.mubr.f32.gmra.mrb[78].mxu0 %v5141_v46 }
 0x9ec   :  { %3736 = vmatprep.mubr.f32.mxu0 %v8396_v25 }
 0x9ef   :  { %3737 = vmatmul.mubr.f32.gmra.mrb[80].mxu0 %v5142_v9 }
 0x9f0   :  { %3742 = vmatprep.mubr.f32.mxu0 %v8396_v25 }
 0x9f3   :  { %3743 = vmatmul.mubr.f32.gmra.mrb[82].mxu0 %v5143_v28 }
 0x9f4   :  { %3748 = vmatprep.mubr.f32.mxu0 %v8396_v25 }
 0x9f7   :  { %3749 = vmatmul.mubr.f32.gmra.mrb[84].mxu0 %v5144_v5 }
 0x9f8   :  { %3754 = vmatprep.mubr.f32.mxu0 %v8396_v25 }
 0x9fb   :  { %3755 = vmatmul.mubr.f32.gmra.mrb[86].mxu0 %v5145_v55 }
 0x9fc   :  { %3760 = vmatprep.mubr.f32.mxu0 %v8396_v25 }
 0x9ff   :  { %3761 = vmatmul.mubr.f32.gmra.mrb[88].mxu0 %v5146_v4 }
 0xa00   :  { %3766 = vmatprep.mubr.f32.mxu0 %v8396_v25 }
 0xa03   :  { %3767 = vmatmul.mubr.f32.gmra.mrb[90].mxu0 %v5147_v38 }
 0xa04   :  { %3772 = vmatprep.mubr.f32.mxu0 %v8396_v25 }
 0xa07   :  { %3773 = vmatmul.mubr.f32.gmra.mrb[92].mxu0 %v5148_v49 }
 0xa08   :  { %3778 = vmatprep.mubr.f32.mxu0 %v8396_v25 }
 0xa0b   :  { %3779 = vmatmul.mubr.f32.gmra.mrb[94].mxu0 %v5149_v11  ;;  %v3589_v11 = vpop.permute.xlu0 %3588 }
 0xa0c   :  { %3784 = vmatprep.mubr.f32.mxu0 %v8396_v25 }
 0xa0f   :  { %3785 = vmatmul.mubr.f32.gmra.mrb[96].mxu0 %v5150_v63 }
 0xa10   :  { %3790 = vmatprep.mubr.f32.mxu0 %v8396_v25 }
 0xa13   :  { %3791 = vmatmul.mubr.f32.gmra.mrb[98].mxu0 %v5151_v10 }
 0xa14   :  { %4709 = vmatprep.mubr.f32.mxu0 %v8396_v25 }
 0xaaa   :  { %v3702_v26 = vpop.f32.mrb[68].mxu0 }
 0xaab   :  { %v3703_v44 = vadd.f32 %v3702_v26, %v3559_v24  ;;  %v3704_v57 = vpop.f32.mrb[69].mxu0 }
 0xaac   :  { %v3705_v21 = vadd.f32 %v3704_v57, %v3559_v24 }
 0xaad   :  { %v3797_v56 = vmul.f32 0.01, %v3703_v44 }
 0xaae   :  { %v3708_v19 = vpop.f32.mrb[70].mxu0  ;;  %v3798_v59 = vmul.f32 0.01, %v3705_v21 }
 0xaaf   :  { %v3709_v35 = vadd.f32 %v3708_v19, %v3564_v20  ;;  %v3710_v17 = vpop.f32.mrb[71].mxu0  ;;  %v3829_v32 = vmax.f32 %v3703_v44, %v3797_v56 }
 0xab0   :  { %v3711_v23 = vadd.f32 %v3710_v17, %v3564_v20  ;;  %v3830_v13 = vmax.f32 %v3705_v21, %v3798_v59 }
 0xab1   :  { %v3799_v18 = vmul.f32 0.01, %v3709_v35 }
 0xab2   :  { %v3800_v52 = vmul.f32 0.01, %v3711_v23  ;;  %v3714_v31 = vpop.f32.mrb[72].mxu0 }
 0xab3   :  { %v3831_v62 = vmax.f32 %v3709_v35, %v3799_v18  ;;  %v3715_v16 = vadd.f32 %v3714_v31, %v3569_v30  ;;  %v3716_v27 = vpop.f32.mrb[73].mxu0  ;;  %v3594_v35 = vpop.permute.xlu1 %3593 }
 0xab4   :  { %v3832_v33 = vmax.f32 %v3711_v23, %v3800_v52  ;;  %v3717_v40 = vadd.f32 %v3716_v27, %v3569_v30 }
 0xab5   :  { %v5465_v1 = vpack.c.bf16 %v3831_v62, %v3829_v32  ;;  %v3801_v2 = vmul.f32 0.01, %v3715_v16  ;;  %v3599_v62 = vpop.permute.xlu0 %3598 }
 0xab6   :  { %v3720_v58 = vpop.f32.mrb[74].mxu0  ;;  %v5463_v54 = vpack.c.bf16 %v3832_v33, %v3830_v13  ;;  %v3802_v39 = vmul.f32 0.01, %v3717_v40 }
 0xab7   :  { %v3721_v14 = vadd.f32 %v3720_v58, %v3574_v22  ;;  %v3722_v41 = vpop.f32.mrb[75].mxu0  ;;  %v3833_v6 = vmax.f32 %v3715_v16, %v3801_v2 }
 0xab8   :  { %v3723_v50 = vadd.f32 %v3722_v41, %v3574_v22  ;;  %5464 = vmatprep.subr.bf16.mxu1 %v5463_v54  ;;  %v3834_v37 = vmax.f32 %v3717_v40, %v3802_v39 }
 0xab9   :  { %v3803_v47 = vmul.f32 0.01, %v3721_v14  ;;  %5466 = vmatpush1.bf16.msra.mxu1 %v5465_v1 }
 0xaba   :  { %v3804_v0 = vmul.f32 0.01, %v3723_v50  ;;  %v3726_v61 = vpop.f32.mrb[76].mxu0 }
 0xabb   :  { %v3835_v45 = vmax.f32 %v3721_v14, %v3803_v47  ;;  %v3727_v15 = vadd.f32 %v3726_v61, %v3579_v34  ;;  %v3728_v29 = vpop.f32.mrb[77].mxu0  ;;  %v3604_v14 = vpop.permute.xlu1 %3603 }
 0xabc   :  { %v3836_v36 = vmax.f32 %v3723_v50, %v3804_v0  ;;  %v3729_v42 = vadd.f32 %v3728_v29, %v3579_v34 }
 0xabd   :  { %v5469_v48 = vpack.c.bf16 %v3835_v45, %v3833_v6  ;;  %v3805_v28 = vmul.f32 0.01, %v3727_v15  ;;  %v3609_v45 = vpop.permute.xlu0 %3608 }
 0xabe   :  { %v3732_v46 = vpop.f32.mrb[78].mxu0  ;;  %v5467_v9 = vpack.c.bf16 %v3836_v36, %v3834_v37  ;;  %v3806_v4 = vmul.f32 0.01, %v3729_v42 }
 0xabf   :  { %v3733_v5 = vadd.f32 %v3732_v46, %v3584_v3  ;;  %v3734_v55 = vpop.f32.mrb[79].mxu0  ;;  %v3837_v24 = vmax.f32 %v3727_v15, %v3805_v28 }
 0xac0   :  { %v3735_v38 = vadd.f32 %v3734_v55, %v3584_v3  ;;  %5468 = vmatprep.subr.bf16.mxu1 %v5467_v9  ;;  %v3838_v21 = vmax.f32 %v3729_v42, %v3806_v4 }
 0xac1   :  { %v3807_v49 = vmul.f32 0.01, %v3733_v5  ;;  %5470 = vmatpush1.bf16.msra.mxu1 %v5469_v48 }
 0xac2   :  { %v3808_v63 = vmul.f32 0.01, %v3735_v38  ;;  %v3738_v10 = vpop.f32.mrb[80].mxu0 }
 0xac3   :  { %v3839_v26 = vmax.f32 %v3733_v5, %v3807_v49  ;;  %v3739_v44 = vadd.f32 %v3738_v10, %v3589_v11  ;;  %v3740_v57 = vpop.f32.mrb[81].mxu0  ;;  %v3614_v5 = vpop.permute.xlu1 %3613 }
 0xac4   :  { %v3840_v20 = vmax.f32 %v3735_v38, %v3808_v63  ;;  %v3741_v19 = vadd.f32 %v3740_v57, %v3589_v11 }
 0xac5   :  { %v5473_v56 = vpack.c.bf16 %v3839_v26, %v3837_v24  ;;  %v3809_v23 = vmul.f32 0.01, %v3739_v44  ;;  %v3619_v26 = vpop.permute.xlu0 %3618 }
 0xac6   :  { %v3744_v17 = vpop.f32.mrb[82].mxu0  ;;  %v5471_v59 = vpack.c.bf16 %v3840_v20, %v3838_v21  ;;  %v3810_v52 = vmul.f32 0.01, %v3741_v19 }
 0xac7   :  { %v3745_v18 = vadd.f32 %v3744_v17, %v3594_v35  ;;  %v3746_v30 = vpop.f32.mrb[83].mxu0  ;;  %v3841_v13 = vmax.f32 %v3739_v44, %v3809_v23 }
 0xac8   :  { %v3747_v31 = vadd.f32 %v3746_v30, %v3594_v35  ;;  %5472 = vmatprep.subr.bf16.mxu1 %v5471_v59  ;;  %v3842_v22 = vmax.f32 %v3741_v19, %v3810_v52 }
 0xac9   :  { %v3811_v32 = vmul.f32 0.01, %v3745_v18  ;;  %5474 = vmatpush1.bf16.msra.mxu1 %v5473_v56 }
 0xaca   :  { %v3812_v16 = vmul.f32 0.01, %v3747_v31  ;;  %v3750_v27 = vpop.f32.mrb[84].mxu0 }
 0xacb   :  { %v3843_v33 = vmax.f32 %v3745_v18, %v3811_v32  ;;  %v3751_v40 = vadd.f32 %v3750_v27, %v3599_v62  ;;  %v3752_v1 = vpop.f32.mrb[85].mxu0  ;;  %v3624_v18 = vpop.permute.xlu1 %3623 }
 0xacc   :  { %v3844_v58 = vmax.f32 %v3747_v31, %v3812_v16  ;;  %v3753_v54 = vadd.f32 %v3752_v1, %v3599_v62 }
 0xacd   :  { %v5477_v2 = vpack.c.bf16 %v3843_v33, %v3841_v13  ;;  %v3813_v50 = vmul.f32 0.01, %v3751_v40  ;;  %v3629_v33 = vpop.permute.xlu0 %3628 }
 0xace   :  { %v3756_v41 = vpop.f32.mrb[86].mxu0  ;;  %v5475_v39 = vpack.c.bf16 %v3844_v58, %v3842_v22  ;;  %v3814_v0 = vmul.f32 0.01, %v3753_v54 }
 0xacf   :  { %v3757_v47 = vadd.f32 %v3756_v41, %v3604_v14  ;;  %v3758_v34 = vpop.f32.mrb[87].mxu0  ;;  %v3845_v37 = vmax.f32 %v3751_v40, %v3813_v50 }
 0xad0   :  { %v3759_v61 = vadd.f32 %v3758_v34, %v3604_v14  ;;  %5476 = vmatprep.subr.bf16.mxu1 %v5475_v39  ;;  %v3846_v3 = vmax.f32 %v3753_v54, %v3814_v0 }
 0xad1   :  { %v3815_v6 = vmul.f32 0.01, %v3757_v47  ;;  %5478 = vmatpush1.bf16.msra.mxu1 %v5477_v2 }
 0xad2   :  { %v3816_v15 = vmul.f32 0.01, %v3759_v61  ;;  %v3762_v29 = vpop.f32.mrb[88].mxu0 }
 0xad3   :  { %v3847_v36 = vmax.f32 %v3757_v47, %v3815_v6  ;;  %v3763_v42 = vadd.f32 %v3762_v29, %v3609_v45  ;;  %v3764_v48 = vpop.f32.mrb[89].mxu0  ;;  %v3634_v47 = vpop.permute.xlu1 %3633 }
 0xad4   :  { %v3848_v46 = vmax.f32 %v3759_v61, %v3816_v15  ;;  %v3765_v9 = vadd.f32 %v3764_v48, %v3609_v45 }
 0xad5   :  { %v5481_v28 = vpack.c.bf16 %v3847_v36, %v3845_v37  ;;  %v3817_v38 = vmul.f32 0.01, %v3763_v42 }
 0xad6   :  { %v3768_v55 = vpop.f32.mrb[90].mxu0  ;;  %v5479_v4 = vpack.c.bf16 %v3848_v46, %v3846_v3  ;;  %v3818_v63 = vmul.f32 0.01, %v3765_v9 }
 0xad7   :  { %v3769_v49 = vadd.f32 %v3768_v55, %v3614_v5  ;;  %v3770_v11 = vpop.f32.mrb[91].mxu0  ;;  %v3849_v21 = vmax.f32 %v3763_v42, %v3817_v38  ;;  %v3868_v55 = vpop.permute.xlu0 %3867 }
 0xad8   :  { %v3771_v10 = vadd.f32 %v3770_v11, %v3614_v5  ;;  %5480 = vmatprep.subr.bf16.mxu1 %v5479_v4  ;;  %v3850_v35 = vmax.f32 %v3765_v9, %v3818_v63  ;;  %v5168_v5 = vld [vmem:[%s8179_s7 + $0x2] sm:$0x3]  ;;  %v3981_v4 = vpop.permute.xlu1 %3980 }
 0xad9   :  { %v3819_v24 = vmul.f32 0.01, %v3769_v49  ;;  %5482 = vmatpush1.bf16.msra.mxu1 %v5481_v28 }
 0xada   :  { %v3820_v44 = vmul.f32 0.01, %v3771_v10  ;;  %v3774_v57 = vpop.f32.mrb[92].mxu0 }
 0xadb   :  { %v3851_v20 = vmax.f32 %v3769_v49, %v3819_v24  ;;  %v3775_v19 = vadd.f32 %v3774_v57, %v3619_v26  ;;  %v3776_v56 = vpop.f32.mrb[93].mxu0  ;;  %v3986_v38 = vpop.permute.xlu0 %3985 }
 0xadc   :  { %v3852_v17 = vmax.f32 %v3771_v10, %v3820_v44  ;;  %v3777_v59 = vadd.f32 %v3776_v56, %v3619_v26  ;;  %v4128_v49 = vpop.permute.xlu1 %4127 }
 0xadd   :  { %v5485_v23 = vpack.c.bf16 %v3851_v20, %v3849_v21  ;;  %v3821_v31 = vmul.f32 0.01, %v3775_v19 }
 0xade   :  { %v3780_v30 = vpop.f32.mrb[94].mxu0  ;;  %v5483_v52 = vpack.c.bf16 %v3852_v17, %v3850_v35  ;;  %v3822_v16 = vmul.f32 0.01, %v3777_v59 }
 0xadf   :  { %v3781_v32 = vadd.f32 %v3780_v30, %v3624_v18  ;;  %v3782_v62 = vpop.f32.mrb[95].mxu0  ;;  %v3853_v22 = vmax.f32 %v3775_v19, %v3821_v31  ;;  %v4133_v11 = vpop.permute.xlu0 %4132 }
 0xae0   :  { %v3783_v27 = vadd.f32 %v3782_v62, %v3624_v18  ;;  %5484 = vmatprep.subr.bf16.mxu1 %v5483_v52  ;;  %v3854_v14 = vmax.f32 %v3777_v59, %v3822_v16  ;;  %v3991_v63 = vpop.permute.xlu1 %3990 }
 0xae1   :  { %v3823_v13 = vmul.f32 0.01, %v3781_v32  ;;  %5486 = vmatpush1.bf16.msra.mxu1 %v5485_v23 }
 0xae2   :  { %v3824_v40 = vmul.f32 0.01, %v3783_v27  ;;  %v3786_v1 = vpop.f32.mrb[96].mxu0 }
 0xae3   :  { %v3855_v58 = vmax.f32 %v3781_v32, %v3823_v13  ;;  %v3787_v54 = vadd.f32 %v3786_v1, %v3629_v33  ;;  %v3788_v2 = vpop.f32.mrb[97].mxu0  ;;  %v3996_v10 = vpop.permute.xlu0 %3995 }
 0xae4   :  { %v3856_v41 = vmax.f32 %v3783_v27, %v3824_v40  ;;  %v3789_v39 = vadd.f32 %v3788_v2, %v3629_v33  ;;  %v4138_v24 = vpop.permute.xlu1 %4137 }
 0xae5   :  { %v5489_v50 = vpack.c.bf16 %v3855_v58, %v3853_v22  ;;  %v3825_v61 = vmul.f32 0.01, %v3787_v54 }
 0xae6   :  { %v3792_v34 = vpop.f32.mrb[98].mxu0  ;;  %v5487_v0 = vpack.c.bf16 %v3856_v41, %v3854_v14  ;;  %v3826_v15 = vmul.f32 0.01, %v3789_v39 }
 0xae7   :  { %v3793_v6 = vadd.f32 %v3792_v34, %v3634_v47  ;;  %v3794_v45 = vpop.f32.mrb[99].mxu0  ;;  %v3857_v42 = vmax.f32 %v3787_v54, %v3825_v61  ;;  %v4143_v26 = vpop.permute.xlu0 %4142 }
 0xae8   :  { %v3795_v29 = vadd.f32 %v3794_v45, %v3634_v47  ;;  %5488 = vmatprep.subr.bf16.mxu1 %v5487_v0  ;;  %v3858_v3 = vmax.f32 %v3789_v39, %v3826_v15  ;;  %v7949_v19 = vpop.permute.xlu1 %4000 }
 0xae9   :  { %v3827_v37 = vmul.f32 0.01, %v3793_v6  ;;  %5490 = vmatpush1.bf16.msra.mxu1 %v5489_v50 }
 0xaea   :  { %v3828_v36 = vmul.f32 0.01, %v3795_v29 }
 0xaeb   :  { %v3859_v48 = vmax.f32 %v3793_v6, %v3827_v37  ;;  %v7951_v56 = vpop.permute.xlu0 %4005 }
 0xaec   :  { %v3860_v46 = vmax.f32 %v3795_v29, %v3828_v36  ;;  %v7953_v17 = vpop.permute.xlu1 %4147 }
 0xaed   :  { %v5493_v9 = vpack.c.bf16 %v3859_v48, %v3857_v42 }
 0xaee   :  { %v5491_v28 = vpack.c.bf16 %v3860_v46, %v3858_v3 }
 0xaef   :  { %v7955_v59 = vpop.permute.xlu0 %4152 }
 0xaf0   :  { %5492 = vmatprep.subr.bf16.mxu1 %v5491_v28  ;;  %v7964_v31 = vpop.permute.xlu1 %4010 }
 0xaf1   :  { %5494 = vmatpush1.bf16.msra.mxu1 %v5493_v9 }
 0xaf3   :  { %v7969_v16 = vpop.permute.xlu0 %4015 }
 0xaf4   :  { %3935 = vmatmul.mubr.f32.vlgmr.msra.gmra.mrb[68].mxu1 %v5168_v5  ;;  %v7971_v33 = vpop.permute.xlu1 %4157 }
 0xaf5   :  { %4477 = vmatprep.mubr.f32.mxu1 %v8396_v25 }
 0xaf7   :  { %v7973_v40 = vpop.permute.xlu0 %4162 }
 0xaf8   :  { %v7975_v1 = vpop.permute.xlu1 %4020 }
 0xafb   :  { %v7977_v58 = vpop.permute.xlu0 %4025 }
 0xafc   :  { %v7980_v39 = vpop.permute.xlu1 %4167 }
 0xaff   :  { %v7982_v50 = vpop.permute.xlu0 %4172 }
 0xb03   :  { %v7998_v45 = vpop.permute.xlu0 %4035 }
 0xbc7   :  { %v3936_v44 = vpop.f32.mrb[68].mxu1 }
 0xbc8   :  { %v3937_v57 = vadd.f32 %v3936_v44, %v3868_v55  ;;  %v3938_v21 = vpop.f32.mrb[69].mxu1 }
 0xbc9   :  { %v3939_v20 = vadd.f32 %v3938_v21, %v3868_v55 }
 0xbca   :  { %5604 = vtanh.f32 %v3937_v57 }
 0xbcb   :  { %5606 = vtanh.f32 %v3939_v20  ;;  %v3945_v35 = vcombine.low %v3937_v57, %v3939_v20 }
 0xbcd   :  { %v3947_v14 = vsub.f32 %v7544_v53, %v3945_v35  ;;  %v7996_v53 = vpop.permute.xlu1 %4030 }
 0xbd1   :  { %v8010_v35 = vpop.permute.xlu1 %4177 }
 0xbd4   :  { %v7957_v23 = vpop.eup %5604 }
 0xbd5   :  { %v7959_v18 = vpop.eup %5606  ;;  %v3948_v30 = vsub.f32 0.0, %v7957_v23  ;;  %v3960_v52 = vsub.f32 %v7769_v51, %v7957_v23 }
 0xbd6   :  { %v3949_v32 = vsub.f32 0.0, %v7959_v18  ;;  %v3961_v62 = vsub.f32 %v7774_v7, %v7959_v18 }
 0xbd7   :  { %v3950_v27 = vmul.f32 1.442695, %v3948_v30 }
 0xbd8   :  { %v3952_v13 = vmul.f32 1.442695, %v3949_v32 }
 0xbd9   :  { %5608 = vpow2.f32 %v3950_v27 }
 0xbda   :  { %5610 = vpow2.f32 %v3952_v13 }
 0xbe3   :  { %v5609_v22 = vpop.eup %5608 }
 0xbe4   :  { %v5611_v54 = vpop.eup %5610 }
 0xbe5   :  { %v3956_v2 = vcombine.low %v5609_v22, %v5611_v54 }
 0xbe7   :  { %v3957_v41 = vrot.slane %v3956_v2, 7 }
 0xbe9   :  { %v7984_v47 = vmul.f32 %v3957_v41, %v3947_v14 }
 0xbeb   :  { %v4062_v34 = vrot.slane %v7984_v47, %v7091_v60  ;;  %v4066_v0 = vrot.slane %v7984_v47, %v7094_v43  ;;  %v4739_v51 = vmul.f32 %v7984_v47, %v7984_v47  ;;  %v8552_v47 = vlaneseq }
 0xbed   :  { %v7991_v61 = vrot.slane %v4062_v34, %v7091_v60  ;;  %v7994_v6 = vrot.slane %v4066_v0, %v7091_v60 }
 0xbef   :  { %v4078_v15 = vmul.f32 %v7994_v6, %v3981_v4  ;;  %v4080_v29 = vmul.f32 %v7994_v6, %v3986_v38  ;;  %v4077_v37 = vmul.f32 %v7991_v61, %v3981_v4  ;;  %v4079_v36 = vmul.f32 %v7991_v61, %v3986_v38 }
 0xbf0   :  { %v4082_v43 = vmul.f32 %v7994_v6, %v3991_v63  ;;  %v4084_v42 = vmul.f32 %v7994_v6, %v3996_v10  ;;  %v4081_v48 = vmul.f32 %v7991_v61, %v3991_v63  ;;  %v4083_v60 = vmul.f32 %v7991_v61, %v3996_v10 }
 0xbf1   :  { %v4206_v3 = vadd.f32 %v4128_v49, %v4078_v15  ;;  %v4208_v46 = vadd.f32 %v4133_v11, %v4080_v29  ;;  %v4205_v9 = vadd.f32 %v4128_v49, %v4077_v37  ;;  %v4207_v28 = vadd.f32 %v4133_v11, %v4079_v36  ;;  %v8014_v49 = vpop.permute.xlu0 %4182 }
 0xbf2   :  { %v4210_v5 = vadd.f32 %v4138_v24, %v4082_v43  ;;  %v4212_v55 = vadd.f32 %v4143_v26, %v4084_v42  ;;  %v4209_v44 = vadd.f32 %v4138_v24, %v4081_v48  ;;  %v4211_v57 = vadd.f32 %v4143_v26, %v4083_v60 }
 0xbf3   :  { %v4238_v21 = vmul.f32 0.01, %v4206_v3  ;;  %v4240_v4 = vmul.f32 0.01, %v4208_v46  ;;  %v4237_v20 = vmul.f32 0.01, %v4205_v9  ;;  %v4086_v38 = vmul.f32 %v7994_v6, %v7949_v19 }
 0xbf4   :  { %v4239_v30 = vmul.f32 0.01, %v4207_v28  ;;  %v4242_v63 = vmul.f32 0.01, %v4210_v5  ;;  %v4244_v32 = vmul.f32 0.01, %v4212_v55  ;;  %v4088_v10 = vmul.f32 %v7994_v6, %v7951_v56 }
 0xbf5   :  { %v4270_v11 = vmax.f32 %v4206_v3, %v4238_v21  ;;  %v4272_v27 = vmax.f32 %v4208_v46, %v4240_v4  ;;  %v4269_v24 = vmax.f32 %v4205_v9, %v4237_v20  ;;  %v4241_v26 = vmul.f32 0.01, %v4209_v44  ;;  %v8024_v3 = vpop.permute.xlu1 %4040 }
 0xbf6   :  { %v4271_v13 = vmax.f32 %v4207_v28, %v4239_v30  ;;  %v4274_v22 = vmax.f32 %v4210_v5, %v4242_v63  ;;  %v4276_v54 = vmax.f32 %v4212_v55, %v4244_v32  ;;  %v4243_v2 = vmul.f32 0.01, %v4211_v57  ;;  %v8031_v5 = vpop.permute.xlu0 %4045 }
 0xbf7   :  { %v5495_v14 = vpack.c.bf16 %v4272_v27, %v4270_v11  ;;  %v4273_v41 = vmax.f32 %v4209_v44, %v4241_v26  ;;  %v4214_v34 = vadd.f32 %v7953_v17, %v4086_v38  ;;  %v4216_v0 = vadd.f32 %v7955_v59, %v4088_v10 }
 0xbf8   :  { %v5497_v15 = vpack.c.bf16 %v4271_v13, %v4269_v24  ;;  %v5499_v29 = vpack.c.bf16 %v4276_v54, %v4274_v22  ;;  %v4275_v37 = vmax.f32 %v4211_v57, %v4243_v2  ;;  %v4085_v36 = vmul.f32 %v7991_v61, %v7949_v19 }
 0xbf9   :  { %5496 = vmatprep.subr.bf16.mxu1 %v5495_v14  ;;  %v4246_v43 = vmul.f32 0.01, %v4214_v34  ;;  %v4248_v42 = vmul.f32 0.01, %v4216_v0  ;;  %v4087_v48 = vmul.f32 %v7991_v61, %v7951_v56  ;;  %v4090_v60 = vmul.f32 %v7994_v6, %v7964_v31  ;;  %v4188_v26 = vpop.permute.xlu1 %4187 }
 0xbfa   :  { %5498 = vmatpush1.bf16.msra.mxu1 %v5497_v15  ;;  %v5501_v46 = vpack.c.bf16 %v4275_v37, %v4273_v41  ;;  %v4213_v9 = vadd.f32 %v7953_v17, %v4085_v36  ;;  %v4092_v28 = vmul.f32 %v7994_v6, %v7969_v16  ;;  %v4089_v19 = vmul.f32 %v7991_v61, %v7964_v31  ;;  %v4193_v14 = vpop.permute.xlu0 %4192 }
 0xbfb   :  { %5500 = vmatprep.subr.bf16.mxu1 %v5499_v29  ;;  %v4278_v55 = vmax.f32 %v4214_v34, %v4246_v43  ;;  %v4280_v56 = vmax.f32 %v4216_v0, %v4248_v42  ;;  %v4215_v44 = vadd.f32 %v7955_v59, %v4087_v48  ;;  %v4218_v57 = vadd.f32 %v7971_v33, %v4090_v60 }
 0xbfc   :  { %v4245_v21 = vmul.f32 0.01, %v4213_v9  ;;  %v4220_v4 = vadd.f32 %v7973_v40, %v4092_v28  ;;  %v4091_v17 = vmul.f32 %v7991_v61, %v7969_v16  ;;  %v4217_v20 = vadd.f32 %v7971_v33, %v4089_v19 }
 0xbfd   :  { %v5503_v38 = vpack.c.bf16 %v4280_v56, %v4278_v55  ;;  %v4247_v30 = vmul.f32 0.01, %v4215_v44  ;;  %v4250_v31 = vmul.f32 0.01, %v4218_v57  ;;  %v4094_v63 = vmul.f32 %v7994_v6, %v7975_v1  ;;  %v4051_v56 = vpop.permute.xlu1 %4050 }
 0xbfe   :  { %5502 = vmatpush1.bf16.msra.mxu1 %v5501_v46  ;;  %v4277_v32 = vmax.f32 %v4213_v9, %v4245_v21  ;;  %v4252_v10 = vmul.f32 0.01, %v4220_v4  ;;  %v4219_v59 = vadd.f32 %v7973_v40, %v4091_v17  ;;  %v4249_v11 = vmul.f32 0.01, %v4217_v20 }
 0xbff   :  { %5504 = vmatprep.subr.bf16.mxu1 %v5503_v38  ;;  %v4279_v27 = vmax.f32 %v4215_v44, %v4247_v30  ;;  %v4282_v24 = vmax.f32 %v4218_v57, %v4250_v31  ;;  %v4096_v16 = vmul.f32 %v7994_v6, %v7977_v58  ;;  %v4222_v33 = vadd.f32 %v7980_v39, %v4094_v63 }
 0xc00   :  { %v4284_v13 = vmax.f32 %v4220_v4, %v4252_v10  ;;  %v4251_v22 = vmul.f32 0.01, %v4219_v59  ;;  %v4281_v54 = vmax.f32 %v4217_v20, %v4249_v11  ;;  %v4093_v2 = vmul.f32 %v7991_v61, %v7975_v1  ;;  %v4056_v4 = vpop.permute.xlu0 %4055 }
 0xc01   :  { %v5505_v41 = vpack.c.bf16 %v4279_v27, %v4277_v32  ;;  %v4224_v40 = vadd.f32 %v7982_v50, %v4096_v16  ;;  %v4254_v34 = vmul.f32 0.01, %v4222_v33  ;;  %v4095_v0 = vmul.f32 %v7991_v61, %v7977_v58 }
 0xc02   :  { %v5507_v15 = vpack.c.bf16 %v4284_v13, %v4282_v24  ;;  %v4283_v29 = vmax.f32 %v4219_v59, %v4251_v22  ;;  %v4221_v37 = vadd.f32 %v7980_v39, %v4093_v2  ;;  %v4098_v36 = vmul.f32 %v7994_v6, %v7996_v53 }
 0xc03   :  { %5506 = vmatpush1.bf16.msra.mxu1 %v5505_v41  ;;  %v4256_v43 = vmul.f32 0.01, %v4224_v40  ;;  %v4286_v42 = vmax.f32 %v4222_v33, %v4254_v34  ;;  %v4223_v1 = vadd.f32 %v7982_v50, %v4095_v0  ;;  %v4100_v48 = vmul.f32 %v7994_v6, %v7998_v45 }
 0xc04   :  { %5508 = vmatprep.subr.bf16.mxu1 %v5507_v15  ;;  %v5509_v60 = vpack.c.bf16 %v4283_v29, %v4281_v54  ;;  %v4253_v46 = vmul.f32 0.01, %v4221_v37  ;;  %v4226_v58 = vadd.f32 %v8010_v35, %v4098_v36  ;;  %v4097_v9 = vmul.f32 %v7991_v61, %v7996_v53  ;;  %v4198_v54 = vpop.permute.xlu1 %4197  ;;  %v4203_v0 = vpop.permute.xlu0 %4202 }
 0xc05   :  { %v4288_v39 = vmax.f32 %v4224_v40, %v4256_v43  ;;  %v4255_v28 = vmul.f32 0.01, %v4223_v1  ;;  %v4228_v19 = vadd.f32 %v8014_v49, %v4100_v48  ;;  %v4099_v55 = vmul.f32 %v7991_v61, %v7998_v45 }
 0xc06   :  { %v4285_v50 = vmax.f32 %v4221_v37, %v4253_v46  ;;  %v4258_v44 = vmul.f32 0.01, %v4226_v58  ;;  %v4225_v57 = vadd.f32 %v8010_v35, %v4097_v9  ;;  %v4102_v21 = vmul.f32 %v7994_v6, %v8024_v3 }
 0xc07   :  { %5510 = vmatpush1.bf16.msra.mxu1 %v5509_v60  ;;  %v5511_v17 = vpack.c.bf16 %v4288_v39, %v4286_v42  ;;  %v4287_v20 = vmax.f32 %v4223_v1, %v4255_v28  ;;  %v4260_v53 = vmul.f32 0.01, %v4228_v19  ;;  %v4227_v38 = vadd.f32 %v8014_v49, %v4099_v55 }
 0xc08   :  { %v4290_v30 = vmax.f32 %v4226_v58, %v4258_v44  ;;  %v4257_v31 = vmul.f32 0.01, %v4225_v57  ;;  %v4104_v45 = vmul.f32 %v7994_v6, %v8031_v5  ;;  %v4230_v63 = vadd.f32 %v4188_v26, %v4102_v21  ;;  %v4301_v44 = vld [vmem:[%s8177_s5] sm:$0xff]  ;;  %v4303_v21 = vld [vmem:[%s8177_s5 + $0x10] sm:$0xff] }
 0xc09   :  { %5512 = vmatprep.subr.bf16.mxu1 %v5511_v17  ;;  %v5513_v32 = vpack.c.bf16 %v4287_v20, %v4285_v50  ;;  %v4292_v10 = vmax.f32 %v4228_v19, %v4260_v53  ;;  %v4259_v35 = vmul.f32 0.01, %v4227_v38  ;;  %v4101_v59 = vmul.f32 %v7991_v61, %v8024_v3  ;;  %v4305_v17 = vld [vmem:[%s8177_s5 + $0x20] sm:$0xff]  ;;  %v4306_v20 = vld [vmem:[%s8177_s5 + $0x28] sm:$0xff]  ;;  %v4307_v53 = vld [vmem:[%s8177_s5 + $0x30] sm:$0xff] }
 0xc0a   :  { %v4289_v11 = vmax.f32 %v4225_v57, %v4257_v31  ;;  %v4232_v27 = vadd.f32 %v4193_v14, %v4104_v45  ;;  %v4262_v24 = vmul.f32 0.01, %v4230_v63  ;;  %v4103_v16 = vmul.f32 %v7991_v61, %v8031_v5  ;;  %v4302_v57 = vld [vmem:[%s8177_s5 + $0x8] sm:$0xff]  ;;  %v4311_v45 = vld [vmem:[%s8177_s5 + $0x50] sm:$0xff] }
 0xc0b   :  { %5514 = vmatpush1.bf16.msra.mxu1 %v5513_v32  ;;  %v5515_v49 = vpack.c.bf16 %v4292_v10, %v4290_v30  ;;  %v4291_v33 = vmax.f32 %v4227_v38, %v4259_v35  ;;  %v4229_v13 = vadd.f32 %v4188_v26, %v4101_v59  ;;  %v4106_v22 = vmul.f32 %v7994_v6, %v4051_v56  ;;  %v4308_v38 = vld [vmem:[%s8177_s5 + $0x38] sm:$0xff]  ;;  %v4309_v30 = vld [vmem:[%s8177_s5 + $0x40] sm:$0xff]  ;;  %v4310_v31 = vld [vmem:[%s8177_s5 + $0x48] sm:$0xff] }
 0xc0c   :  { %v4264_v2 = vmul.f32 0.01, %v4232_v27  ;;  %v4294_v41 = vmax.f32 %v4230_v63, %v4262_v24  ;;  %v4231_v40 = vadd.f32 %v4193_v14, %v4103_v16  ;;  %v4108_v34 = vmul.f32 %v7994_v6, %v4056_v4  ;;  %v4312_v63 = vld [vmem:[%s8177_s5 + $0x58] sm:$0xff]  ;;  %v4313_v32 = vld [vmem:[%s8177_s5 + $0x60] sm:$0xff]  ;;  %v4314_v10 = vld [vmem:[%s8177_s5 + $0x68] sm:$0xff] }
 0xc0d   :  { %5516 = vmatprep.subr.bf16.mxu1 %v5515_v49  ;;  %v5517_v3 = vpack.c.bf16 %v4291_v33, %v4289_v11  ;;  %v4261_v15 = vmul.f32 0.01, %v4229_v13  ;;  %v4234_v29 = vadd.f32 %v4198_v54, %v4106_v22  ;;  %v4105_v37 = vmul.f32 %v7991_v61, %v4051_v56  ;;  %v4315_v35 = vld [vmem:[%s8177_s5 + $0x70] sm:$0xff]  ;;  %v4316_v59 = vld [vmem:[%s8177_s5 + $0x78] sm:$0xff]  ;;  %v4336_v11 = vpop.permute.xlu1 %4335  ;;  %v4341_v33 = vpop.permute.xlu0 %4340 }
 0xc0e   :  { %v4296_v5 = vmax.f32 %v4232_v27, %v4264_v2  ;;  %v4263_v36 = vmul.f32 0.01, %v4231_v40  ;;  %v4236_v43 = vadd.f32 %v4203_v0, %v4108_v34  ;;  %v4107_v26 = vmul.f32 %v7991_v61, %v4056_v4  ;;  %v4304_v4 = vld [vmem:[%s8177_s5 + $0x18] sm:$0xff] }
 0xc0f   :  { %5518 = vmatpush1.bf16.msra.mxu1 %v5517_v3  ;;  %v4293_v42 = vmax.f32 %v4229_v13, %v4261_v15  ;;  %v4266_v1 = vmul.f32 0.01, %v4234_v29  ;;  %v4233_v48 = vadd.f32 %v4198_v54, %v4105_v37 }
 0xc10   :  { %v5519_v60 = vpack.c.bf16 %v4296_v5, %v4294_v41  ;;  %v4295_v14 = vmax.f32 %v4231_v40, %v4263_v36  ;;  %v4268_v46 = vmul.f32 0.01, %v4236_v43  ;;  %v4235_v6 = vadd.f32 %v4203_v0, %v4107_v26 }
 0xc11   :  { %v4298_v58 = vmax.f32 %v4234_v29, %v4266_v1  ;;  %v4265_v9 = vmul.f32 0.01, %v4233_v48  ;;  %v4346_v0 = vpop.permute.xlu1 %4345  ;;  %v4351_v1 = vpop.permute.xlu0 %4350 }
 0xc12   :  { %5520 = vmatprep.subr.bf16.mxu1 %v5519_v60  ;;  %v5521_v39 = vpack.c.bf16 %v4295_v14, %v4293_v42  ;;  %v4300_v28 = vmax.f32 %v4236_v43, %v4268_v46  ;;  %v4267_v19 = vmul.f32 0.01, %v4235_v6 }
 0xc13   :  { %v4297_v55 = vmax.f32 %v4233_v48, %v4265_v9 }
 0xc14   :  { %5522 = vmatpush1.bf16.msra.mxu1 %v5521_v39  ;;  %v5523_v56 = vpack.c.bf16 %v4300_v28, %v4298_v58  ;;  %v4299_v50 = vmax.f32 %v4235_v6, %v4267_v19 }
 0xc15   :  { %v4356_v28 = vpop.permute.xlu1 %4355 }
 0xc16   :  { %5524 = vmatprep.subr.bf16.mxu1 %v5523_v56  ;;  %v5525_v61 = vpack.c.bf16 %v4299_v50, %v4297_v55 }
 0xc18   :  { %5526 = vmatpush1.bf16.msra.mxu1 %v5525_v61 }
 0xc1b   :  { %4478 = vmatmul.mubr.f32.vlgmr.msra.gmra.mrb[70].mxu1 %v4301_v44 }
 0xc1c   :  { %4483 = vmatprep.mubr.f32.mxu1 %v8396_v25 }
 0xc1f   :  { %4484 = vmatmul.mubr.f32.gmra.mrb[72].mxu1 %v4302_v57 }
 0xc20   :  { %4489 = vmatprep.mubr.f32.mxu1 %v8396_v25 }
 0xc23   :  { %4490 = vmatmul.mubr.f32.gmra.mrb[74].mxu1 %v4303_v21 }
 0xc24   :  { %4495 = vmatprep.mubr.f32.mxu1 %v8396_v25 }
 0xc27   :  { %4496 = vmatmul.mubr.f32.gmra.mrb[76].mxu1 %v4304_v4 }
 0xc28   :  { %4501 = vmatprep.mubr.f32.mxu1 %v8396_v25 }
 0xc2b   :  { %4502 = vmatmul.mubr.f32.gmra.mrb[78].mxu1 %v4305_v17 }
 0xc2c   :  { %4507 = vmatprep.mubr.f32.mxu1 %v8396_v25 }
 0xc2f   :  { %4508 = vmatmul.mubr.f32.gmra.mrb[80].mxu1 %v4306_v20  ;;  %v4361_v20 = vpop.permute.xlu0 %4360 }
 0xc30   :  { %4513 = vmatprep.mubr.f32.mxu1 %v8396_v25 }
 0xc33   :  { %4514 = vmatmul.mubr.f32.gmra.mrb[82].mxu1 %v4307_v53 }
 0xc34   :  { %4519 = vmatprep.mubr.f32.mxu1 %v8396_v25 }
 0xc37   :  { %4520 = vmatmul.mubr.f32.gmra.mrb[84].mxu1 %v4308_v38 }
 0xc38   :  { %4525 = vmatprep.mubr.f32.mxu1 %v8396_v25 }
 0xc3b   :  { %4526 = vmatmul.mubr.f32.gmra.mrb[86].mxu1 %v4309_v30 }
 0xc3c   :  { %4531 = vmatprep.mubr.f32.mxu1 %v8396_v25 }
 0xc3f   :  { %4532 = vmatmul.mubr.f32.gmra.mrb[88].mxu1 %v4310_v31 }
 0xc40   :  { %4537 = vmatprep.mubr.f32.mxu1 %v8396_v25 }
 0xc43   :  { %4538 = vmatmul.mubr.f32.gmra.mrb[90].mxu1 %v4311_v45 }
 0xc44   :  { %4543 = vmatprep.mubr.f32.mxu1 %v8396_v25 }
 0xc47   :  { %4544 = vmatmul.mubr.f32.gmra.mrb[92].mxu1 %v4312_v63 }
 0xc48   :  { %4549 = vmatprep.mubr.f32.mxu1 %v8396_v25 }
 0xc4b   :  { %4550 = vmatmul.mubr.f32.gmra.mrb[94].mxu1 %v4313_v32 }
 0xc4c   :  { %4555 = vmatprep.mubr.f32.mxu1 %v8396_v25 }
 0xc4f   :  { %4556 = vmatmul.mubr.f32.gmra.mrb[96].mxu1 %v4314_v10 }
 0xc50   :  { %4561 = vmatprep.mubr.f32.mxu1 %v8396_v25 }
 0xc53   :  { %4562 = vmatmul.mubr.f32.gmra.mrb[98].mxu1 %v4315_v35  ;;  %v4366_v35 = vpop.permute.xlu1 %4365 }
 0xc54   :  { %4567 = vmatprep.mubr.f32.mxu1 %v8396_v25 }
 0xc57   :  { %4568 = vmatmul.mubr.f32.gmra.mrb[100].mxu1 %v4316_v59 }
 0xcee   :  { %v4479_v27 = vpop.f32.mrb[70].mxu1 }
 0xcef   :  { %v4480_v24 = vadd.f32 %v4479_v27, %v4336_v11  ;;  %v4481_v16 = vpop.f32.mrb[71].mxu1 }
 0xcf0   :  { %v4482_v49 = vadd.f32 %v4481_v16, %v4336_v11 }
 0xcf1   :  { %v4574_v22 = vmul.f32 0.01, %v4480_v24 }
 0xcf2   :  { %v4485_v13 = vpop.f32.mrb[72].mxu1  ;;  %v4575_v41 = vmul.f32 0.01, %v4482_v49 }
 0xcf3   :  { %v4486_v54 = vadd.f32 %v4485_v13, %v4341_v33  ;;  %v4487_v2 = vpop.f32.mrb[73].mxu1  ;;  %v4606_v15 = vmax.f32 %v4480_v24, %v4574_v22 }
 0xcf4   :  { %v4488_v40 = vadd.f32 %v4487_v2, %v4341_v33  ;;  %v4607_v36 = vmax.f32 %v4482_v49, %v4575_v41  ;;  %v4371_v2 = vpop.permute.xlu0 %4370 }
 0xcf5   :  { %v4576_v34 = vmul.f32 0.01, %v4486_v54 }
 0xcf6   :  { %v4577_v25 = vmul.f32 0.01, %v4488_v40  ;;  %v4491_v3 = vpop.f32.mrb[74].mxu1 }
 0xcf7   :  { %v4608_v29 = vmax.f32 %v4486_v54, %v4576_v34  ;;  %v4492_v37 = vadd.f32 %v4491_v3, %v4346_v0  ;;  %v4493_v5 = vpop.f32.mrb[75].mxu1 }
 0xcf8   :  { %v4609_v43 = vmax.f32 %v4488_v40, %v4577_v25  ;;  %v4494_v26 = vadd.f32 %v4493_v5, %v4346_v0 }
 0xcf9   :  { %v5529_v42 = vpack.c.bf16 %v4608_v29, %v4606_v15  ;;  %v4578_v14 = vmul.f32 0.01, %v4492_v37 }
 0xcfa   :  { %v4497_v48 = vpop.f32.mrb[76].mxu1  ;;  %v5527_v60 = vpack.c.bf16 %v4609_v43, %v4607_v36  ;;  %v4579_v58 = vmul.f32 0.01, %v4494_v26 }
 0xcfb   :  { %v4498_v46 = vadd.f32 %v4497_v48, %v4351_v1  ;;  %v4499_v6 = vpop.f32.mrb[77].mxu1  ;;  %v4610_v56 = vmax.f32 %v4492_v37, %v4578_v14  ;;  %v4376_v37 = vpop.permute.xlu1 %4375 }
 0xcfc   :  { %v4500_v9 = vadd.f32 %v4499_v6, %v4351_v1  ;;  %5528 = vmatprep.subr.bf16.mxu0 %v5527_v60  ;;  %v4611_v57 = vmax.f32 %v4494_v26, %v4579_v58  ;;  %v4381_v6 = vpop.permute.xlu0 %4380 }
 0xcfd   :  { %v4580_v39 = vmul.f32 0.01, %v4498_v46  ;;  %5530 = vmatpush1.bf16.msra.mxu0 %v5529_v42 }
 0xcfe   :  { %v4581_v19 = vmul.f32 0.01, %v4500_v9  ;;  %v4503_v55 = vpop.f32.mrb[78].mxu1 }
 0xcff   :  { %v4612_v50 = vmax.f32 %v4498_v46, %v4580_v39  ;;  %v4504_v61 = vadd.f32 %v4503_v55, %v4356_v28  ;;  %v4505_v44 = vpop.f32.mrb[79].mxu1 }
 0xd00   :  { %v4613_v21 = vmax.f32 %v4500_v9, %v4581_v19  ;;  %v4506_v4 = vadd.f32 %v4505_v44, %v4356_v28 }
 0xd01   :  { %v5533_v17 = vpack.c.bf16 %v4612_v50, %v4610_v56  ;;  %v4582_v30 = vmul.f32 0.01, %v4504_v61 }
 0xd02   :  { %v4509_v53 = vpop.f32.mrb[80].mxu1  ;;  %v5531_v38 = vpack.c.bf16 %v4613_v21, %v4611_v57  ;;  %v4583_v63 = vmul.f32 0.01, %v4506_v4 }
 0xd03   :  { %v4510_v31 = vadd.f32 %v4509_v53, %v4361_v20  ;;  %v4511_v45 = vpop.f32.mrb[81].mxu1  ;;  %v4614_v27 = vmax.f32 %v4504_v61, %v4582_v30  ;;  %v4386_v61 = vpop.permute.xlu1 %4385 }
 0xd04   :  { %v4512_v32 = vadd.f32 %v4511_v45, %v4361_v20  ;;  %5532 = vmatprep.subr.bf16.mxu0 %v5531_v38  ;;  %v4615_v33 = vmax.f32 %v4506_v4, %v4583_v63  ;;  %v4391_v45 = vpop.permute.xlu0 %4390 }
 0xd05   :  { %v4584_v10 = vmul.f32 0.01, %v4510_v31  ;;  %5534 = vmatpush1.bf16.msra.mxu0 %v5533_v17 }
 0xd06   :  { %v4585_v59 = vmul.f32 0.01, %v4512_v32  ;;  %v4515_v11 = vpop.f32.mrb[82].mxu1 }
 0xd07   :  { %v4616_v24 = vmax.f32 %v4510_v31, %v4584_v10  ;;  %v4516_v16 = vadd.f32 %v4515_v11, %v4366_v35  ;;  %v4517_v49 = vpop.f32.mrb[83].mxu1 }
 0xd08   :  { %v4617_v13 = vmax.f32 %v4512_v32, %v4585_v59  ;;  %v4518_v22 = vadd.f32 %v4517_v49, %v4366_v35 }
 0xd09   :  { %v5537_v54 = vpack.c.bf16 %v4616_v24, %v4614_v27  ;;  %v4586_v34 = vmul.f32 0.01, %v4516_v16 }
 0xd0a   :  { %v4521_v41 = vpop.f32.mrb[84].mxu1  ;;  %v5535_v40 = vpack.c.bf16 %v4617_v13, %v4615_v33  ;;  %v4587_v3 = vmul.f32 0.01, %v4518_v22 }
 0xd0b   :  { %v4522_v0 = vadd.f32 %v4521_v41, %v4371_v2  ;;  %v4523_v25 = vpop.f32.mrb[85].mxu1  ;;  %v4618_v43 = vmax.f32 %v4516_v16, %v4586_v34  ;;  %v4396_v16 = vpop.permute.xlu1 %4395 }
 0xd0c   :  { %v4524_v15 = vadd.f32 %v4523_v25, %v4371_v2  ;;  %5536 = vmatprep.subr.bf16.mxu0 %v5535_v40  ;;  %v4619_v48 = vmax.f32 %v4518_v22, %v4587_v3  ;;  %v4401_v25 = vpop.permute.xlu0 %4400 }
 0xd0d   :  { %v4588_v29 = vmul.f32 0.01, %v4522_v0  ;;  %5538 = vmatpush1.bf16.msra.mxu0 %v5537_v54 }
 0xd0e   :  { %v4589_v5 = vmul.f32 0.01, %v4524_v15  ;;  %v4527_v36 = vpop.f32.mrb[86].mxu1 }
 0xd0f   :  { %v4620_v26 = vmax.f32 %v4522_v0, %v4588_v29  ;;  %v4528_v42 = vadd.f32 %v4527_v36, %v4376_v37  ;;  %v4529_v1 = vpop.f32.mrb[87].mxu1 }
 0xd10   :  { %v4621_v60 = vmax.f32 %v4524_v15, %v4589_v5  ;;  %v4530_v14 = vadd.f32 %v4529_v1, %v4376_v37 }
 0xd11   :  { %v5541_v46 = vpack.c.bf16 %v4620_v26, %v4618_v43  ;;  %v4590_v39 = vmul.f32 0.01, %v4528_v42 }
 0xd12   :  { %v4533_v58 = vpop.f32.mrb[88].mxu1  ;;  %v5539_v9 = vpack.c.bf16 %v4621_v60, %v4619_v48  ;;  %v4591_v55 = vmul.f32 0.01, %v4530_v14 }
 0xd13   :  { %v4534_v28 = vadd.f32 %v4533_v58, %v4381_v6  ;;  %v4535_v19 = vpop.f32.mrb[89].mxu1  ;;  %v4622_v21 = vmax.f32 %v4528_v42, %v4590_v39  ;;  %v4406_v42 = vpop.permute.xlu1 %4405 }
 0xd14   :  { %v4536_v56 = vadd.f32 %v4535_v19, %v4381_v6  ;;  %5540 = vmatprep.subr.bf16.mxu0 %v5539_v9  ;;  %v4623_v53 = vmax.f32 %v4530_v14, %v4591_v55  ;;  %v4411_v19 = vpop.permute.xlu0 %4410 }
 0xd15   :  { %v4592_v50 = vmul.f32 0.01, %v4534_v28  ;;  %5542 = vmatpush1.bf16.msra.mxu0 %v5541_v46 }
 0xd16   :  { %v4593_v44 = vmul.f32 0.01, %v4536_v56  ;;  %v4539_v57 = vpop.f32.mrb[90].mxu1 }
 0xd17   :  { %v4624_v4 = vmax.f32 %v4534_v28, %v4592_v50  ;;  %v4540_v17 = vadd.f32 %v4539_v57, %v4386_v61  ;;  %v4541_v20 = vpop.f32.mrb[91].mxu1 }
 0xd18   :  { %v4625_v38 = vmax.f32 %v4536_v56, %v4593_v44  ;;  %v4542_v30 = vadd.f32 %v4541_v20, %v4386_v61 }
 0xd19   :  { %v5545_v31 = vpack.c.bf16 %v4624_v4, %v4622_v21  ;;  %v4594_v10 = vmul.f32 0.01, %v4540_v17 }
 0xd1a   :  { %v4545_v63 = vpop.f32.mrb[92].mxu1  ;;  %v5543_v32 = vpack.c.bf16 %v4625_v38, %v4623_v53  ;;  %v4595_v11 = vmul.f32 0.01, %v4542_v30 }
 0xd1b   :  { %v4546_v35 = vadd.f32 %v4545_v63, %v4391_v45  ;;  %v4547_v59 = vpop.f32.mrb[93].mxu1  ;;  %v4626_v13 = vmax.f32 %v4540_v17, %v4594_v10  ;;  %v4638_v63 = vld [vmem:[%s8179_s7] sm:$0x3] }
 0xd1c   :  { %v4548_v27 = vadd.f32 %v4547_v59, %v4391_v45  ;;  %5544 = vmatprep.subr.bf16.mxu0 %v5543_v32  ;;  %v4627_v41 = vmax.f32 %v4542_v30, %v4595_v11  ;;  %v4643_v32 = vpop.permute.xlu1 %4642 }
 0xd1d   :  { %v4596_v24 = vmul.f32 0.01, %v4546_v35  ;;  %5546 = vmatpush1.bf16.msra.mxu0 %v5545_v31 }
 0xd1e   :  { %v4597_v49 = vmul.f32 0.01, %v4548_v27  ;;  %v4551_v33 = vpop.f32.mrb[94].mxu1 }
 0xd1f   :  { %v4628_v22 = vmax.f32 %v4546_v35, %v4596_v24  ;;  %v4552_v54 = vadd.f32 %v4551_v33, %v4396_v16  ;;  %v4553_v2 = vpop.f32.mrb[95].mxu1 }
 0xd20   :  { %v4629_v40 = vmax.f32 %v4548_v27, %v4597_v49  ;;  %v4554_v34 = vadd.f32 %v4553_v2, %v4396_v16 }
 0xd21   :  { %v5549_v0 = vpack.c.bf16 %v4628_v22, %v4626_v13  ;;  %v4598_v29 = vmul.f32 0.01, %v4552_v54 }
 0xd22   :  { %v4557_v3 = vpop.f32.mrb[96].mxu1  ;;  %v5547_v15 = vpack.c.bf16 %v4629_v40, %v4627_v41  ;;  %v4599_v36 = vmul.f32 0.01, %v4554_v34  ;;  %v8551_v40 = vld [vmem:[#allocation7_spill] sm:$0xff] }
 0xd23   :  { %v4558_v37 = vadd.f32 %v4557_v3, %v4401_v25  ;;  %v4559_v5 = vpop.f32.mrb[97].mxu1  ;;  %v4630_v60 = vmax.f32 %v4552_v54, %v4598_v29 }
 0xd24   :  { %v4560_v43 = vadd.f32 %v4559_v5, %v4401_v25  ;;  %5548 = vmatprep.subr.bf16.mxu0 %v5547_v15  ;;  %v4631_v58 = vmax.f32 %v4554_v34, %v4599_v36  ;;  %v4759_v5 = vand.u32 2147483647, %v5903_v12  ;;  %v8553_v12 = vld [vmem:[#allocation8_spill] sm:$0xff] }
 0xd25   :  { %v4600_v26 = vmul.f32 0.01, %v4558_v37  ;;  %5550 = vmatpush1.bf16.msra.mxu0 %v5549_v0  ;;  %vm4815_vm3 = vcmp.eq.s32.totalorder %v8553_v12, 0 }
 0xd26   :  { %v4601_v1 = vmul.f32 0.01, %v4560_v43  ;;  %v4563_v48 = vpop.f32.mrb[98].mxu1 }
 0xd27   :  { %v4632_v14 = vmax.f32 %v4558_v37, %v4600_v26  ;;  %v4564_v46 = vadd.f32 %v4563_v48, %v4406_v42  ;;  %v4565_v6 = vpop.f32.mrb[99].mxu1 }
 0xd28   :  { %v4633_v9 = vmax.f32 %v4560_v43, %v4601_v1  ;;  %v4566_v39 = vadd.f32 %v4565_v6, %v4406_v42  ;;  %v5174_v42 = vrot.slane %v4759_v5, 9 }
 0xd29   :  { %v5553_v28 = vpack.c.bf16 %v4632_v14, %v4630_v60  ;;  %v4602_v50 = vmul.f32 0.01, %v4564_v46 }
 0xd2a   :  { %v4569_v55 = vpop.f32.mrb[100].mxu1  ;;  %v5551_v56 = vpack.c.bf16 %v4633_v9, %v4631_v58  ;;  %v4603_v57 = vmul.f32 0.01, %v4566_v39  ;;  %v4764_v60 = vadd.f32 %v5174_v42, %v4759_v5 }
 0xd2b   :  { %v4570_v61 = vadd.f32 %v4569_v55, %v4411_v19  ;;  %v4571_v44 = vpop.f32.mrb[101].mxu1  ;;  %v4634_v20 = vmax.f32 %v4564_v46, %v4602_v50  ;;  %v4778_v46 = vand.u32 127, %v8552_v47  ;;  %v4794_v55 = vsub.s32 6, %v8553_v12 }
 0xd2c   :  { %v4572_v21 = vadd.f32 %v4571_v44, %v4411_v19  ;;  %5552 = vmatprep.subr.bf16.mxu0 %v5551_v56  ;;  %v4635_v38 = vmax.f32 %v4566_v39, %v4603_v57  ;;  %v4773_v58 = vrot.slane %v4764_v60, 6  ;;  %v4790_v19 = vsub.s32 2, %v8553_v12 }
 0xd2d   :  { %v4604_v4 = vmul.f32 0.01, %v4570_v61  ;;  %5554 = vmatpush1.bf16.msra.mxu0 %v5553_v28  ;;  %v4779_v9 = vadd.s32 128, %v4778_v46  ;;  %v4784_v28 = vstv %s8172_s0  ;;  %vm4816_vm4 = vcmp.eq.s32.totalorder %v4778_v46, 0  ;;  %s5648_s0 = smov [#allocation4]  }
 0xd2e   :  { %v4605_v17 = vmul.f32 0.01, %v4572_v21  ;;  %vm4785_vm0 = vcmp.lt.s32.totalorder %v4778_v46, %v4784_v28  ;;  %s4827_s23 = sshll.u32 %s5648_s0, 4  ;;  %vm4817_vm5 = vmand %vm4815_vm3, %vm4816_vm4  ;;  %s4828_s23 = int_to_ptr.vmem [resolvable:$true] %s4827_s23 }
 0xd2f   :  { %v4636_v53 = vmax.f32 %v4570_v61, %v4604_v4  ;;  %vm4786_vm1 = vcmp.lt.s32.totalorder %v4779_v9, %v4784_v28  ;;  %s5622_s2 = scalar_lea.vmem %s4828_s23, 128  ;;  %p5627_p1 = scmp.lt.s32.totalorder %s4828_s23, %s4828_s23 }
 0xd30   :  { %v4637_v30 = vmax.f32 %v4572_v21, %v4605_v17  ;;  %p5623_p0 = scmp.ne.s32.totalorder %s4828_s23, %s5622_s2  ;;  %p5628_p2 = scmp.lt.s32.totalorder %s5622_s2, %s5622_s2 }
 0xd31   :  { %v5557_v31 = vpack.c.bf16 %v4636_v53, %v4634_v20 }
 0xd32   :  { %v5555_v45 = vpack.c.bf16 %v4637_v30, %v4635_v38  ;;  %p5629_p3 = por %p5628_p2, %p5627_p1 }
 0xd34   :  { %5556 = vmatprep.subr.bf16.mxu0 %v5555_v45  ;;  %p5630_p4 = pnand %p5629_p3, %p5623_p0 }
 0xd35   :  { %5558 = vmatpush1.bf16.msra.mxu0 %v5557_v31 }
 0xd38   :  { %4710 = vmatmul.mubr.f32.vlgmr.msra.gmra.mrb[100].mxu0 %v4638_v63 }
 0xe0b   :  { %v4711_v10 = vpop.f32.mrb[100].mxu0 }
 0xe0c   :  { %v4712_v35 = vadd.f32 %v4711_v10, %v4643_v32  ;;  %v4713_v59 = vpop.f32.mrb[101].mxu0 }
 0xe0d   :  { %v4714_v11 = vadd.f32 %v4713_v59, %v4643_v32 }
 0xe0e   :  { %5612 = vtanh.f32 %v4712_v35 }
 0xe0f   :  { %5614 = vtanh.f32 %v4714_v11  ;;  %v4720_v27 = vcombine.low %v4712_v35, %v4714_v11 }
 0xe10   :  { %5616 = vlog2.f32 %v8551_v40 }
 0xe11   :  { %v5170_v34 = vrot.slane %v4720_v27, 9 }
 0xe13   :  { %v4724_v23 = vsub.f32 %v7789_v8, %v5170_v34 }
 0xe18   :  { %v5613_v24 = vpop.eup %5612 }
 0xe19   :  { %v5615_v16 = vpop.eup %5614  ;;  %v4725_v49 = vsub.f32 0.0, %v5613_v24  ;;  %v4736_v33 = vsub.f32 %v3960_v52, %v5613_v24 }
 0xe1a   :  { %v4726_v13 = vsub.f32 0.0, %v5615_v16  ;;  %v4737_v22 = vsub.f32 %v3961_v62, %v5615_v16  ;;  %v5617_v0 = vpop.eup %5616  ;;  %v5171_v62 = vrot.slane %v4739_v51, 9 }
 0xe1b   :  { %v4727_v54 = vmul.f32 1.442695, %v4725_v49  ;;  %v4753_v7 = vmul.f32 0.6931472, %v5617_v0 }
 0xe1c   :  { %v4729_v2 = vmul.f32 1.442695, %v4726_v13  ;;  %v4749_v41 = vcombine.low %v4736_v33, %v4737_v22 }
 0xe1d   :  { %5618 = vpow2.f32 %v4727_v54  ;;  %v5173_v37 = vrot.slane %v4753_v7, 9 }
 0xe1e   :  { %5620 = vpow2.f32 %v4729_v2 }
 0xe1f   :  { %v4758_v26 = vadd.f32 %v5173_v37, %v4753_v7 }
 0xe21   :  { %v4765_v14 = vmul.f32 2.0, %v4758_v26 }
 0xe27   :  { %v5619_v25 = vpop.eup %5618 }
 0xe28   :  { %v5621_v3 = vpop.eup %5620 }
 0xe29   :  { %v4733_v52 = vcombine.low %v5619_v25, %v5621_v3 }
 0xe2b   :  { %v4735_v15 = vmul.f32 %v4733_v52, %v4724_v23 }
 0xe2d   :  { %v4738_v18 = vmul.f32 %v4735_v15, %v4735_v15 }
 0xe2f   :  { %v4744_v29 = vadd.f32 %v5171_v62, %v4738_v18 }
 0xe31   :  { %v4745_v36 = vmul.f32 -0.5, %v4744_v29 }
 0xe33   :  { %v5172_v43 = vadd.f32 -1.837877, %v4745_v36 }
 0xe35   :  { %v4751_v1 = vadd.f32 %v5172_v43, %v4749_v41 }
 0xe37   :  { %v4766_v48 = vmul.f32 2.0, %v4751_v1 }
 0xe39   :  { %v4768_v8 = vrot.slane %v4766_v48, 6 }
 0xe3b   :  { %v4770_v6 = vsub.f32 %v4765_v14, %v4768_v8 }
 0xe3d   :  { %v4771_v39 = vadd.f32 1.3862944, %v4770_v6 }
 0xe3f   :  { %v4775_v56 = vadd.f32 %v4773_v58, %v4771_v39 }
 0xe41   :  { %v4791_v50 = vrot.slane %v4775_v56, %v4790_v19  ;;  %v4795_v61 = vrot.slane %v4775_v56, %v4794_v55 }
 0xe43   :  { %v4798_v44 = vsel %vm4785_vm0, %v4791_v50, 0.0  ;;  %v4799_v57 = vsel %vm4786_vm1, %v4795_v61, 0.0 }
 0xe44   :  { %v4801_v21 = vsel %vm4800_vm2, %v4798_v44, 0.0  ;;  %v4802_v4 = vsel %vm4800_vm2, %v4799_v57, 0.0 }
 0xe45   :  { %v4803_v17 = vadd.f32 %v4802_v4, %v4801_v21 }
 0xe47   :  { %4804 = vadd.xlane.f32.xlu0 %v4803_v17 }
 0xed4   :  { %v4805_v20 = vpop.xlane.xlu0 %4804 }
 0xed5   :  { %v4806_v53 = vrot.slane %v4805_v20, 4 }
 0xed7   :  { %v4807_v38 = vadd.f32 %v4806_v53, %v4805_v20 }
 0xed9   :  { %v4808_v30 = vrot.slane %v4807_v38, 2 }
 0xedb   :  { %v4809_v31 = vadd.f32 %v4808_v30, %v4807_v38 }
 0xedd   :  { %v4810_v45 = vrot.slane %v4809_v31, 1 }
 0xedf   :  { %v4811_v63 = vadd.f32 %v4810_v45, %v4809_v31 }
 0xee1   :  { %5559 = vpush %v4811_v63 }
 0xf12   :  { %s5560_s24 = spop %5559 }
 0xf13   :  { %v4818_v32 = vstv %s5560_s24 }
 0xf14   :  { %v4819_v10 = vsel %vm4817_vm5, %v4818_v32, 0.0 }
 0xf15   :  { %4820 = vst [vmem:[#allocation4] sm:$0xff] %v4819_v10 }
 0xf16   :  { %5633 = shalt.err (!%p5630_p4)
}
 0xf17   :  { %s5634_s27 = scalar_lea.hbm %s8181_s9, 128 }
 0xf18   :  { %p5635_p5 = scmp.ne.s32.totalorder %s8181_s9, %s5634_s27  ;;  %p5638_p6 = scmp.lt.u32.totalorder %s5634_s27, %s8181_s9 }
 0xf1a   :  { %p5640_p7 = pnand %p5638_p6, %p5635_p5 }
 0xf1c   :  { %5643 = shalt.err (!%p5640_p7)
}
 0xf1d   :  { %4830 = dma.vmem_to_hbm [thread:$0]  %s4828_s23, 128, %s8181_s9, [#allocation5]  }
 0xf1e   :  { %5644 = dma.done.wait [#allocation5], 128  }
 0xf1f   :  { %5645 = vsyncadd [#allocation5], 4294967168 }
 0xf20   :  { %4834 = vsyncpa [#allocation5], 1 }

</bundles_post_ra>
